<compile_context>
chip_gen: v6e
topology: v6e:2x2x1
jax: 0.10.0
libtpu: 0.0.40
codegen_flags: <defaults>
</compile_context>

<pallas_src>
import functools

import jax
import jax.numpy as jnp
from jax import lax
from jax.experimental import pallas as pl
from jax.experimental.pallas import tpu as pltpu


def _pixel_shuffle3d_kernel(x_ref, scat_ref, o_ref, *, scale, d_tile, Hg, lanes_out,
                            compute_dtype, precision):
    """Processes one (batch*out-channel, depth-tile) block.

    x_ref    : (s^3, d_tile*Hg, g*W)   rows = (d, h_hi), lanes = (h_lo, w);
                                       channel order within the block is (sd, sh, sw)
    scat_ref : (s^2, g*W, g*s^2*W)     constant one-hot lane-scatter matrices
    o_ref    : (d_tile, s, Hg, g*s^2*W)
    """
    s = scale
    for sd in range(s):
        acc = None
        for c2 in range(s * s):
            lhs = x_ref[sd * s * s + c2].astype(compute_dtype)
            part = jnp.dot(lhs, scat_ref[c2],
                           preferred_element_type=jnp.float32,
                           precision=precision)
            # Contributions hit disjoint output lanes (one-hot columns), so the
            # f32 accumulation is a pure scatter (exact).
            acc = part if acc is None else acc + part
        # (d_tile*Hg, g*s^2*W) -> (d_tile, Hg, g*s^2*W): lane dim untouched, only a
        # leading/sublane regroup (a no-op relayout when Hg % 8 == 0).
        o_ref[:, sd, :, :] = acc.reshape(d_tile, Hg, lanes_out).astype(o_ref.dtype)


def _round_up(v, m):
    return (v + m - 1) // m * m


def pixel_shuffle3d(x, scale):
    """3-D pixel shuffle: (B, C, D, H, W) -> (B, C//s^3, D*s, H*s, W*s)."""
    B, C, D, H, W = x.shape
    s = int(scale)
    if C % (s ** 3) != 0:
        raise ValueError("channels must be divisible by scale**3")
    n_out = C // (s ** 3)
    s2, s3 = s * s, s ** 3
    L = s2 * W                                    # un-widened output lane width

    # ----- matmul dtype: keep the input's native float dtype on the MXU -----
    if x.dtype == jnp.bfloat16 or x.dtype == jnp.float32:
        compute_dtype = jnp.dtype(x.dtype)
    else:
        # TODO(synk): ints with |value| >= 2^24 are not bit-exact on this path.
        compute_dtype = jnp.dtype(jnp.float32)
    use_f32_mxu = compute_dtype == jnp.dtype(jnp.float32)
    precision = lax.Precision.HIGHEST if use_f32_mxu else None

    # ----- height-fold factor g: make the output lane width a multiple of 128 -----
    divs_h = [t for t in range(1, H + 1) if H % t == 0]
    g = next((t for t in divs_h if (t * L) % 128 == 0),
             next((t for t in divs_h if t * L >= 128), H))
    Hg = H // g
    lanes_in, lanes_out = g * W, g * L

    # ----- per-generation VMEM budget + padding-aware accounting for d_tile -----
    try:
        vmem_cap = int(pltpu.get_tpu_info().vmem_capacity_bytes)
    except Exception:                              # conservative (v7x-sized) fallback
        vmem_cap = 64 * 1024 * 1024
    budget = min(vmem_cap // 3, 32 * 1024 * 1024)
    vmem_limit = int(min(vmem_cap * 3 // 4, 112 * 1024 * 1024))

    isz = jnp.dtype(x.dtype).itemsize
    csz = compute_dtype.itemsize

    def resident_bytes(dt):
        rows = dt * Hg
        in_blk = s3 * _round_up(rows, 8) * _round_up(lanes_in, 128) * isz
        out_blk = dt * s * _round_up(Hg, 8) * _round_up(lanes_out, 128) * isz
        scat_blk = s2 * _round_up(lanes_in, 8) * _round_up(lanes_out, 128) * csz
        acc_f32 = 2 * _round_up(rows, 8) * _round_up(lanes_out, 128) * 4
        lhs_cast = _round_up(rows, 8) * _round_up(lanes_in, 128) * csz
        return 2 * (in_blk + out_blk + scat_blk) + acc_f32 + lhs_cast

    # second-to-last dim of the input block must be sublane-aligned (or full extent)
    cand = [t for t in range(1, D + 1)
            if ((t * Hg) % 8 == 0 or t == D) and resident_bytes(t) <= budget]
    if cand:
        d_cap = max(cand)
        d_tile = max([t for t in cand if D % t == 0] or [min(cand)])
        if 2 * d_tile < d_cap:          # poor divisor structure -> allow ragged last block
            d_tile = d_cap
    else:
        d_tile = D                       # full-depth block is always layout-legal
    # keep >= 2 grid steps so both v7x TensorCores / megacore get work
    if B * n_out * pl.cdiv(D, d_tile) < 2 and D > 1:
        half = pl.cdiv(D, 2)
        if (half * Hg) % 8 == 0 or half == D:
            d_tile = half
    n_d = pl.cdiv(D, d_tile)

    # ----- one-hot lane-scatter matrices (block-diagonal over h_lo) -----
    # scat[sh*s+sw, h_lo*W + w, h_lo*L + sh*(W*s) + w*s + sw] = 1
    c2 = jnp.arange(s2)
    sh, sw = c2 // s, c2 % s
    k = jnp.arange(lanes_in)
    h_lo, w = k // W, k % W
    cols = (h_lo[None, :] * L + sh[:, None] * (W * s)
            + w[None, :] * s + sw[:, None])                          # (s^2, g*W)
    scat = jax.nn.one_hot(cols, lanes_out, dtype=compute_dtype)      # (s^2, g*W, g*L)

    # Free (contiguous) HBM view: rows = (d, h_hi), lanes = (h_lo, w).
    xg = x.reshape(B * C, (D * H) // g, lanes_in)

    grid = (B * n_out, n_d)
    kernel = functools.partial(
        _pixel_shuffle3d_kernel, scale=s, d_tile=d_tile, Hg=Hg,
        lanes_out=lanes_out, compute_dtype=compute_dtype, precision=precision)

    out5 = pl.pallas_call(
        kernel,
        out_shape=jax.ShapeDtypeStruct((B * n_out, D, s, Hg, lanes_out), x.dtype),
        grid_spec=pltpu.PrefetchScalarGridSpec(
            num_scalar_prefetch=0,
            grid=grid,
            in_specs=[
                # the s^3 contiguous input sub-channels of (b, co), depth-tiled
                pl.BlockSpec((s3, d_tile * Hg, lanes_in),
                             lambda bco, dk: (bco, dk, 0)),
                # constant scatter matrices (index-map constant -> copied once)
                pl.BlockSpec((s2, lanes_in, lanes_out),
                             lambda bco, dk: (0, 0, 0)),
            ],
            out_specs=pl.BlockSpec((None, d_tile, s, Hg, lanes_out),
                                   lambda bco, dk: (bco, dk, 0, 0, 0)),
        ),
        compiler_params=pltpu.CompilerParams(
            dimension_semantics=("parallel", "parallel"),
            vmem_limit_bytes=vmem_limit),
    )(xg, scat)

    # (B*nOut, D, s, H/g, g*s^2*W) row-major == (B, nOut, D*s, H*s, W*s): free view.
    return out5.reshape(B, n_out, D * s, H * s, W * s)


# ---------------- pure-JAX reference for verification ----------------
def _ref_pixel_shuffle3d(x, scale):
    B, C, D, H, W = x.shape
    s = scale
    n_out = C // (s ** 3)
    v = x.reshape(B, n_out, s, s, s, D, H, W)
    v = jnp.transpose(v, (0, 1, 5, 2, 6, 3, 7, 4))
    return v.reshape(B, n_out, D * s, H * s, W * s)


if __name__ == "__main__":
    scale = 2
    B, C, D, H, W = 2, 16, 8, 16, 16              # C = nOut * scale**3 -> nOut = 2

    key = jax.random.PRNGKey(0)
    x32 = jax.random.normal(key, (B, C, D, H, W), jnp.float32)

    fn = jax.jit(functools.partial(pixel_shuffle3d, scale=scale))

    # float32 path (precision=HIGHEST one-hot matmul): machine-precision accurate.
    out32 = jax.block_until_ready(fn(x32))
    ref32 = _ref_pixel_shuffle3d(x32, scale)
    assert out32.shape == (B, C // scale ** 3, D * scale, H * scale, W * scale), out32.shape
    err32 = float(jnp.max(jnp.abs(out32 - ref32)))
    if err32 > 1e-4:                              # indexing bugs show up as O(1) errors
        raise AssertionError(f"f32 mismatch vs reference, max abs err = {err32}")

    # bfloat16 path (native-dtype matmul): must be bit-exact.
    x16 = x32.astype(jnp.bfloat16)
    out16 = jax.block_until_ready(fn(x16))
    ref16 = _ref_pixel_shuffle3d(x16, scale)
    err16 = float(jnp.max(jnp.abs((out16 - ref16).astype(jnp.float32))))
    if err16 != 0.0:
        raise AssertionError(f"bf16 mismatch vs reference, max abs err = {err16}")

    print("KERNEL_OK")
</pallas_src>

<mosaic_0001>
module attributes {stable_mosaic.version = 11 : i64} {
  func.func @_pixel_shuffle3d_kernel(%arg0: i32, %arg1: i32, %arg2: memref<8x64x32xf32, #tpu.memory_space<vmem>>, %arg3: memref<4x32x128xf32, #tpu.memory_space<vmem>>, %arg4: memref<1x8x2x8x128xf32, #tpu.memory_space<vmem>>) attributes {dimension_semantics = [#tpu.dimension_semantics<parallel>, #tpu.dimension_semantics<parallel>], iteration_bounds = array<i64: 4, 1>, scalar_prefetch = 0 : i64, scratch_operands = 0 : i64, tpu.core_type = #tpu.core_type<tc>, window_params = [{transform_indices = @transform_0, window_bounds = array<i64: 8, 64, 32>}, {pipeline_mode = #tpu.pipeline_mode<synchronous>, transform_indices = @transform_1, window_bounds = array<i64: 4, 32, 128>}, {transform_indices = @transform_2, window_bounds = array<i64: 1, 8, 2, 8, 128>}]} {
    %c0 = arith.constant 0 : index
    %c0_0 = arith.constant 0 : index
    %c0_1 = arith.constant 0 : index
    %0 = vector.load %arg2[%c0, %c0_0, %c0_1] : memref<8x64x32xf32, #tpu.memory_space<vmem>>, vector<1x64x32xf32>
    %1 = vector.shape_cast %0 : vector<1x64x32xf32> to vector<64x32xf32>
    %c0_2 = arith.constant 0 : index
    %c0_3 = arith.constant 0 : index
    %c0_4 = arith.constant 0 : index
    %2 = vector.load %arg3[%c0_2, %c0_3, %c0_4] : memref<4x32x128xf32, #tpu.memory_space<vmem>>, vector<1x32x128xf32>
    %3 = vector.shape_cast %2 : vector<1x32x128xf32> to vector<32x128xf32>
    %cst = arith.constant dense<0.000000e+00> : vector<64x128xf32>
    %4 = tpu.matmul %1, %3, %cst {dimension_numbers = #tpu.dot_dimension_numbers<[1], [0], [0], [1], [0, 0, 1, 1], [], []>, precision = #tpu.contract_precision<fp32>} : vector<64x32xf32>, vector<32x128xf32>, vector<64x128xf32> -> vector<64x128xf32>
    %c1 = arith.constant 1 : index
    %c0_5 = arith.constant 0 : index
    %c0_6 = arith.constant 0 : index
    %5 = vector.load %arg2[%c1, %c0_5, %c0_6] : memref<8x64x32xf32, #tpu.memory_space<vmem>>, vector<1x64x32xf32>
    %6 = vector.shape_cast %5 : vector<1x64x32xf32> to vector<64x32xf32>
    %c1_7 = arith.constant 1 : index
    %c0_8 = arith.constant 0 : index
    %c0_9 = arith.constant 0 : index
    %7 = vector.load %arg3[%c1_7, %c0_8, %c0_9] : memref<4x32x128xf32, #tpu.memory_space<vmem>>, vector<1x32x128xf32>
    %8 = vector.shape_cast %7 : vector<1x32x128xf32> to vector<32x128xf32>
    %cst_10 = arith.constant dense<0.000000e+00> : vector<64x128xf32>
    %9 = tpu.matmul %6, %8, %cst_10 {dimension_numbers = #tpu.dot_dimension_numbers<[1], [0], [0], [1], [0, 0, 1, 1], [], []>, precision = #tpu.contract_precision<fp32>} : vector<64x32xf32>, vector<32x128xf32>, vector<64x128xf32> -> vector<64x128xf32>
    %10 = arith.addf %4, %9 : vector<64x128xf32>
    %c2 = arith.constant 2 : index
    %c0_11 = arith.constant 0 : index
    %c0_12 = arith.constant 0 : index
    %11 = vector.load %arg2[%c2, %c0_11, %c0_12] : memref<8x64x32xf32, #tpu.memory_space<vmem>>, vector<1x64x32xf32>
    %12 = vector.shape_cast %11 : vector<1x64x32xf32> to vector<64x32xf32>
    %c2_13 = arith.constant 2 : index
    %c0_14 = arith.constant 0 : index
    %c0_15 = arith.constant 0 : index
    %13 = vector.load %arg3[%c2_13, %c0_14, %c0_15] : memref<4x32x128xf32, #tpu.memory_space<vmem>>, vector<1x32x128xf32>
    %14 = vector.shape_cast %13 : vector<1x32x128xf32> to vector<32x128xf32>
    %cst_16 = arith.constant dense<0.000000e+00> : vector<64x128xf32>
    %15 = tpu.matmul %12, %14, %cst_16 {dimension_numbers = #tpu.dot_dimension_numbers<[1], [0], [0], [1], [0, 0, 1, 1], [], []>, precision = #tpu.contract_precision<fp32>} : vector<64x32xf32>, vector<32x128xf32>, vector<64x128xf32> -> vector<64x128xf32>
    %16 = arith.addf %10, %15 : vector<64x128xf32>
    %c3 = arith.constant 3 : index
    %c0_17 = arith.constant 0 : index
    %c0_18 = arith.constant 0 : index
    %17 = vector.load %arg2[%c3, %c0_17, %c0_18] : memref<8x64x32xf32, #tpu.memory_space<vmem>>, vector<1x64x32xf32>
    %18 = vector.shape_cast %17 : vector<1x64x32xf32> to vector<64x32xf32>
    %c3_19 = arith.constant 3 : index
    %c0_20 = arith.constant 0 : index
    %c0_21 = arith.constant 0 : index
    %19 = vector.load %arg3[%c3_19, %c0_20, %c0_21] : memref<4x32x128xf32, #tpu.memory_space<vmem>>, vector<1x32x128xf32>
    %20 = vector.shape_cast %19 : vector<1x32x128xf32> to vector<32x128xf32>
    %cst_22 = arith.constant dense<0.000000e+00> : vector<64x128xf32>
    %21 = tpu.matmul %18, %20, %cst_22 {dimension_numbers = #tpu.dot_dimension_numbers<[1], [0], [0], [1], [0, 0, 1, 1], [], []>, precision = #tpu.contract_precision<fp32>} : vector<64x32xf32>, vector<32x128xf32>, vector<64x128xf32> -> vector<64x128xf32>
    %22 = arith.addf %16, %21 : vector<64x128xf32>
    %23 = vector.shape_cast %22 : vector<64x128xf32> to vector<8x8x128xf32>
    %c0_23 = arith.constant 0 : index
    %c0_24 = arith.constant 0 : index
    %c0_25 = arith.constant 0 : index
    %c0_26 = arith.constant 0 : index
    %c0_27 = arith.constant 0 : index
    %24 = vector.load %arg4[%c0_23, %c0_24, %c0_25, %c0_26, %c0_27] : memref<1x8x2x8x128xf32, #tpu.memory_space<vmem>>, vector<1x8x1x8x128xf32>
    %25 = vector.shape_cast %24 : vector<1x8x1x8x128xf32> to vector<8x8x128xf32>
    %26 = vector.shape_cast %23 : vector<8x8x128xf32> to vector<1x8x1x8x128xf32>
    tpu.vector_store %arg4[%c0_23, %c0_24, %c0_25, %c0_26, %c0_27], %26 {strides = array<i32>} : memref<1x8x2x8x128xf32, #tpu.memory_space<vmem>>, vector<1x8x1x8x128xf32>,
    %c4 = arith.constant 4 : index
    %c0_28 = arith.constant 0 : index
    %c0_29 = arith.constant 0 : index
    %27 = vector.load %arg2[%c4, %c0_28, %c0_29] : memref<8x64x32xf32, #tpu.memory_space<vmem>>, vector<1x64x32xf32>
    %28 = vector.shape_cast %27 : vector<1x64x32xf32> to vector<64x32xf32>
    %c0_30 = arith.constant 0 : index
    %c0_31 = arith.constant 0 : index
    %c0_32 = arith.constant 0 : index
    %29 = vector.load %arg3[%c0_30, %c0_31, %c0_32] : memref<4x32x128xf32, #tpu.memory_space<vmem>>, vector<1x32x128xf32>
    %30 = vector.shape_cast %29 : vector<1x32x128xf32> to vector<32x128xf32>
    %cst_33 = arith.constant dense<0.000000e+00> : vector<64x128xf32>
    %31 = tpu.matmul %28, %30, %cst_33 {dimension_numbers = #tpu.dot_dimension_numbers<[1], [0], [0], [1], [0, 0, 1, 1], [], []>, precision = #tpu.contract_precision<fp32>} : vector<64x32xf32>, vector<32x128xf32>, vector<64x128xf32> -> vector<64x128xf32>
    %c5 = arith.constant 5 : index
    %c0_34 = arith.constant 0 : index
    %c0_35 = arith.constant 0 : index
    %32 = vector.load %arg2[%c5, %c0_34, %c0_35] : memref<8x64x32xf32, #tpu.memory_space<vmem>>, vector<1x64x32xf32>
    %33 = vector.shape_cast %32 : vector<1x64x32xf32> to vector<64x32xf32>
    %c1_36 = arith.constant 1 : index
    %c0_37 = arith.constant 0 : index
    %c0_38 = arith.constant 0 : index
    %34 = vector.load %arg3[%c1_36, %c0_37, %c0_38] : memref<4x32x128xf32, #tpu.memory_space<vmem>>, vector<1x32x128xf32>
    %35 = vector.shape_cast %34 : vector<1x32x128xf32> to vector<32x128xf32>
    %cst_39 = arith.constant dense<0.000000e+00> : vector<64x128xf32>
    %36 = tpu.matmul %33, %35, %cst_39 {dimension_numbers = #tpu.dot_dimension_numbers<[1], [0], [0], [1], [0, 0, 1, 1], [], []>, precision = #tpu.contract_precision<fp32>} : vector<64x32xf32>, vector<32x128xf32>, vector<64x128xf32> -> vector<64x128xf32>
    %37 = arith.addf %31, %36 : vector<64x128xf32>
    %c6 = arith.constant 6 : index
    %c0_40 = arith.constant 0 : index
    %c0_41 = arith.constant 0 : index
    %38 = vector.load %arg2[%c6, %c0_40, %c0_41] : memref<8x64x32xf32, #tpu.memory_space<vmem>>, vector<1x64x32xf32>
    %39 = vector.shape_cast %38 : vector<1x64x32xf32> to vector<64x32xf32>
    %c2_42 = arith.constant 2 : index
    %c0_43 = arith.constant 0 : index
    %c0_44 = arith.constant 0 : index
    %40 = vector.load %arg3[%c2_42, %c0_43, %c0_44] : memref<4x32x128xf32, #tpu.memory_space<vmem>>, vector<1x32x128xf32>
    %41 = vector.shape_cast %40 : vector<1x32x128xf32> to vector<32x128xf32>
    %cst_45 = arith.constant dense<0.000000e+00> : vector<64x128xf32>
    %42 = tpu.matmul %39, %41, %cst_45 {dimension_numbers = #tpu.dot_dimension_numbers<[1], [0], [0], [1], [0, 0, 1, 1], [], []>, precision = #tpu.contract_precision<fp32>} : vector<64x32xf32>, vector<32x128xf32>, vector<64x128xf32> -> vector<64x128xf32>
    %43 = arith.addf %37, %42 : vector<64x128xf32>
    %c7 = arith.constant 7 : index
    %c0_46 = arith.constant 0 : index
    %c0_47 = arith.constant 0 : index
    %44 = vector.load %arg2[%c7, %c0_46, %c0_47] : memref<8x64x32xf32, #tpu.memory_space<vmem>>, vector<1x64x32xf32>
    %45 = vector.shape_cast %44 : vector<1x64x32xf32> to vector<64x32xf32>
    %c3_48 = arith.constant 3 : index
    %c0_49 = arith.constant 0 : index
    %c0_50 = arith.constant 0 : index
    %46 = vector.load %arg3[%c3_48, %c0_49, %c0_50] : memref<4x32x128xf32, #tpu.memory_space<vmem>>, vector<1x32x128xf32>
    %47 = vector.shape_cast %46 : vector<1x32x128xf32> to vector<32x128xf32>
    %cst_51 = arith.constant dense<0.000000e+00> : vector<64x128xf32>
    %48 = tpu.matmul %45, %47, %cst_51 {dimension_numbers = #tpu.dot_dimension_numbers<[1], [0], [0], [1], [0, 0, 1, 1], [], []>, precision = #tpu.contract_precision<fp32>} : vector<64x32xf32>, vector<32x128xf32>, vector<64x128xf32> -> vector<64x128xf32>
    %49 = arith.addf %43, %48 : vector<64x128xf32>
    %50 = vector.shape_cast %49 : vector<64x128xf32> to vector<8x8x128xf32>
    %c0_52 = arith.constant 0 : index
    %c0_53 = arith.constant 0 : index
    %c1_54 = arith.constant 1 : index
    %c0_55 = arith.constant 0 : index
    %c0_56 = arith.constant 0 : index
    %51 = vector.load %arg4[%c0_52, %c0_53, %c1_54, %c0_55, %c0_56] : memref<1x8x2x8x128xf32, #tpu.memory_space<vmem>>, vector<1x8x1x8x128xf32>
    %52 = vector.shape_cast %51 : vector<1x8x1x8x128xf32> to vector<8x8x128xf32>
    %53 = vector.shape_cast %50 : vector<8x8x128xf32> to vector<1x8x1x8x128xf32>
    tpu.vector_store %arg4[%c0_52, %c0_53, %c1_54, %c0_55, %c0_56], %53 {strides = array<i32>} : memref<1x8x2x8x128xf32, #tpu.memory_space<vmem>>, vector<1x8x1x8x128xf32>,
    return
  }
  func.func @transform_0(%arg0: i32, %arg1: i32) -> (i32, i32, i32) {
    %c0_i32 = arith.constant 0 : i32
    %c0_i32_0 = arith.constant 0 : i32
    return %arg0, %arg1, %c0_i32 : i32, i32, i32
  }
  func.func @transform_1(%arg0: i32, %arg1: i32) -> (i32, i32, i32) {
    %c0_i32 = arith.constant 0 : i32
    %c0_i32_0 = arith.constant 0 : i32
    %c0_i32_1 = arith.constant 0 : i32
    %c0_i32_2 = arith.constant 0 : i32
    return %c0_i32, %c0_i32_0, %c0_i32_1 : i32, i32, i32
  }
  func.func @transform_2(%arg0: i32, %arg1: i32) -> (i32, i32, i32, i32, i32) {
    %c0_i32 = arith.constant 0 : i32
    %c0_i32_0 = arith.constant 0 : i32
    %c0_i32_1 = arith.constant 0 : i32
    %c0_i32_2 = arith.constant 0 : i32
    return %arg0, %arg1, %c0_i32, %c0_i32_0, %c0_i32_1 : i32, i32, i32, i32, i32
  }
}

</mosaic_0001>

<bundles_post_ra>
// kernel: pixel_shuffle3d.1
= control target key start
LH: loop header
LB: loop body
LE: loop exit
PB: predicated region body
PF: predicated region fallthrough
CT: control target
= control target key end

     0   :  { %s8620_s9 = smov 0   ;;  %s8622_s10 = smov 0   ;;  %s10860_s0 = inlined_call_operand.vmem [shape: f32[32,64,32], index: 0, kind: input, shape index: {}]   ;;  %s10861_s1 = inlined_call_operand.vmem [shape: f32[4,32,128], index: 1, kind: input, shape index: {}]   ;;  %s10862_s2 = inlined_call_operand.vmem [shape: f32[4,8,2,8,128], index: 2, kind: output, shape index: {}]  }
   0x1   :  { %s8624_s11 = smov 0  }
   0x2 LB: > { %s24_s12 = sadd.s32 1, %s8599_s10  ;;  %p6923_p0 = scmp.ge.s32.totalorder %s8603_s11, 1  ;;  %s8603_s11 = sphi %s8624_s11, %s12_s11   ;;  %s8599_s10 = sphi %s8622_s10, %s10900_s10   ;;  %s8595_s9 = sphi %s8620_s9, %s10899_s9  }
   0x3   : > { %p26_p1 = scmp.ge.s32.totalorder %s24_s12, 4  ;;  %p135_p2 = scmp.lt.s32.totalorder %s8603_s11, 5 }
   0x5   : > { %s10902_s12 = smov (%p26_p1, %s24_s12), 0  ;;  %p136_p3 = pnand %p6923_p0, %p135_p2 }
   0x7   : > { %139 = sbr.rel (%p136_p3) target bundleno = 613 (0x265), region = 28 }
   0xc   : > { %v6940_v0 = vld [vmem:[%s10861_s1 + $0x38] sm:$0xff]  ;;  %v6939_v1 = vld [vmem:[%s10861_s1 + $0x30] sm:$0xff]  ;;  %v6938_v2 = vld [vmem:[%s10861_s1 + $0x28] sm:$0xff]  ;;  %s6924_s19 = sshll.u32 %s8595_s9, 3  ;;  %vm216_vm0 = vcmask 261120   ;;  %p180_p5 = scmp.lt.s32.totalorder %s8595_s9, 3 }
   0xd   : > { %v8650_v3 = vand.u32 4294901760, %v6940_v0  ;;  %v8652_v4 = vand.u32 4294901760, %v6939_v1  ;;  %v8654_v5 = vand.u32 4294901760, %v6938_v2  ;;  %v6937_v6 = vld [vmem:[%s10861_s1 + $0x20] sm:$0xff]  ;;  %p169_p4 = scmp.lt.s32.totalorder %s6924_s19, 31 }
   0xe   : > { %v8659_v7 = vand.u32 4294901760, %v6937_v6  ;;  %s10906_s9 = smov (!%p180_p5, %s8595_s9), 3 }
   0xf   : > { %7597 = vmatprep.subr.mxu0 %v8650_v3  ;;  %v8663_v8 = vsub.f32 %v6940_v0, %v8650_v3  ;;  %v8666_v9 = vsub.f32 %v6939_v1, %v8652_v4  ;;  %v8669_v10 = vsub.f32 %v6938_v2, %v8654_v5  ;;  %s10904_s19 = smov (!%p169_p4, %s6924_s19), 31 }
  0x10   : > { %7598 = vmatpush3.msra.mxu0 %v8650_v3  ;;  %v8673_v11 = vsub.f32 %v6937_v6, %v8659_v7  ;;  %s7019_s22 = sshll.u32 %s10904_s19, 6 }
  0x11   : > { %v8676_v12 = vand.u32 4294901760, %v8663_v8  ;;  %7599 = vmatprep.subr.mxu0 %v8652_v4  ;;  %v8680_v13 = vand.u32 4294901760, %v8666_v9  ;;  %v8683_v14 = vand.u32 4294901760, %v8669_v10  ;;  %s8692_s25 = scalar_lea.vmem %s10860_s0, %s7019_s22 }
  0x12   : > { %7600 = vmatpush3.msra.mxu0 %v8652_v4  ;;  %v8687_v15 = vand.u32 4294901760, %v8673_v11  ;;  %v6929_v19 = vld [vmem:[%s8692_s25 + $0x40] sm:$0xff]  ;;  %v6930_v20 = vld [vmem:[%s8692_s25 + $0x48] sm:$0xff]  ;;  %v6931_v21 = vld [vmem:[%s8692_s25 + $0x50] sm:$0xff] }
  0x13   : > { %v418_v16 = vsub.f32 %v8663_v8, %v8676_v12  ;;  %v425_v17 = vsub.f32 %v8666_v9, %v8680_v13  ;;  %7601 = vmatprep.subr.mxu0 %v8654_v5  ;;  %v432_v18 = vsub.f32 %v8669_v10, %v8683_v14  ;;  %v218_v23 = vsel %vm216_vm0, %v6929_v19, 0  ;;  %v6932_v26 = vld [vmem:[%s8692_s25 + $0x58] sm:$0xff]  ;;  %v6933_v27 = vld [vmem:[%s8692_s25 + $0x60] sm:$0xff]  ;;  %v6934_v28 = vld [vmem:[%s8692_s25 + $0x68] sm:$0xff] }
  0x14   : > { %7602 = vmatpush3.msra.mxu0 %v8654_v5  ;;  %v439_v22 = vsub.f32 %v8673_v11, %v8687_v15  ;;  %v221_v24 = vsel %vm216_vm0, %v6930_v20, 0  ;;  %v224_v25 = vsel %vm216_vm0, %v6931_v21, 0  ;;  %v8714_v32 = vand.u32 4294901760, %v218_v23  ;;  %v6935_v37 = vld [vmem:[%s8692_s25 + $0x70] sm:$0xff]  ;;  %v6936_v38 = vld [vmem:[%s8692_s25 + $0x78] sm:$0xff] }
  0x15   : > { %v419_v29 = vand.u32 4294901760, %v418_v16  ;;  %v426_v30 = vand.u32 4294901760, %v425_v17  ;;  %v433_v31 = vand.u32 4294901760, %v432_v18  ;;  %7603 = vmatprep.subr.mxu0 %v8659_v7  ;;  %v8717_v34 = vand.u32 4294901760, %v221_v24 }
  0x16   : > { %7604 = vmatpush3.msra.mxu0 %v8659_v7  ;;  %v440_v33 = vand.u32 4294901760, %v439_v22  ;;  %v8719_v35 = vand.u32 4294901760, %v224_v25  ;;  %v227_v36 = vsel %vm216_vm0, %v6932_v26, 0  ;;  %v8725_v39 = vsub.f32 %v218_v23, %v8714_v32  ;;  %7625 = vmatprep.mubr.f32.mxu1 %v8714_v32 }
  0x17   : > { %7617 = vmatprep.subr.mxu1 %v419_v29  ;;  %v8728_v40 = vand.u32 4294901760, %v227_v36  ;;  %v230_v41 = vsel %vm216_vm0, %v6933_v27, 0  ;;  %v233_v42 = vsel %vm216_vm0, %v6934_v28, 0  ;;  %7637 = vmatprep.subr.mxu0 %v8663_v8  ;;  %v8734_v43 = vsub.f32 %v221_v24, %v8717_v34 }
  0x18   : > { %7618 = vmatpush3.msra.mxu1 %v419_v29  ;;  %v8737_v44 = vsub.f32 %v224_v25, %v8719_v35  ;;  %v8739_v45 = vand.u32 4294901760, %v230_v41  ;;  %v8741_v46 = vand.u32 4294901760, %v233_v42  ;;  %v312_v47 = vand.u32 4294901760, %v8725_v39  ;;  %v199_v29 = vld [vmem:[%s10861_s1 + $0x8] sm:$0xff] }
  0x19   : > { %7619 = vmatprep.subr.mxu1 %v426_v30  ;;  %v8745_v48 = vsub.f32 %v227_v36, %v8728_v40  ;;  %v236_v49 = vsel %vm216_vm0, %v6935_v37, 0  ;;  %v239_v50 = vsel %vm216_vm0, %v6936_v38, 0  ;;  %v322_v51 = vand.u32 4294901760, %v8734_v43  ;;  %v191_v36 = vld [vmem:[%s8692_s25 + $0x8] sm:$0xff] }
  0x1a   : > { %7620 = vmatpush3.msra.mxu1 %v426_v30  ;;  %v332_v52 = vand.u32 4294901760, %v8737_v44  ;;  %v8752_v53 = vsub.f32 %v230_v41, %v8739_v45  ;;  %v8755_v54 = vsub.f32 %v233_v42, %v8741_v46  ;;  %v313_v55 = vsub.f32 %v8725_v39, %v312_v47  ;;  %v192_v41 = vld [vmem:[%s8692_s25 + $0x10] sm:$0xff] }
  0x1b   : > { %7621 = vmatprep.subr.mxu1 %v433_v31  ;;  %v342_v56 = vand.u32 4294901760, %v8745_v48  ;;  %v8761_v57 = vand.u32 4294901760, %v236_v49  ;;  %v8763_v58 = vand.u32 4294901760, %v239_v50  ;;  %v323_v59 = vsub.f32 %v8734_v43, %v322_v51 }
  0x1c   : > { %7622 = vmatpush3.msra.mxu1 %v433_v31  ;;  %v333_v60 = vsub.f32 %v8737_v44, %v332_v52  ;;  %v352_v61 = vand.u32 4294901760, %v8752_v53  ;;  %v362_v62 = vand.u32 4294901760, %v8755_v54  ;;  %v314_v63 = vand.u32 4294901760, %v313_v55  ;;  %v198_v31 = vld [vmem:[%s10861_s1] sm:$0xff]  ;;  %v195_v55 = vld [vmem:[%s8692_s25 + $0x28] sm:$0xff] }
  0x1d   : > { %7623 = vmatprep.subr.mxu1 %v440_v33  ;;  %v343_v0 = vsub.f32 %v8745_v48, %v342_v56  ;;  %v8777_v1 = vsub.f32 %v236_v49, %v8761_v57  ;;  %v8780_v2 = vsub.f32 %v239_v50, %v8763_v58  ;;  %v324_v6 = vand.u32 4294901760, %v323_v59 }
  0x1e   : > { %7624 = vmatpush3.msra.mxu1 %v440_v33  ;;  %v334_v16 = vand.u32 4294901760, %v333_v60  ;;  %v353_v17 = vsub.f32 %v8752_v53, %v352_v61  ;;  %7605 = vmatprep.mubr.f32.mxu0 %v314_v63  ;;  %v363_v20 = vsub.f32 %v8755_v54, %v362_v62  ;;  %v8858_v30 = vand.u32 4294901760, %v199_v29  ;;  %v190_v33 = vld [vmem:[%s8692_s25] sm:$0xff] }
  0x1f   : > { %7626 = vmatmul.mubr.f32.vlgmr.msra.gmra.mxu1 %v8717_v34  ;;  %v372_v18 = vand.u32 4294901760, %v8777_v1  ;;  %7606 = vmatmul.mubr.f32.vlgmr.msra.gmra.mxu0 %v324_v6  ;;  %v344_v19 = vand.u32 4294901760, %v343_v0  ;;  %v382_v21 = vand.u32 4294901760, %v8780_v2  ;;  %v8873_v37 = vand.u32 4294901760, %v198_v31 }
  0x20   : > { %7657 = vmatprep.subr.mxu1 %v8650_v3  ;;  %7638 = vmatpush3.msra.mxu0 %v8663_v8  ;;  %v354_v22 = vand.u32 4294901760, %v353_v17  ;;  %v364_v24 = vand.u32 4294901760, %v363_v20  ;;  %v1028_v38 = vsel %vm216_vm0, %v190_v33, 0  ;;  %v1031_v42 = vsel %vm216_vm0, %v191_v36, 0 }
  0x21   : > { %7658 = vmatpush3.msra.mxu1 %v8650_v3  ;;  %7608 = vmatprep.mubr.f32.mxu0 %v334_v16  ;;  %v373_v23 = vsub.f32 %v8777_v1, %v372_v18  ;;  %v383_v8 = vsub.f32 %v8780_v2, %v382_v21  ;;  %v8910_v50 = vand.u32 4294901760, %v1031_v42 }
  0x22   : > { %7628 = vmatprep.mubr.f32.mxu1 %v8719_v35  ;;  %7639 = vmatprep.subr.mxu0 %v8666_v9 }
  0x23   : > { %7629 = vmatmul.mubr.f32.gmra.mxu1 %v8728_v40  ;;  %7609 = vmatmul.mubr.f32.gmra.mxu0 %v344_v19  ;;  %v374_v25 = vand.u32 4294901760, %v373_v23  ;;  %v384_v26 = vand.u32 4294901760, %v383_v8  ;;  %v8934_v59 = vsub.f32 %v1031_v42, %v8910_v50 }
  0x24   : > { %7659 = vmatprep.subr.mxu1 %v8652_v4  ;;  %7640 = vmatpush3.msra.mxu0 %v8666_v9  ;;  %v201_v9 = vld [vmem:[%s10861_s1 + $0x18] sm:$0xff] }
  0x25   : > { %7660 = vmatpush3.msra.mxu1 %v8652_v4  ;;  %7611 = vmatprep.mubr.f32.mxu0 %v354_v22  ;;  %v8819_v27 = vand.u32 4294901760, %v201_v9  ;;  %v1132_v16 = vand.u32 4294901760, %v8934_v59 }
  0x26   : > { %7631 = vmatprep.mubr.f32.mxu1 %v8739_v45  ;;  %7641 = vmatprep.subr.mxu0 %v8669_v10 }
  0x27   : > { %7632 = vmatmul.mubr.f32.gmra.mxu1 %v8741_v46  ;;  %7612 = vmatmul.mubr.f32.gmra.mxu0 %v364_v24 }
  0x28   : > { %7661 = vmatprep.subr.mxu1 %v8654_v5  ;;  %7642 = vmatpush3.msra.mxu0 %v8669_v10  ;;  %v200_v10 = vld [vmem:[%s10861_s1 + $0x10] sm:$0xff] }
  0x29   : > { %7662 = vmatpush3.msra.mxu1 %v8654_v5  ;;  %7614 = vmatprep.mubr.f32.mxu0 %v374_v25  ;;  %v8837_v28 = vand.u32 4294901760, %v200_v10 }
  0x2a   : > { %7634 = vmatprep.mubr.f32.mxu1 %v8761_v57  ;;  %7643 = vmatprep.subr.mxu0 %v8673_v11 }
  0x2b   : > { %7635 = vmatmul.mubr.f32.gmra.mxu1 %v8763_v58  ;;  %7615 = vmatmul.mubr.f32.gmra.mxu0 %v384_v26 }
  0x2c   : > { %7663 = vmatprep.subr.mxu1 %v8659_v7  ;;  %7644 = vmatpush3.msra.mxu0 %v8673_v11  ;;  %v8835_v11 = vsub.f32 %v201_v9, %v8819_v27 }
  0x2d   : > { %7664 = vmatpush3.msra.mxu1 %v8659_v7  ;;  %7645 = vmatprep.mubr.f32.mxu0 %v8725_v39  ;;  %v8884_v39 = vsub.f32 %v199_v29, %v8858_v30 }
  0x2e   : > { %7665 = vmatprep.mubr.f32.mxu1 %v312_v47  ;;  %7677 = vmatprep.subr.mxu0 %v8676_v12 }
  0x2f   : > { %7666 = vmatmul.mubr.f32.vlgmr.msra.gmra.mxu1 %v322_v51  ;;  %7646 = vmatmul.mubr.f32.vlgmr.msra.gmra.mxu0 %v8734_v43  ;;  %v8893_v43 = vand.u32 4294901760, %v1028_v38  ;;  %v8908_v49 = vand.u32 4294901760, %v8884_v39  ;;  %v194_v51 = vld [vmem:[%s8692_s25 + $0x20] sm:$0xff] }
  0x30   : > { %7697 = vmatprep.subr.mxu1 %v8650_v3  ;;  %7678 = vmatpush3.msra.mxu0 %v8676_v12  ;;  %v8856_v12 = vsub.f32 %v200_v10, %v8837_v28 }
  0x31   : > { %7698 = vmatpush3.msra.mxu1 %v8650_v3  ;;  %7648 = vmatprep.mubr.f32.mxu0 %v8737_v44  ;;  %v8853_v3 = vand.u32 4294901760, %v8835_v11  ;;  %v193_v44 = vld [vmem:[%s8692_s25 + $0x18] sm:$0xff] }
  0x32   : > { %7668 = vmatprep.mubr.f32.mxu1 %v332_v52  ;;  %7679 = vmatprep.subr.mxu0 %v8680_v13  ;;  %v1037_v52 = vsel %vm216_vm0, %v193_v44, 0 }
  0x33   : > { %7669 = vmatmul.mubr.f32.gmra.mxu1 %v342_v56  ;;  %7649 = vmatmul.mubr.f32.gmra.mxu0 %v8745_v48  ;;  %v1242_v56 = vsub.f32 %v8884_v39, %v8908_v49  ;;  %v8936_v60 = vand.u32 4294901760, %v1037_v52 }
  0x34   : > { %7699 = vmatprep.subr.mxu1 %v8652_v4  ;;  %7680 = vmatpush3.msra.mxu0 %v8680_v13  ;;  %v8881_v13 = vand.u32 4294901760, %v8856_v12 }
  0x35   : > { %7700 = vmatpush3.msra.mxu1 %v8652_v4  ;;  %7651 = vmatprep.mubr.f32.mxu0 %v8752_v53  ;;  %v1228_v4 = vsub.f32 %v8835_v11, %v8853_v3  ;;  %v8919_v53 = vsub.f32 %v1028_v38, %v8893_v43  ;;  %v8958_v17 = vsub.f32 %v1037_v52, %v8936_v60 }
  0x36   : > { %7671 = vmatprep.mubr.f32.mxu1 %v352_v61  ;;  %7681 = vmatprep.subr.mxu0 %v8683_v14  ;;  %v1235_v48 = vsub.f32 %v8856_v12, %v8881_v13  ;;  %v196_v61 = vld [vmem:[%s8692_s25 + $0x30] sm:$0xff] }
  0x37   : > { %7672 = vmatmul.mubr.f32.gmra.mxu1 %v362_v62  ;;  %7652 = vmatmul.mubr.f32.gmra.mxu0 %v8755_v54  ;;  %v1229_v47 = vand.u32 4294901760, %v1228_v4  ;;  %v1043_v62 = vsel %vm216_vm0, %v195_v55, 0  ;;  %v1046_v6 = vsel %vm216_vm0, %v196_v61, 0  ;;  %v1152_v24 = vand.u32 4294901760, %v8958_v17 }
  0x38   : > { %7701 = vmatprep.subr.mxu1 %v8654_v5  ;;  %7682 = vmatpush3.msra.mxu0 %v8683_v14  ;;  %v8900_v14 = vsub.f32 %v198_v31, %v8873_v37  ;;  %v8973_v22 = vand.u32 4294901760, %v1046_v6 }
  0x39   : > { %7702 = vmatpush3.msra.mxu1 %v8654_v5  ;;  %7654 = vmatprep.mubr.f32.mxu0 %v8777_v1  ;;  %v1034_v5 = vsel %vm216_vm0, %v192_v41, 0  ;;  %v197_v1 = vld [vmem:[%s8692_s25 + $0x38] sm:$0xff] }
  0x3a   : > { %7674 = vmatprep.mubr.f32.mxu1 %v372_v18  ;;  %7683 = vmatprep.subr.mxu0 %v8687_v15  ;;  %v8921_v54 = vand.u32 4294901760, %v1034_v5  ;;  %v8960_v18 = vand.u32 4294901760, %v1043_v62  ;;  %v1049_v19 = vsel %vm216_vm0, %v197_v1, 0  ;;  %v8995_v10 = vsub.f32 %v1046_v6, %v8973_v22  ;;  %v6944_v6 = vld [vmem:[%s8692_s25 + $0x98] sm:$0xff] }
  0x3b   : > { %7675 = vmatmul.mubr.f32.gmra.mxu1 %v382_v21  ;;  %7655 = vmatmul.mubr.f32.gmra.mxu0 %v8780_v2  ;;  %v8985_v25 = vand.u32 4294901760, %v1049_v19 }
  0x3c   : > { %7703 = vmatprep.subr.mxu1 %v8659_v7  ;;  %7684 = vmatpush3.msra.mxu0 %v8687_v15  ;;  %v8927_v15 = vand.u32 4294901760, %v8900_v14  ;;  %v8945_v63 = vsub.f32 %v1034_v5, %v8921_v54  ;;  %v8983_v8 = vsub.f32 %v1043_v62, %v8960_v18  ;;  %v1182_v38 = vand.u32 4294901760, %v8995_v10 }
  0x3d   : > { %7704 = vmatpush3.msra.mxu1 %v8659_v7  ;;  %7685 = vmatprep.mubr.f32.mxu0 %v8714_v32  ;;  %v1040_v7 = vsel %vm216_vm0, %v194_v51, 0  ;;  %v9005_v33 = vsub.f32 %v1049_v19, %v8985_v25 }
  0x3e   : > { %7705 = vmatprep.mubr.f32.mxu1 %v8714_v32  ;;  %7717 = vmatprep.subr.mxu0 %v8819_v27  ;;  %v1236_v32 = vand.u32 4294901760, %v1235_v48  ;;  %v8947_v0 = vand.u32 4294901760, %v1040_v7  ;;  %v1249_v2 = vsub.f32 %v8900_v14, %v8927_v15  ;;  %v1142_v20 = vand.u32 4294901760, %v8945_v63 }
  0x3f   : > { %7706 = vmatmul.mubr.f32.vlgmr.msra.gmra.mxu1 %v8717_v34  ;;  %7686 = vmatmul.mubr.f32.vlgmr.msra.gmra.mxu0 %v8717_v34  ;;  %v1122_v34 = vand.u32 4294901760, %v8919_v53  ;;  %v1172_v31 = vand.u32 4294901760, %v8983_v8  ;;  %v1192_v42 = vand.u32 4294901760, %v9005_v33  ;;  %v1183_v5 = vsub.f32 %v8995_v10, %v1182_v38 }
  0x40   : > { %7737 = vmatprep.subr.mxu1 %v1229_v47  ;;  %7718 = vmatpush3.msra.mxu0 %v8819_v27  ;;  %v8971_v21 = vsub.f32 %v1040_v7, %v8947_v0  ;;  %v1250_v23 = vand.u32 4294901760, %v1249_v2  ;;  %v1143_v26 = vsub.f32 %v8945_v63, %v1142_v20 }
  0x41   : > { %7738 = vmatpush3.msra.mxu1 %v1229_v47  ;;  %7688 = vmatprep.mubr.f32.mxu0 %v8719_v35  ;;  %v1173_v41 = vsub.f32 %v8983_v8, %v1172_v31  ;;  %v1184_v48 = vand.u32 4294901760, %v1183_v5 }
  0x42   : > { %7708 = vmatprep.mubr.f32.mxu1 %v8719_v35  ;;  %7719 = vmatprep.subr.mxu0 %v8837_v28  ;;  %v1243_v35 = vand.u32 4294901760, %v1242_v56  ;;  %v1162_v9 = vand.u32 4294901760, %v8971_v21  ;;  %v1144_v36 = vand.u32 4294901760, %v1143_v26  ;;  %v6941_v56 = vld [vmem:[%s8692_s25 + $0x80] sm:$0xff]  ;;  %v6947_v26 = vld [vmem:[%s8692_s25 + $0xb0] sm:$0xff] }
  0x43   : > { %7709 = vmatmul.mubr.f32.gmra.mxu1 %v8728_v40  ;;  %7689 = vmatmul.mubr.f32.gmra.mxu0 %v8728_v40  ;;  %v1123_v40 = vsub.f32 %v8919_v53, %v1122_v34  ;;  %v1174_v47 = vand.u32 4294901760, %v1173_v41  ;;  %v1852_v62 = vsel %vm216_vm0, %v6941_v56, 0 }
  0x44   : > { %7739 = vmatprep.subr.mxu1 %v1236_v32  ;;  %7720 = vmatpush3.msra.mxu0 %v8837_v28  ;;  %v9121_v2 = vand.u32 4294901760, %v1852_v62 }
  0x45   : > { %7740 = vmatpush3.msra.mxu1 %v1236_v32  ;;  %7691 = vmatprep.mubr.f32.mxu0 %v8739_v45  ;;  %v6949_v32 = vld [vmem:[%s10861_s1 + $0x40] sm:$0xff] }
  0x46   : > { %7711 = vmatprep.mubr.f32.mxu1 %v8739_v45  ;;  %7721 = vmatprep.subr.mxu0 %v8858_v30  ;;  %v1133_v45 = vsub.f32 %v8934_v59, %v1132_v16  ;;  %v9101_v61 = vand.u32 4294901760, %v6949_v32 }
  0x47   : > { %7712 = vmatmul.mubr.f32.gmra.mxu1 %v8741_v46  ;;  %7692 = vmatmul.mubr.f32.gmra.mxu0 %v8741_v46  ;;  %v1124_v46 = vand.u32 4294901760, %v1123_v40  ;;  %v6945_v40 = vld [vmem:[%s8692_s25 + $0xa0] sm:$0xff] }
  0x48   : > { %7741 = vmatprep.subr.mxu1 %v1243_v35  ;;  %7722 = vmatpush3.msra.mxu0 %v8858_v30  ;;  %v1134_v29 = vand.u32 4294901760, %v1133_v45  ;;  %v6946_v45 = vld [vmem:[%s8692_s25 + $0xa8] sm:$0xff] }
  0x49   : > { %7742 = vmatpush3.msra.mxu1 %v1243_v35  ;;  %7694 = vmatprep.mubr.f32.mxu0 %v8761_v57 }
  0x4a   : > { %7714 = vmatprep.mubr.f32.mxu1 %v8761_v57  ;;  %7723 = vmatprep.subr.mxu0 %v8873_v37  ;;  %v1153_v57 = vsub.f32 %v8958_v17, %v1152_v24 }
  0x4b   : > { %7715 = vmatmul.mubr.f32.gmra.mxu1 %v8763_v58  ;;  %7695 = vmatmul.mubr.f32.gmra.mxu0 %v8763_v58  ;;  %v1163_v58 = vsub.f32 %v8971_v21, %v1162_v9 }
  0x4c   : > { %7743 = vmatprep.subr.mxu1 %v1250_v23  ;;  %7724 = vmatpush3.msra.mxu0 %v8873_v37  ;;  %v1154_v4 = vand.u32 4294901760, %v1153_v57  ;;  %v6948_v57 = vld [vmem:[%s8692_s25 + $0xb8] sm:$0xff] }
  0x4d   : > { %7744 = vmatpush3.msra.mxu1 %v1250_v23  ;;  %7725 = vmatprep.mubr.f32.mxu0 %v1124_v46  ;;  %v1164_v44 = vand.u32 4294901760, %v1163_v58 }
  0x4e   : > { %7745 = vmatprep.mubr.f32.mxu1 %v8893_v43  ;;  %7757 = vmatprep.subr.mxu0 %v8835_v11 }
  0x4f   : > { %7746 = vmatmul.mubr.f32.vlgmr.msra.gmra.mxu1 %v8910_v50  ;;  %7726 = vmatmul.mubr.f32.vlgmr.msra.gmra.mxu0 %v1134_v29 }
  0x50   : > { %7777 = vmatprep.subr.mxu1 %v8819_v27  ;;  %7758 = vmatpush3.msra.mxu0 %v8835_v11  ;;  %v1193_v11 = vsub.f32 %v9005_v33, %v1192_v42 }
  0x51   : > { %7778 = vmatpush3.msra.mxu1 %v8819_v27  ;;  %7728 = vmatprep.mubr.f32.mxu0 %v1144_v36 }
  0x52   : > { %7748 = vmatprep.mubr.f32.mxu1 %v8921_v54  ;;  %7759 = vmatprep.subr.mxu0 %v8856_v12  ;;  %v1194_v51 = vand.u32 4294901760, %v1193_v11 }
  0x53   : > { %7749 = vmatmul.mubr.f32.gmra.mxu1 %v8936_v60  ;;  %7729 = vmatmul.mubr.f32.gmra.mxu0 %v1154_v4  ;;  %v1873_v4 = vsel %vm216_vm0, %v6948_v57, 0 }
  0x54   : > { %7779 = vmatprep.subr.mxu1 %v8837_v28  ;;  %7760 = vmatpush3.msra.mxu0 %v8856_v12  ;;  %v6952_v12 = vld [vmem:[%s10861_s1 + $0x58] sm:$0xff] }
  0x55   : > { %7780 = vmatpush3.msra.mxu1 %v8837_v28  ;;  %7731 = vmatprep.mubr.f32.mxu0 %v1164_v44  ;;  %v9047_v52 = vand.u32 4294901760, %v6952_v12 }
  0x56   : > { %7751 = vmatprep.mubr.f32.mxu1 %v8947_v0  ;;  %7761 = vmatprep.subr.mxu0 %v8884_v39 }
  0x57   : > { %7752 = vmatmul.mubr.f32.gmra.mxu1 %v8960_v18  ;;  %7732 = vmatmul.mubr.f32.gmra.mxu0 %v1174_v47 }
  0x58   : > { %7781 = vmatprep.subr.mxu1 %v8858_v30  ;;  %7762 = vmatpush3.msra.mxu0 %v8884_v39  ;;  %v6951_v39 = vld [vmem:[%s10861_s1 + $0x50] sm:$0xff] }
  0x59   : > { %7782 = vmatpush3.msra.mxu1 %v8858_v30  ;;  %7734 = vmatprep.mubr.f32.mxu0 %v1184_v48  ;;  %v9065_v55 = vand.u32 4294901760, %v6951_v39  ;;  %v9213_v48 = vand.u32 4294901760, %v1873_v4 }
  0x5a   : > { %7754 = vmatprep.mubr.f32.mxu1 %v8973_v22  ;;  %7763 = vmatprep.subr.mxu0 %v8900_v14 }
  0x5b   : > { %7755 = vmatmul.mubr.f32.gmra.mxu1 %v8985_v25  ;;  %7735 = vmatmul.mubr.f32.gmra.mxu0 %v1194_v51  ;;  %v9233_v56 = vsub.f32 %v1873_v4, %v9213_v48 }
  0x5c   : > { %7783 = vmatprep.subr.mxu1 %v8873_v37  ;;  %7764 = vmatpush3.msra.mxu0 %v8900_v14  ;;  %v9063_v14 = vsub.f32 %v6952_v12, %v9047_v52 }
  0x5d   : > { %7784 = vmatpush3.msra.mxu1 %v8873_v37  ;;  %7765 = vmatprep.mubr.f32.mxu0 %v8919_v53  ;;  %v6950_v53 = vld [vmem:[%s10861_s1 + $0x48] sm:$0xff] }
  0x5e   : > { %7785 = vmatprep.mubr.f32.mxu1 %v1122_v34  ;;  %7797 = vmatprep.subr.mxu0 %v8853_v3  ;;  %v9086_v7 = vand.u32 4294901760, %v6950_v53 }
  0x5f   : > { %7786 = vmatmul.mubr.f32.vlgmr.msra.gmra.mxu1 %v1132_v16  ;;  %7766 = vmatmul.mubr.f32.vlgmr.msra.gmra.mxu0 %v8934_v59  ;;  %v6942_v59 = vld [vmem:[%s8692_s25 + $0x88] sm:$0xff] }
  0x60   : > { %7817 = vmatprep.subr.mxu1 %v8819_v27  ;;  %7798 = vmatpush3.msra.mxu0 %v8853_v3  ;;  %v9084_v3 = vsub.f32 %v6951_v39, %v9065_v55  ;;  %v9112_v34 = vsub.f32 %v6950_v53, %v9086_v7  ;;  %v1855_v1 = vsel %vm216_vm0, %v6942_v59, 0 }
  0x61   : > { %7818 = vmatpush3.msra.mxu1 %v8819_v27  ;;  %7768 = vmatprep.mubr.f32.mxu0 %v8945_v63  ;;  %v9081_v27 = vand.u32 4294901760, %v9063_v14  ;;  %v6943_v63 = vld [vmem:[%s8692_s25 + $0x90] sm:$0xff]  ;;  %v9138_v19 = vand.u32 4294901760, %v1855_v1 }
  0x62   : > { %7788 = vmatprep.mubr.f32.mxu1 %v1142_v20  ;;  %7799 = vmatprep.subr.mxu0 %v8881_v13  ;;  %v1861_v20 = vsel %vm216_vm0, %v6944_v6, 0 }
  0x63   : > { %7789 = vmatmul.mubr.f32.gmra.mxu1 %v1152_v24  ;;  %7769 = vmatmul.mubr.f32.gmra.mxu0 %v8958_v17  ;;  %v9136_v17 = vand.u32 4294901760, %v9112_v34  ;;  %v9164_v46 = vand.u32 4294901760, %v1861_v20 }
  0x64   : > { %7819 = vmatprep.subr.mxu1 %v8837_v28  ;;  %7800 = vmatpush3.msra.mxu0 %v8881_v13  ;;  %v9109_v13 = vand.u32 4294901760, %v9084_v3 }
  0x65   : > { %7820 = vmatpush3.msra.mxu1 %v8837_v28  ;;  %7771 = vmatprep.mubr.f32.mxu0 %v8971_v21  ;;  %v2052_v28 = vsub.f32 %v9063_v14, %v9081_v27  ;;  %v9147_v21 = vsub.f32 %v1852_v62, %v9121_v2  ;;  %v2066_v24 = vsub.f32 %v9112_v34, %v9136_v17 }
  0x66   : > { %7791 = vmatprep.mubr.f32.mxu1 %v1162_v9  ;;  %7801 = vmatprep.subr.mxu0 %v8908_v49  ;;  %v2059_v16 = vsub.f32 %v9084_v3, %v9109_v13  ;;  %v1867_v9 = vsel %vm216_vm0, %v6946_v45, 0  ;;  %v9186_v58 = vsub.f32 %v1861_v20, %v9164_v46 }
  0x67   : > { %7792 = vmatmul.mubr.f32.gmra.mxu1 %v1172_v31  ;;  %7772 = vmatmul.mubr.f32.gmra.mxu0 %v8983_v8  ;;  %v2053_v35 = vand.u32 4294901760, %v2052_v28  ;;  %v9162_v8 = vsub.f32 %v1855_v1, %v9138_v19  ;;  %v2016_v1 = vand.u32 4294901760, %v9233_v56 }
  0x68   : > { %7821 = vmatprep.subr.mxu1 %v8858_v30  ;;  %7802 = vmatpush3.msra.mxu0 %v8908_v49  ;;  %v9128_v49 = vsub.f32 %v6949_v32, %v9101_v61  ;;  %v1976_v47 = vand.u32 4294901760, %v9186_v58 }
  0x69   : > { %7822 = vmatpush3.msra.mxu1 %v8858_v30  ;;  %7774 = vmatprep.mubr.f32.mxu0 %v8995_v10  ;;  %v1858_v30 = vsel %vm216_vm0, %v6943_v63, 0  ;;  %v1956_v36 = vand.u32 4294901760, %v9162_v8 }
  0x6a   : > { %7794 = vmatprep.mubr.f32.mxu1 %v1182_v38  ;;  %7803 = vmatprep.subr.mxu0 %v8927_v15  ;;  %v9149_v23 = vand.u32 4294901760, %v1858_v30  ;;  %v9188_v38 = vand.u32 4294901760, %v1867_v9 }
  0x6b   : > { %7795 = vmatmul.mubr.f32.gmra.mxu1 %v1192_v42  ;;  %7775 = vmatmul.mubr.f32.gmra.mxu0 %v9005_v33  ;;  %v1870_v33 = vsel %vm216_vm0, %v6947_v26, 0 }
  0x6c   : > { %7823 = vmatprep.subr.mxu1 %v8873_v37  ;;  %7804 = vmatpush3.msra.mxu0 %v8927_v15  ;;  %v9155_v15 = vand.u32 4294901760, %v9128_v49  ;;  %v9173_v10 = vsub.f32 %v1858_v30, %v9149_v23  ;;  %v9201_v44 = vand.u32 4294901760, %v1870_v33  ;;  %v9211_v11 = vsub.f32 %v1867_v9, %v9188_v38 }
  0x6d   : > { %7824 = vmatpush3.msra.mxu1 %v8873_v37  ;;  %7805 = vmatprep.mubr.f32.mxu0 %v8893_v43  ;;  %v1864_v37 = vsel %vm216_vm0, %v6945_v40, 0 }
  0x6e   : > { %7825 = vmatprep.mubr.f32.mxu1 %v8893_v43  ;;  %7837 = vmatprep.subr.mxu0 %v9047_v52  ;;  %v2060_v43 = vand.u32 4294901760, %v2059_v16  ;;  %v9175_v29 = vand.u32 4294901760, %v1864_v37  ;;  %v2073_v31 = vsub.f32 %v9128_v49, %v9155_v15  ;;  %v1966_v41 = vand.u32 4294901760, %v9173_v10 }
  0x6f   : > { %7826 = vmatmul.mubr.f32.vlgmr.msra.gmra.mxu1 %v8910_v50  ;;  %7806 = vmatmul.mubr.f32.vlgmr.msra.gmra.mxu0 %v8910_v50  ;;  %v1946_v50 = vand.u32 4294901760, %v9147_v21  ;;  %v9223_v39 = vsub.f32 %v1870_v33, %v9201_v44  ;;  %v1996_v32 = vand.u32 4294901760, %v9211_v11  ;;  %v6956_v33 = vld [vmem:[%s8692_s25 + $0xd8] sm:$0xff] }
  0x70   : > { %7857 = vmatprep.subr.mxu1 %v2053_v35  ;;  %7838 = vmatpush3.msra.mxu0 %v9047_v52  ;;  %v9199_v42 = vsub.f32 %v1864_v37, %v9175_v29  ;;  %v2074_v5 = vand.u32 4294901760, %v2073_v31  ;;  %v1967_v51 = vsub.f32 %v9173_v10, %v1966_v41 }
  0x71   : > { %7858 = vmatpush3.msra.mxu1 %v2053_v35  ;;  %7808 = vmatprep.mubr.f32.mxu0 %v8921_v54  ;;  %v2006_v62 = vand.u32 4294901760, %v9223_v39  ;;  %v1997_v63 = vsub.f32 %v9211_v11, %v1996_v32 }
  0x72   : > { %7828 = vmatprep.mubr.f32.mxu1 %v8921_v54  ;;  %7839 = vmatprep.subr.mxu0 %v9065_v55  ;;  %v2067_v54 = vand.u32 4294901760, %v2066_v24  ;;  %v1986_v12 = vand.u32 4294901760, %v9199_v42  ;;  %v1968_v59 = vand.u32 4294901760, %v1967_v51  ;;  %v6953_v24 = vld [vmem:[%s8692_s25 + $0xc0] sm:$0xff]  ;;  %v6959_v51 = vld [vmem:[%s8692_s25 + $0xf0] sm:$0xff] }
  0x73   : > { %7829 = vmatmul.mubr.f32.gmra.mxu1 %v8936_v60  ;;  %7809 = vmatmul.mubr.f32.gmra.mxu0 %v8936_v60  ;;  %v1947_v60 = vsub.f32 %v9147_v21, %v1946_v50  ;;  %v2007_v30 = vsub.f32 %v9223_v39, %v2006_v62  ;;  %v1998_v35 = vand.u32 4294901760, %v1997_v63  ;;  %v2684_v9 = vsel %vm216_vm0, %v6953_v24, 0 }
  0x74   : > { %7859 = vmatprep.subr.mxu1 %v2060_v43  ;;  %7840 = vmatpush3.msra.mxu0 %v9065_v55  ;;  %v9349_v31 = vand.u32 4294901760, %v2684_v9 }
  0x75   : > { %7860 = vmatpush3.msra.mxu1 %v2060_v43  ;;  %7811 = vmatprep.mubr.f32.mxu0 %v8947_v0  ;;  %v2008_v16 = vand.u32 4294901760, %v2007_v30  ;;  %v6961_v43 = vld [vmem:[%s10861_s1 + $0x60] sm:$0xff] }
  0x76   : > { %7831 = vmatprep.mubr.f32.mxu1 %v8947_v0  ;;  %7841 = vmatprep.subr.mxu0 %v9086_v7  ;;  %v1957_v0 = vsub.f32 %v9162_v8, %v1956_v36  ;;  %v9329_v26 = vand.u32 4294901760, %v6961_v43 }
  0x77   : > { %7832 = vmatmul.mubr.f32.gmra.mxu1 %v8960_v18  ;;  %7812 = vmatmul.mubr.f32.gmra.mxu0 %v8960_v18  ;;  %v1948_v18 = vand.u32 4294901760, %v1947_v60  ;;  %v6957_v60 = vld [vmem:[%s8692_s25 + $0xe0] sm:$0xff] }
  0x78   : > { %7861 = vmatprep.subr.mxu1 %v2067_v54  ;;  %7842 = vmatpush3.msra.mxu0 %v9086_v7  ;;  %v1958_v53 = vand.u32 4294901760, %v1957_v0  ;;  %v6958_v0 = vld [vmem:[%s8692_s25 + $0xe8] sm:$0xff] }
  0x79   : > { %7862 = vmatpush3.msra.mxu1 %v2067_v54  ;;  %7814 = vmatprep.mubr.f32.mxu0 %v8973_v22 }
  0x7a   : > { %7834 = vmatprep.mubr.f32.mxu1 %v8973_v22  ;;  %7843 = vmatprep.subr.mxu0 %v9101_v61  ;;  %v1977_v22 = vsub.f32 %v9186_v58, %v1976_v47 }
  0x7b   : > { %7835 = vmatmul.mubr.f32.gmra.mxu1 %v8985_v25  ;;  %7815 = vmatmul.mubr.f32.gmra.mxu0 %v8985_v25  ;;  %v1987_v25 = vsub.f32 %v9199_v42, %v1986_v12 }
  0x7c   : > { %7863 = vmatprep.subr.mxu1 %v2074_v5  ;;  %7844 = vmatpush3.msra.mxu0 %v9101_v61  ;;  %v1978_v28 = vand.u32 4294901760, %v1977_v22  ;;  %v6960_v22 = vld [vmem:[%s8692_s25 + $0xf8] sm:$0xff] }
  0x7d   : > { %7864 = vmatpush3.msra.mxu1 %v2074_v5  ;;  %7845 = vmatprep.mubr.f32.mxu0 %v1948_v18  ;;  %v1988_v6 = vand.u32 4294901760, %v1987_v25 }
  0x7e   : > { %7865 = vmatprep.mubr.f32.mxu1 %v9121_v2  ;;  %7877 = vmatprep.subr.mxu0 %v9063_v14 }
  0x7f   : > { %7866 = vmatmul.mubr.f32.vlgmr.msra.gmra.mxu1 %v9138_v19  ;;  %7846 = vmatmul.mubr.f32.vlgmr.msra.gmra.mxu0 %v1958_v53 }
  0x80   : > { %7897 = vmatprep.subr.mxu1 %v9047_v52  ;;  %7878 = vmatpush3.msra.mxu0 %v9063_v14  ;;  %v2017_v14 = vsub.f32 %v9233_v56, %v2016_v1 }
  0x81   : > { %7898 = vmatpush3.msra.mxu1 %v9047_v52  ;;  %7848 = vmatprep.mubr.f32.mxu0 %v1968_v59 }
  0x82   : > { %7868 = vmatprep.mubr.f32.mxu1 %v9149_v23  ;;  %7879 = vmatprep.subr.mxu0 %v9084_v3  ;;  %v2018_v40 = vand.u32 4294901760, %v2017_v14 }
  0x83   : > { %7869 = vmatmul.mubr.f32.gmra.mxu1 %v9164_v46  ;;  %7849 = vmatmul.mubr.f32.gmra.mxu0 %v1978_v28  ;;  %v2705_v28 = vsel %vm216_vm0, %v6960_v22, 0  ;;  %v6975_v22 = vld [vmem:[%s8692_s25 + $0x150] sm:$0xff] }
  0x84   : > { %7899 = vmatprep.subr.mxu1 %v9065_v55  ;;  %7880 = vmatpush3.msra.mxu0 %v9084_v3  ;;  %v6964_v3 = vld [vmem:[%s10861_s1 + $0x78] sm:$0xff] }
  0x85   : > { %7900 = vmatpush3.msra.mxu1 %v9065_v55  ;;  %7851 = vmatprep.mubr.f32.mxu0 %v1988_v6  ;;  %v9275_v20 = vand.u32 4294901760, %v6964_v3 }
  0x86   : > { %7871 = vmatprep.mubr.f32.mxu1 %v9175_v29  ;;  %7881 = vmatprep.subr.mxu0 %v9112_v34 }
  0x87   : > { %7872 = vmatmul.mubr.f32.gmra.mxu1 %v9188_v38  ;;  %7852 = vmatmul.mubr.f32.gmra.mxu0 %v1998_v35 }
  0x88   : > { %7901 = vmatprep.subr.mxu1 %v9086_v7  ;;  %7882 = vmatpush3.msra.mxu0 %v9112_v34  ;;  %v6963_v34 = vld [vmem:[%s10861_s1 + $0x70] sm:$0xff] }
  0x89   : > { %7902 = vmatpush3.msra.mxu1 %v9086_v7  ;;  %7854 = vmatprep.mubr.f32.mxu0 %v2008_v16  ;;  %v9293_v45 = vand.u32 4294901760, %v6963_v34  ;;  %v9441_v16 = vand.u32 4294901760, %v2705_v28 }
  0x8a   : > { %7874 = vmatprep.mubr.f32.mxu1 %v9201_v44  ;;  %7883 = vmatprep.subr.mxu0 %v9128_v49 }
  0x8b   : > { %7875 = vmatmul.mubr.f32.gmra.mxu1 %v9213_v48  ;;  %7855 = vmatmul.mubr.f32.gmra.mxu0 %v2018_v40  ;;  %v9461_v24 = vsub.f32 %v2705_v28, %v9441_v16 }
  0x8c   : > { %7903 = vmatprep.subr.mxu1 %v9101_v61  ;;  %7884 = vmatpush3.msra.mxu0 %v9128_v49  ;;  %v9291_v49 = vsub.f32 %v6964_v3, %v9275_v20 }
  0x8d   : > { %7904 = vmatpush3.msra.mxu1 %v9101_v61  ;;  %7885 = vmatprep.mubr.f32.mxu0 %v9147_v21  ;;  %v6962_v21 = vld [vmem:[%s10861_s1 + $0x68] sm:$0xff] }
  0x8e   : > { %7905 = vmatprep.mubr.f32.mxu1 %v1946_v50  ;;  %7917 = vmatprep.subr.mxu0 %v9081_v27  ;;  %v9314_v37 = vand.u32 4294901760, %v6962_v21 }
  0x8f   : > { %7906 = vmatmul.mubr.f32.vlgmr.msra.gmra.mxu1 %v1956_v36  ;;  %7886 = vmatmul.mubr.f32.vlgmr.msra.gmra.mxu0 %v9162_v8  ;;  %v6954_v8 = vld [vmem:[%s8692_s25 + $0xc8] sm:$0xff] }
  0x90   : > { %7937 = vmatprep.subr.mxu1 %v9047_v52  ;;  %7918 = vmatpush3.msra.mxu0 %v9081_v27  ;;  %v9312_v27 = vsub.f32 %v6963_v34, %v9293_v45  ;;  %v9340_v50 = vsub.f32 %v6962_v21, %v9314_v37  ;;  %v2687_v57 = vsel %vm216_vm0, %v6954_v8, 0 }
  0x91   : > { %7938 = vmatpush3.msra.mxu1 %v9047_v52  ;;  %7888 = vmatprep.mubr.f32.mxu0 %v9173_v10  ;;  %v9309_v52 = vand.u32 4294901760, %v9291_v49  ;;  %v6955_v10 = vld [vmem:[%s8692_s25 + $0xd0] sm:$0xff]  ;;  %v9366_v4 = vand.u32 4294901760, %v2687_v57 }
  0x92   : > { %7908 = vmatprep.mubr.f32.mxu1 %v1966_v41  ;;  %7919 = vmatprep.subr.mxu0 %v9109_v13  ;;  %v2693_v41 = vsel %vm216_vm0, %v6956_v33, 0 }
  0x93   : > { %7909 = vmatmul.mubr.f32.gmra.mxu1 %v1976_v47  ;;  %7889 = vmatmul.mubr.f32.gmra.mxu0 %v9186_v58  ;;  %v9364_v58 = vand.u32 4294901760, %v9340_v50  ;;  %v9392_v18 = vand.u32 4294901760, %v2693_v41 }
  0x94   : > { %7939 = vmatprep.subr.mxu1 %v9065_v55  ;;  %7920 = vmatpush3.msra.mxu0 %v9109_v13  ;;  %v9337_v13 = vand.u32 4294901760, %v9312_v27 }
  0x95   : > { %7940 = vmatpush3.msra.mxu1 %v9065_v55  ;;  %7891 = vmatprep.mubr.f32.mxu0 %v9199_v42  ;;  %v2884_v55 = vsub.f32 %v9291_v49, %v9309_v52  ;;  %v9375_v42 = vsub.f32 %v2684_v9, %v9349_v31  ;;  %v2898_v47 = vsub.f32 %v9340_v50, %v9364_v58 }
  0x96   : > { %7911 = vmatprep.mubr.f32.mxu1 %v1986_v12  ;;  %7921 = vmatprep.subr.mxu0 %v9136_v17  ;;  %v2891_v36 = vsub.f32 %v9312_v27, %v9337_v13  ;;  %v2699_v12 = vsel %vm216_vm0, %v6958_v0, 0  ;;  %v9414_v25 = vsub.f32 %v2693_v41, %v9392_v18  ;;  %v6984_v41 = vld [vmem:[%s10861_s1 + $0x38] sm:$0xff] }
  0x97   : > { %7912 = vmatmul.mubr.f32.gmra.mxu1 %v1996_v32  ;;  %7892 = vmatmul.mubr.f32.gmra.mxu0 %v9211_v11  ;;  %v2885_v54 = vand.u32 4294901760, %v2884_v55  ;;  %v9390_v11 = vsub.f32 %v2687_v57, %v9366_v4  ;;  %v2848_v57 = vand.u32 4294901760, %v9461_v24 }
  0x98   : > { %7941 = vmatprep.subr.mxu1 %v9086_v7  ;;  %7922 = vmatpush3.msra.mxu0 %v9136_v17  ;;  %v9356_v17 = vsub.f32 %v6961_v43, %v9329_v26  ;;  %v2808_v35 = vand.u32 4294901760, %v9414_v25 }
  0x99   : > { %7942 = vmatpush3.msra.mxu1 %v9086_v7  ;;  %7894 = vmatprep.mubr.f32.mxu0 %v9223_v39  ;;  %v2690_v7 = vsel %vm216_vm0, %v6955_v10, 0  ;;  %v2788_v59 = vand.u32 4294901760, %v9390_v11 }
  0x9a   : > { %7914 = vmatprep.mubr.f32.mxu1 %v2006_v62  ;;  %7923 = vmatprep.subr.mxu0 %v9155_v15  ;;  %v9377_v5 = vand.u32 4294901760, %v2690_v7  ;;  %v9416_v62 = vand.u32 4294901760, %v2699_v12 }
  0x9b   : > { %7915 = vmatmul.mubr.f32.gmra.mxu1 %v2016_v1  ;;  %7895 = vmatmul.mubr.f32.gmra.mxu0 %v9233_v56  ;;  %v2702_v56 = vsel %vm216_vm0, %v6959_v51, 0 }
  0x9c   : > { %7943 = vmatprep.subr.mxu1 %v9101_v61  ;;  %7924 = vmatpush3.msra.mxu0 %v9155_v15  ;;  %v9383_v15 = vand.u32 4294901760, %v9356_v17  ;;  %v9401_v39 = vsub.f32 %v2690_v7, %v9377_v5  ;;  %v9429_v6 = vand.u32 4294901760, %v2702_v56  ;;  %v9439_v14 = vsub.f32 %v2699_v12, %v9416_v62 }
  0x9d   : > { %7944 = vmatpush3.msra.mxu1 %v9101_v61  ;;  %7925 = vmatprep.mubr.f32.mxu0 %v9121_v2  ;;  %v2696_v61 = vsel %vm216_vm0, %v6957_v60, 0 }
  0x9e   : > { %7945 = vmatprep.mubr.f32.mxu1 %v9121_v2  ;;  %7957 = vmatprep.subr.mxu0 %v9275_v20  ;;  %v2892_v2 = vand.u32 4294901760, %v2891_v36  ;;  %v9403_v53 = vand.u32 4294901760, %v2696_v61  ;;  %v2905_v32 = vsub.f32 %v9356_v17, %v9383_v15  ;;  %v2798_v63 = vand.u32 4294901760, %v9401_v39 }
  0x9f   : > { %7946 = vmatmul.mubr.f32.vlgmr.msra.gmra.mxu1 %v9138_v19  ;;  %7926 = vmatmul.mubr.f32.vlgmr.msra.gmra.mxu0 %v9138_v19  ;;  %v2778_v19 = vand.u32 4294901760, %v9375_v42  ;;  %v9451_v34 = vsub.f32 %v2702_v56, %v9429_v6  ;;  %v2828_v43 = vand.u32 4294901760, %v9439_v14  ;;  %v6976_v56 = vld [vmem:[%s8692_s25 + $0x158] sm:$0xff] }
  0xa0   : > { %7977 = vmatprep.subr.mxu1 %v2885_v54  ;;  %7958 = vmatpush3.msra.mxu0 %v9275_v20  ;;  %v9427_v1 = vsub.f32 %v2696_v61, %v9403_v53  ;;  %v2906_v30 = vand.u32 4294901760, %v2905_v32  ;;  %v2799_v40 = vsub.f32 %v9401_v39, %v2798_v63 }
  0xa1   : > { %7978 = vmatpush3.msra.mxu1 %v2885_v54  ;;  %7928 = vmatprep.mubr.f32.mxu0 %v9149_v23  ;;  %v2838_v9 = vand.u32 4294901760, %v9451_v34  ;;  %v2829_v10 = vsub.f32 %v9439_v14, %v2828_v43 }
  0xa2   : > { %7948 = vmatprep.mubr.f32.mxu1 %v9149_v23  ;;  %7959 = vmatprep.subr.mxu0 %v9293_v45  ;;  %v2899_v23 = vand.u32 4294901760, %v2898_v47  ;;  %v2818_v3 = vand.u32 4294901760, %v9427_v1  ;;  %v2800_v8 = vand.u32 4294901760, %v2799_v40  ;;  %v6981_v47 = vld [vmem:[%s10861_s1 + $0x20] sm:$0xff]  ;;  %v6979_v40 = vld [vmem:[%s8692_s25 + $0x170] sm:$0xff] }
  0xa3   : > { %7949 = vmatmul.mubr.f32.gmra.mxu1 %v9164_v46  ;;  %7929 = vmatmul.mubr.f32.gmra.mxu0 %v9164_v46  ;;  %v2779_v46 = vsub.f32 %v9375_v42, %v2778_v19  ;;  %v2839_v7 = vsub.f32 %v9451_v34, %v2838_v9  ;;  %v2830_v54 = vand.u32 4294901760, %v2829_v10 }
  0xa4   : > { %7979 = vmatprep.subr.mxu1 %v2892_v2  ;;  %7960 = vmatpush3.msra.mxu0 %v9293_v45 }
  0xa5   : > { %7980 = vmatpush3.msra.mxu1 %v2892_v2  ;;  %7931 = vmatprep.mubr.f32.mxu0 %v9175_v29  ;;  %v2840_v36 = vand.u32 4294901760, %v2839_v7  ;;  %v6973_v2 = vld [vmem:[%s8692_s25 + $0x140] sm:$0xff] }
  0xa6   : > { %7951 = vmatprep.mubr.f32.mxu1 %v9175_v29  ;;  %7961 = vmatprep.subr.mxu0 %v9314_v37  ;;  %v2789_v29 = vsub.f32 %v9390_v11, %v2788_v59 }
  0xa7   : > { %7952 = vmatmul.mubr.f32.gmra.mxu1 %v9188_v38  ;;  %7932 = vmatmul.mubr.f32.gmra.mxu0 %v9188_v38  ;;  %v2780_v38 = vand.u32 4294901760, %v2779_v46  ;;  %v6977_v46 = vld [vmem:[%s8692_s25 + $0x160] sm:$0xff] }
  0xa8   : > { %7981 = vmatprep.subr.mxu1 %v2899_v23  ;;  %7962 = vmatpush3.msra.mxu0 %v9314_v37  ;;  %v2790_v21 = vand.u32 4294901760, %v2789_v29  ;;  %v6978_v29 = vld [vmem:[%s8692_s25 + $0x168] sm:$0xff] }
  0xa9   : > { %7982 = vmatpush3.msra.mxu1 %v2899_v23  ;;  %7934 = vmatprep.mubr.f32.mxu0 %v9201_v44 }
  0xaa   : > { %7954 = vmatprep.mubr.f32.mxu1 %v9201_v44  ;;  %7963 = vmatprep.subr.mxu0 %v9329_v26  ;;  %v2809_v44 = vsub.f32 %v9414_v25, %v2808_v35 }
  0xab   : > { %7955 = vmatmul.mubr.f32.gmra.mxu1 %v9213_v48  ;;  %7935 = vmatmul.mubr.f32.gmra.mxu0 %v9213_v48  ;;  %v2819_v48 = vsub.f32 %v9427_v1, %v2818_v3 }
  0xac   : > { %7983 = vmatprep.subr.mxu1 %v2906_v30  ;;  %7964 = vmatpush3.msra.mxu0 %v9329_v26  ;;  %v2810_v55 = vand.u32 4294901760, %v2809_v44  ;;  %v6980_v44 = vld [vmem:[%s8692_s25 + $0x178] sm:$0xff] }
  0xad   : > { %7984 = vmatpush3.msra.mxu1 %v2906_v30  ;;  %7965 = vmatprep.mubr.f32.mxu0 %v2780_v38  ;;  %v2820_v33 = vand.u32 4294901760, %v2819_v48 }
  0xae   : > { %7985 = vmatprep.mubr.f32.mxu1 %v9349_v31  ;;  %7997 = vmatprep.subr.mxu0 %v9291_v49 }
  0xaf   : > { %7986 = vmatmul.mubr.f32.vlgmr.msra.gmra.mxu1 %v9366_v4  ;;  %7966 = vmatmul.mubr.f32.vlgmr.msra.gmra.mxu0 %v2790_v21 }
  0xb0   : > { %8017 = vmatprep.subr.mxu1 %v9275_v20  ;;  %7998 = vmatpush3.msra.mxu0 %v9291_v49  ;;  %v2849_v49 = vsub.f32 %v9461_v24, %v2848_v57 }
  0xb1   : > { %8018 = vmatpush3.msra.mxu1 %v9275_v20  ;;  %7968 = vmatprep.mubr.f32.mxu0 %v2800_v8 }
  0xb2   : > { %7988 = vmatprep.mubr.f32.mxu1 %v9377_v5  ;;  %7999 = vmatprep.subr.mxu0 %v9312_v27  ;;  %v2850_v60 = vand.u32 4294901760, %v2849_v49 }
  0xb3   : > { %7989 = vmatmul.mubr.f32.gmra.mxu1 %v9392_v18  ;;  %7969 = vmatmul.mubr.f32.gmra.mxu0 %v2810_v55  ;;  %v3557_v55 = vsel %vm216_vm0, %v6980_v44, 0 }
  0xb4   : > { %8019 = vmatprep.subr.mxu1 %v9293_v45  ;;  %8000 = vmatpush3.msra.mxu0 %v9312_v27  ;;  %v9502_v27 = vand.u32 4294901760, %v6984_v41 }
  0xb5   : > { %8020 = vmatpush3.msra.mxu1 %v9293_v45  ;;  %7971 = vmatprep.mubr.f32.mxu0 %v2820_v33 }
  0xb6   : > { %7991 = vmatprep.mubr.f32.mxu1 %v9403_v53  ;;  %8001 = vmatprep.subr.mxu0 %v9340_v50  ;;  %v9517_v0 = vsub.f32 %v6984_v41, %v9502_v27 }
  0xb7   : > { %7992 = vmatmul.mubr.f32.gmra.mxu1 %v9416_v62  ;;  %7972 = vmatmul.mubr.f32.gmra.mxu0 %v2830_v54 }
  0xb8   : > { %8021 = vmatprep.subr.mxu1 %v9314_v37  ;;  %8002 = vmatpush3.msra.mxu0 %v9340_v50  ;;  %v6983_v50 = vld [vmem:[%s10861_s1 + $0x30] sm:$0xff]  ;;  %v9535_v61 = vand.u32 4294901760, %v9517_v0 }
  0xb9   : > { %8022 = vmatpush3.msra.mxu1 %v9314_v37  ;;  %7974 = vmatprep.mubr.f32.mxu0 %v2840_v36  ;;  %v9669_v36 = vand.u32 4294901760, %v3557_v55 }
  0xba   : > { %7994 = vmatprep.mubr.f32.mxu1 %v9429_v6  ;;  %8003 = vmatprep.subr.mxu0 %v9356_v17 }
  0xbb   : > { %7995 = vmatmul.mubr.f32.gmra.mxu1 %v9441_v16  ;;  %7975 = vmatmul.mubr.f32.gmra.mxu0 %v2850_v60 }
  0xbc   : > { %8023 = vmatprep.subr.mxu1 %v9329_v26  ;;  %8004 = vmatpush3.msra.mxu0 %v9356_v17  ;;  %v9521_v17 = vand.u32 4294901760, %v6983_v50 }
  0xbd   : > { %8024 = vmatpush3.msra.mxu1 %v9329_v26  ;;  %8005 = vmatprep.mubr.f32.mxu0 %v9375_v42  ;;  %v6982_v42 = vld [vmem:[%s10861_s1 + $0x28] sm:$0xff] }
  0xbe   : > { %8025 = vmatprep.mubr.f32.mxu1 %v2778_v19  ;;  %8037 = vmatprep.subr.mxu0 %v9309_v52  ;;  %v9568_v19 = vand.u32 4294901760, %v6981_v47 }
  0xbf   : > { %8026 = vmatmul.mubr.f32.vlgmr.msra.gmra.mxu1 %v2788_v59  ;;  %8006 = vmatmul.mubr.f32.vlgmr.msra.gmra.mxu0 %v9390_v11  ;;  %v6974_v11 = vld [vmem:[%s8692_s25 + $0x148] sm:$0xff] }
  0xc0   : > { %8057 = vmatprep.subr.mxu1 %v9275_v20  ;;  %8038 = vmatpush3.msra.mxu0 %v9309_v52  ;;  %v9542_v52 = vand.u32 4294901760, %v6982_v42  ;;  %v9594_v28 = vsub.f32 %v6981_v47, %v9568_v19  ;;  %v9689_v47 = vsub.f32 %v3557_v55, %v9669_v36 }
  0xc1   : > { %8058 = vmatpush3.msra.mxu1 %v9275_v20  ;;  %8008 = vmatprep.mubr.f32.mxu0 %v9401_v39  ;;  %v9540_v20 = vsub.f32 %v6983_v50, %v9521_v17  ;;  %v3539_v39 = vsel %vm216_vm0, %v6974_v11, 0 }
  0xc2   : > { %8028 = vmatprep.mubr.f32.mxu1 %v2798_v63  ;;  %8039 = vmatprep.subr.mxu0 %v9337_v13  ;;  %v9566_v12 = vsub.f32 %v6982_v42, %v9542_v52  ;;  %v9583_v23 = vand.u32 4294901760, %v3539_v39  ;;  %v3545_v63 = vsel %vm216_vm0, %v6976_v56, 0 }
  0xc3   : > { %8029 = vmatmul.mubr.f32.gmra.mxu1 %v2808_v35  ;;  %8009 = vmatmul.mubr.f32.gmra.mxu0 %v9414_v25  ;;  %v9563_v51 = vand.u32 4294901760, %v9540_v20  ;;  %v9620_v38 = vand.u32 4294901760, %v3545_v63 }
  0xc4   : > { %8059 = vmatprep.subr.mxu1 %v9293_v45  ;;  %8040 = vmatpush3.msra.mxu0 %v9337_v13  ;;  %v3736_v13 = vsub.f32 %v9517_v0, %v9535_v61  ;;  %v9591_v25 = vand.u32 4294901760, %v9566_v12 }
  0xc5   : > { %8060 = vmatpush3.msra.mxu1 %v9293_v45  ;;  %8011 = vmatprep.mubr.f32.mxu0 %v9427_v1  ;;  %v3536_v45 = vsel %vm216_vm0, %v6973_v2, 0  ;;  %v3743_v59 = vsub.f32 %v9540_v20, %v9563_v51  ;;  %v9642_v48 = vsub.f32 %v3545_v63, %v9620_v38 }
  0xc6   : > { %8031 = vmatprep.mubr.f32.mxu1 %v2818_v3  ;;  %8041 = vmatprep.subr.mxu0 %v9364_v58  ;;  %v9577_v32 = vand.u32 4294901760, %v3536_v45  ;;  %v3750_v35 = vsub.f32 %v9566_v12, %v9591_v25  ;;  %v3551_v3 = vsel %vm216_vm0, %v6978_v29, 0 }
  0xc7   : > { %8032 = vmatmul.mubr.f32.gmra.mxu1 %v2828_v43  ;;  %8012 = vmatmul.mubr.f32.gmra.mxu0 %v9439_v14  ;;  %v9618_v14 = vand.u32 4294901760, %v9594_v28  ;;  %v3660_v54 = vand.u32 4294901760, %v9642_v48 }
  0xc8   : > { %8061 = vmatprep.subr.mxu1 %v9314_v37  ;;  %8042 = vmatpush3.msra.mxu0 %v9364_v58  ;;  %v3542_v58 = vsel %vm216_vm0, %v6975_v22, 0  ;;  %v9603_v1 = vsub.f32 %v3536_v45, %v9577_v32 }
  0xc9   : > { %8062 = vmatpush3.msra.mxu1 %v9314_v37  ;;  %8014 = vmatprep.mubr.f32.mxu0 %v9451_v34  ;;  %v3737_v37 = vand.u32 4294901760, %v3736_v13  ;;  %v9605_v30 = vand.u32 4294901760, %v3542_v58  ;;  %v3757_v8 = vsub.f32 %v9594_v28, %v9618_v14 }
  0xca   : > { %8034 = vmatprep.mubr.f32.mxu1 %v2838_v9  ;;  %8043 = vmatprep.subr.mxu0 %v9383_v15  ;;  %v9644_v9 = vand.u32 4294901760, %v3551_v3 }
  0xcb   : > { %8035 = vmatmul.mubr.f32.gmra.mxu1 %v2848_v57  ;;  %8015 = vmatmul.mubr.f32.gmra.mxu0 %v9461_v24  ;;  %v9629_v34 = vsub.f32 %v3542_v58, %v9605_v30  ;;  %v3554_v24 = vsel %vm216_vm0, %v6979_v40, 0  ;;  %v3700_v58 = vand.u32 4294901760, %v9689_v47 }
  0xcc   : > { %8063 = vmatprep.subr.mxu1 %v9329_v26  ;;  %8044 = vmatpush3.msra.mxu0 %v9383_v15  ;;  %v9611_v15 = vsub.f32 %v3539_v39, %v9583_v23  ;;  %v9657_v33 = vand.u32 4294901760, %v3554_v24  ;;  %v9667_v49 = vsub.f32 %v3551_v3, %v9644_v9 }
  0xcd   : > { %8064 = vmatpush3.msra.mxu1 %v9329_v26  ;;  %8045 = vmatprep.mubr.f32.mxu0 %v9349_v31  ;;  %v3548_v26 = vsel %vm216_vm0, %v6977_v46, 0  ;;  %v3650_v10 = vand.u32 4294901760, %v9629_v34  ;;  %v3701_v40 = vsub.f32 %v9689_v47, %v3700_v58 }
  0xce   : > { %8065 = vmatprep.mubr.f32.mxu1 %v9349_v31  ;;  %8077 = vmatprep.subr.mxu0 %v9502_v27  ;;  %v3744_v31 = vand.u32 4294901760, %v3743_v59  ;;  %v9631_v21 = vand.u32 4294901760, %v3548_v26  ;;  %v3640_v43 = vand.u32 4294901760, %v9611_v15  ;;  %v9679_v50 = vsub.f32 %v3554_v24, %v9657_v33 }
  0xcf   : > { %8066 = vmatmul.mubr.f32.vlgmr.msra.gmra.mxu1 %v9366_v4  ;;  %8046 = vmatmul.mubr.f32.vlgmr.msra.gmra.mxu0 %v9366_v4  ;;  %v3630_v4 = vand.u32 4294901760, %v9603_v1  ;;  %v3680_v2 = vand.u32 4294901760, %v9667_v49 }
  0xd0   : > { %8097 = vmatprep.subr.mxu1 %v3737_v37  ;;  %8078 = vmatpush3.msra.mxu0 %v9502_v27  ;;  %v9655_v57 = vsub.f32 %v3548_v26, %v9631_v21  ;;  %v3641_v7 = vsub.f32 %v9611_v15, %v3640_v43  ;;  %v3690_v13 = vand.u32 4294901760, %v9679_v50 }
  0xd1   : > { %8098 = vmatpush3.msra.mxu1 %v3737_v37  ;;  %8048 = vmatprep.mubr.f32.mxu0 %v9377_v5  ;;  %v3681_v56 = vsub.f32 %v9667_v49, %v3680_v2 }
  0xd2   : > { %8068 = vmatprep.mubr.f32.mxu1 %v9377_v5  ;;  %8079 = vmatprep.subr.mxu0 %v9521_v17  ;;  %v3751_v5 = vand.u32 4294901760, %v3750_v35  ;;  %v3670_v41 = vand.u32 4294901760, %v9655_v57  ;;  %v3642_v42 = vand.u32 4294901760, %v3641_v7  ;;  %v3691_v29 = vsub.f32 %v9679_v50, %v3690_v13 }
  0xd3   : > { %8069 = vmatmul.mubr.f32.gmra.mxu1 %v9392_v18  ;;  %8049 = vmatmul.mubr.f32.gmra.mxu0 %v9392_v18  ;;  %v3631_v18 = vsub.f32 %v9603_v1, %v3630_v4  ;;  %v3682_v35 = vand.u32 4294901760, %v3681_v56 }
  0xd4   : > { %8099 = vmatprep.subr.mxu1 %v3744_v31  ;;  %8080 = vmatpush3.msra.mxu0 %v9521_v17 }
  0xd5   : > { %8100 = vmatpush3.msra.mxu1 %v3744_v31  ;;  %8051 = vmatprep.mubr.f32.mxu0 %v9403_v53  ;;  %v3632_v60 = vand.u32 4294901760, %v3631_v18 }
  0xd6   : > { %8071 = vmatprep.mubr.f32.mxu1 %v9403_v53  ;;  %8081 = vmatprep.subr.mxu0 %v9542_v52  ;;  %v3758_v53 = vand.u32 4294901760, %v3757_v8 }
  0xd7   : > { %8072 = vmatmul.mubr.f32.gmra.mxu1 %v9416_v62  ;;  %8052 = vmatmul.mubr.f32.gmra.mxu0 %v9416_v62  ;;  %v3651_v62 = vsub.f32 %v9629_v34, %v3650_v10 }
  0xd8   : > { %8101 = vmatprep.subr.mxu1 %v3751_v5  ;;  %8082 = vmatpush3.msra.mxu0 %v9542_v52 }
  0xd9   : > { %8102 = vmatpush3.msra.mxu1 %v3751_v5  ;;  %8054 = vmatprep.mubr.f32.mxu0 %v9429_v6  ;;  %v3652_v11 = vand.u32 4294901760, %v3651_v62  ;;  %v3692_v5 = vand.u32 4294901760, %v3691_v29 }
  0xda   : > { %8074 = vmatprep.mubr.f32.mxu1 %v9429_v6  ;;  %8083 = vmatprep.subr.mxu0 %v9568_v19  ;;  %v3661_v6 = vsub.f32 %v9642_v48, %v3660_v54 }
  0xdb   : > { %8075 = vmatmul.mubr.f32.gmra.mxu1 %v9441_v16  ;;  %8055 = vmatmul.mubr.f32.gmra.mxu0 %v9441_v16  ;;  %v3671_v16 = vsub.f32 %v9655_v57, %v3670_v41 }
  0xdc   : > { %8103 = vmatprep.subr.mxu1 %v3758_v53  ;;  %8084 = vmatpush3.msra.mxu0 %v9568_v19  ;;  %v3662_v22 = vand.u32 4294901760, %v3661_v6 }
  0xdd   : > { %8104 = vmatpush3.msra.mxu1 %v3758_v53  ;;  %8085 = vmatprep.mubr.f32.mxu0 %v3632_v60  ;;  %v3672_v63 = vand.u32 4294901760, %v3671_v16  ;;  %v3521_v60 = vld [vmem:[%s10861_s1 + $0x18] sm:$0xff] }
  0xde   : > { %8105 = vmatprep.mubr.f32.mxu1 %v9577_v32  ;;  %8117 = vmatprep.subr.mxu0 %v9517_v0 }
  0xdf   : > { %v7627_v45 = vpop.f32.mrf.mxu1  ;;  %8106 = vmatmul.mubr.f32.vlgmr.msra.gmra.mxu1 %v9583_v23  ;;  %v7607_v39 = vpop.f32.mrf.mxu0  ;;  %8086 = vmatmul.mubr.f32.vlgmr.msra.gmra.mxu0 %v3642_v42 }
  0xe0   : > { %8137 = vmatprep.subr.mxu1 %v9502_v27  ;;  %v9704_v37 = vadd.f32 %v7627_v45, %v7607_v39  ;;  %8118 = vmatpush3.msra.mxu0 %v9517_v0  ;;  %v3520_v39 = vld [vmem:[%s10861_s1 + $0x10] sm:$0xff] }
  0xe1   : > { %v477_v59 = vpop.f32.mrf.mxu1  ;;  %8138 = vmatpush3.msra.mxu1 %v9502_v27  ;;  %v316_v46 = vpop.f32.mrf.mxu0  ;;  %8088 = vmatprep.mubr.f32.mxu0 %v3652_v11 }
  0xe2   : > { %8108 = vmatprep.mubr.f32.mxu1 %v9605_v30  ;;  %v9712_v26 = vadd.f32 %v477_v59, %v316_v46  ;;  %8119 = vmatprep.subr.mxu0 %v9540_v20 }
  0xe3   : > { %v7630_v31 = vpop.f32.mrf.mxu1  ;;  %8109 = vmatmul.mubr.f32.gmra.mxu1 %v9620_v38  ;;  %v7610_v0 = vpop.f32.mrf.mxu0  ;;  %8089 = vmatmul.mubr.f32.gmra.mxu0 %v3662_v22 }
  0xe4   : > { %8139 = vmatprep.subr.mxu1 %v9521_v17  ;;  %v9720_v3 = vadd.f32 %v7630_v31, %v7610_v0  ;;  %8120 = vmatpush3.msra.mxu0 %v9540_v20  ;;  %v3702_v20 = vand.u32 4294901760, %v3701_v40  ;;  %v6965_v0 = vld [vmem:[%s8692_s25 + $0x100] sm:$0xff] }
  0xe5   : > { %v489_v44 = vpop.f32.mrf.mxu1  ;;  %8140 = vmatpush3.msra.mxu1 %v9521_v17  ;;  %v336_v24 = vpop.f32.mrf.mxu0  ;;  %8091 = vmatprep.mubr.f32.mxu0 %v3672_v63  ;;  %v9765_v63 = vand.u32 4294901760, %v3520_v39 }
  0xe6   : > { %8111 = vmatprep.mubr.f32.mxu1 %v9631_v21  ;;  %v9725_v8 = vadd.f32 %v489_v44, %v336_v24  ;;  %8121 = vmatprep.subr.mxu0 %v9566_v12  ;;  %v6966_v44 = vld [vmem:[%s8692_s25 + $0x108] sm:$0xff] }
  0xe7   : > { %v7633_v55 = vpop.f32.mrf.mxu1  ;;  %8112 = vmatmul.mubr.f32.gmra.mxu1 %v9644_v9  ;;  %v7613_v18 = vpop.f32.mrf.mxu0  ;;  %8092 = vmatmul.mubr.f32.gmra.mxu0 %v3682_v35 }
  0xe8   : > { %8141 = vmatprep.subr.mxu1 %v9542_v52  ;;  %v9730_v7 = vadd.f32 %v7633_v55, %v7613_v18  ;;  %8122 = vmatpush3.msra.mxu0 %v9566_v12  ;;  %v9743_v12 = vand.u32 4294901760, %v3521_v60 }
  0xe9   : > { %v501_v53 = vpop.f32.mrf.mxu1  ;;  %8142 = vmatpush3.msra.mxu1 %v9542_v52  ;;  %v356_v62 = vpop.f32.mrf.mxu0  ;;  %8094 = vmatprep.mubr.f32.mxu0 %v3692_v5 }
  0xea   : > { %8114 = vmatprep.mubr.f32.mxu1 %v9657_v33  ;;  %v9738_v42 = vadd.f32 %v501_v53, %v356_v62  ;;  %8123 = vmatprep.subr.mxu0 %v9594_v28  ;;  %v9763_v46 = vsub.f32 %v3521_v60, %v9743_v12  ;;  %v4349_v53 = vsel %vm216_vm0, %v6966_v44, 0 }
  0xeb   : > { %v7636_v6 = vpop.f32.mrf.mxu1  ;;  %8115 = vmatmul.mubr.f32.gmra.mxu1 %v9669_v36  ;;  %v7616_v11 = vpop.f32.mrf.mxu0  ;;  %8095 = vmatmul.mubr.f32.gmra.mxu0 %v3702_v20 }
  0xec   : > { %8143 = vmatprep.subr.mxu1 %v9568_v19  ;;  %v9745_v16 = vadd.f32 %v7636_v6, %v7616_v11  ;;  %8124 = vmatpush3.msra.mxu0 %v9594_v28  ;;  %v9785_v31 = vand.u32 4294901760, %v9763_v46  ;;  %v6968_v6 = vld [vmem:[%s8692_s25 + $0x118] sm:$0xff] }
  0xed   : > { %v513_v45 = vpop.f32.mrf.mxu1  ;;  %8144 = vmatpush3.msra.mxu1 %v9568_v19  ;;  %v376_v22 = vpop.f32.mrf.mxu0  ;;  %8125 = vmatprep.mubr.f32.mxu0 %v9603_v1 }
  0xee   : > { %8145 = vmatprep.mubr.f32.mxu1 %v3630_v4  ;;  %v9755_v56 = vadd.f32 %v513_v45, %v376_v22  ;;  %8157 = vmatprep.subr.mxu0 %v9535_v61  ;;  %v9854_v22 = vand.u32 4294901760, %v4349_v53 }
  0xef   : > { %v7667_v59 = vpop.f32.mrf.mxu1  ;;  %8146 = vmatmul.mubr.f32.vlgmr.msra.gmra.mxu1 %v3640_v43  ;;  %v7647_v28 = vpop.f32.mrf.mxu0  ;;  %8126 = vmatmul.mubr.f32.vlgmr.msra.gmra.mxu0 %v9611_v15  ;;  %v3519_v43 = vld [vmem:[%s10861_s1 + $0x8] sm:$0xff] }
  0xf0   : > { %8177 = vmatprep.subr.mxu1 %v9502_v27  ;;  %v607_v1 = vadd.f32 %v7647_v28, %v9704_v37  ;;  %8158 = vmatpush3.msra.mxu0 %v9535_v61 }
  0xf1   : > { %v725_v4 = vpop.f32.mrf.mxu1  ;;  %8178 = vmatpush3.msra.mxu1 %v9502_v27  ;;  %v599_v15 = vpop.f32.mrf.mxu0  ;;  %8128 = vmatprep.mubr.f32.mxu0 %v9629_v34  ;;  %v9788_v34 = vsub.f32 %v3520_v39, %v9765_v63 }
  0xf2   : > { %8148 = vmatprep.mubr.f32.mxu1 %v3650_v10  ;;  %v9776_v29 = vadd.f32 %v7667_v59, %v607_v1  ;;  %v600_v37 = vadd.f32 %v599_v15, %v9712_v26  ;;  %8159 = vmatprep.subr.mxu0 %v9563_v51  ;;  %v9790_v10 = vand.u32 4294901760, %v3519_v43  ;;  %v3518_v26 = vld [vmem:[%s10861_s1] sm:$0xff]  ;;  %v4355_v1 = vsel %vm216_vm0, %v6968_v6, 0 }
  0xf3   : > { %v7670_v61 = vpop.f32.mrf.mxu1  ;;  %8149 = vmatmul.mubr.f32.gmra.mxu1 %v3660_v54  ;;  %v7650_v27 = vpop.f32.mrf.mxu0  ;;  %8129 = vmatmul.mubr.f32.gmra.mxu0 %v9642_v48 }
  0xf4   : > { %8179 = vmatprep.subr.mxu1 %v9521_v17  ;;  %v9796_v54 = vadd.f32 %v725_v4, %v600_v37  ;;  %v621_v35 = vadd.f32 %v7650_v27, %v9720_v3  ;;  %8160 = vmatpush3.msra.mxu0 %v9563_v51  ;;  %v9811_v51 = vand.u32 4294901760, %v3518_v26  ;;  %v6970_v37 = vld [vmem:[%s8692_s25 + $0x128] sm:$0xff] }
  0xf5   : > { %v741_v48 = vpop.f32.mrf.mxu1  ;;  %8180 = vmatpush3.msra.mxu1 %v9521_v17  ;;  %v613_v40 = vpop.f32.mrf.mxu0  ;;  %8131 = vmatprep.mubr.f32.mxu0 %v9655_v57  ;;  %v4346_v17 = vsel %vm216_vm0, %v6965_v0, 0  ;;  %v4546_v57 = vsub.f32 %v9763_v46, %v9785_v31 }
  0xf6   : > { %8151 = vmatprep.mubr.f32.mxu1 %v3670_v41  ;;  %v9805_v24 = vadd.f32 %v7670_v61, %v621_v35  ;;  %v614_v5 = vadd.f32 %v613_v40, %v9725_v8  ;;  %8161 = vmatprep.subr.mxu0 %v9591_v25  ;;  %v9819_v41 = vand.u32 4294901760, %v9788_v34  ;;  %v9822_v8 = vsub.f32 %v3519_v43, %v9790_v10 }
  0xf7   : > { %v7673_v3 = vpop.f32.mrf.mxu1  ;;  %8152 = vmatmul.mubr.f32.gmra.mxu1 %v3680_v2  ;;  %v7653_v55 = vpop.f32.mrf.mxu0  ;;  %8132 = vmatmul.mubr.f32.gmra.mxu0 %v9667_v49  ;;  %v6967_v2 = vld [vmem:[%s8692_s25 + $0x110] sm:$0xff]  ;;  %v9834_v62 = vand.u32 4294901760, %v4346_v17  ;;  %v4547_v45 = vand.u32 4294901760, %v4546_v57  ;;  %v9886_v35 = vand.u32 4294901760, %v4355_v1 }
  0xf8   : > { %8181 = vmatprep.subr.mxu1 %v9542_v52  ;;  %v9825_v18 = vadd.f32 %v741_v48, %v614_v5  ;;  %v635_v20 = vadd.f32 %v7653_v55, %v9730_v7  ;;  %8162 = vmatpush3.msra.mxu0 %v9591_v25  ;;  %v9852_v39 = vand.u32 4294901760, %v9822_v8  ;;  %v6971_v48 = vld [vmem:[%s8692_s25 + $0x130] sm:$0xff] }
  0xf9   : > { %v757_v49 = vpop.f32.mrf.mxu1  ;;  %8182 = vmatpush3.msra.mxu1 %v9542_v52  ;;  %v627_v60 = vpop.f32.mrf.mxu0  ;;  %8134 = vmatprep.mubr.f32.mxu0 %v9679_v50  ;;  %v9844_v52 = vsub.f32 %v3518_v26, %v9811_v51  ;;  %v4352_v50 = vsel %vm216_vm0, %v6967_v2, 0  ;;  %v9866_v43 = vsub.f32 %v4346_v17, %v9834_v62  ;;  %v6972_v2 = vld [vmem:[%s8692_s25 + $0x138] sm:$0xff] }
  0xfa   : > { %8154 = vmatprep.mubr.f32.mxu1 %v3690_v13  ;;  %v9837_v11 = vadd.f32 %v7673_v3, %v635_v20  ;;  %v628_v7 = vadd.f32 %v627_v60, %v9738_v42  ;;  %8163 = vmatprep.subr.mxu0 %v9618_v14  ;;  %v4553_v42 = vsub.f32 %v9788_v34, %v9819_v41  ;;  %v9868_v15 = vand.u32 4294901760, %v4352_v50 }
  0xfb   : > { %v7676_v25 = vpop.f32.mrf.mxu1  ;;  %8155 = vmatmul.mubr.f32.gmra.mxu1 %v3700_v58  ;;  %v7656_v13 = vpop.f32.mrf.mxu0  ;;  %8135 = vmatmul.mubr.f32.gmra.mxu0 %v9689_v47  ;;  %v6969_v58 = vld [vmem:[%s8692_s25 + $0x120] sm:$0xff]  ;;  %v9877_v61 = vand.u32 4294901760, %v9844_v52  ;;  %v4560_v0 = vsub.f32 %v9822_v8, %v9852_v39  ;;  %v4440_v17 = vand.u32 4294901760, %v9866_v43 }
  0xfc   : > { %8183 = vmatprep.subr.mxu1 %v9568_v19  ;;  %v9857_v59 = vadd.f32 %v757_v49, %v628_v7  ;;  %v649_v28 = vadd.f32 %v7656_v13, %v9745_v16  ;;  %8164 = vmatpush3.msra.mxu0 %v9618_v14  ;;  %v4554_v26 = vand.u32 4294901760, %v4553_v42  ;;  %v9898_v55 = vsub.f32 %v4352_v50, %v9868_v15 }
  0xfd   : > { %v773_v47 = vpop.f32.mrf.mxu1  ;;  %8184 = vmatpush3.msra.mxu1 %v9568_v19  ;;  %v641_v4 = vpop.f32.mrf.mxu0  ;;  %8165 = vmatprep.mubr.f32.mxu0 %v9577_v32  ;;  %v4561_v6 = vand.u32 4294901760, %v4560_v0  ;;  %v4367_v42 = vsel %vm216_vm0, %v6972_v2, 0 }
  0xfe   : > { %8185 = vmatprep.mubr.f32.mxu1 %v9577_v32  ;;  %v9871_v16 = vadd.f32 %v7676_v25, %v649_v28  ;;  %v642_v14 = vadd.f32 %v641_v4, %v9755_v56  ;;  %8197 = vmatprep.subr.mxu0 %v9743_v12  ;;  %v4358_v32 = vsel %vm216_vm0, %v6969_v58, 0  ;;  %v9884_v56 = vsub.f32 %v4349_v53, %v9854_v22 }
  0xff   : > { %v7707_v19 = vpop.f32.mrf.mxu1  ;;  %8186 = vmatmul.mubr.f32.vlgmr.msra.gmra.mxu1 %v9583_v23  ;;  %v7687_v27 = vpop.f32.mrf.mxu0  ;;  %8166 = vmatmul.mubr.f32.vlgmr.msra.gmra.mxu0 %v9583_v23  ;;  %v4361_v23 = vsel %vm216_vm0, %v6970_v37, 0  ;;  %v9900_v57 = vand.u32 4294901760, %v4358_v32  ;;  %v4364_v53 = vsel %vm216_vm0, %v6971_v48, 0  ;;  %v9914_v25 = vsub.f32 %v4355_v1, %v9886_v35 }
 0x100   : > { %8217 = vmatprep.subr.mxu1 %v4547_v45  ;;  %v9889_v40 = vadd.f32 %v773_v47, %v642_v14  ;;  %v871_v44 = vadd.f32 %v7687_v27, %v9776_v29  ;;  %8198 = vmatpush3.msra.mxu0 %v9743_v12  ;;  %v4450_v7 = vand.u32 4294901760, %v9884_v56  ;;  %v4441_v58 = vsub.f32 %v9866_v43, %v4440_v17 }
 0x101   : > { %v981_v5 = vpop.f32.mrf.mxu1  ;;  %8218 = vmatpush3.msra.mxu1 %v4547_v45  ;;  %v864_v3 = vpop.f32.mrf.mxu0  ;;  %8168 = vmatprep.mubr.f32.mxu0 %v9605_v30  ;;  %v4460_v28 = vand.u32 4294901760, %v9898_v55  ;;  %v9930_v47 = vsub.f32 %v4358_v32, %v9900_v57  ;;  %v4470_v32 = vand.u32 4294901760, %v9914_v25 }
 0x102   : > { %8188 = vmatprep.mubr.f32.mxu1 %v9605_v30  ;;  %v9903_v29 = vadd.f32 %v7707_v19, %v871_v44  ;;  %v865_v20 = vadd.f32 %v864_v3, %v9796_v54  ;;  %8199 = vmatprep.subr.mxu0 %v9765_v63  ;;  %v4567_v30 = vsub.f32 %v9844_v52, %v9877_v61  ;;  %v9916_v54 = vand.u32 4294901760, %v4361_v23 }
 0x103   : > { %v7710_v49 = vpop.f32.mrf.mxu1  ;;  %8189 = vmatmul.mubr.f32.gmra.mxu1 %v9620_v38  ;;  %v7690_v60 = vpop.f32.mrf.mxu0  ;;  %8169 = vmatmul.mubr.f32.gmra.mxu0 %v9620_v38  ;;  %v4451_v19 = vsub.f32 %v9884_v56, %v4450_v7  ;;  %v4442_v44 = vand.u32 4294901760, %v4441_v58 }
 0x104   : > { %8219 = vmatprep.subr.mxu1 %v4554_v26  ;;  %v9918_v50 = vadd.f32 %v981_v5, %v865_v20  ;;  %v883_v13 = vadd.f32 %v7690_v60, %v9805_v24  ;;  %8200 = vmatpush3.msra.mxu0 %v9765_v63  ;;  %v9932_v24 = vand.u32 4294901760, %v4364_v53  ;;  %v9945_v27 = vsub.f32 %v4361_v23, %v9916_v54 }
 0x105   : > { %v993_v45 = vpop.f32.mrf.mxu1  ;;  %8220 = vmatpush3.msra.mxu1 %v4554_v26  ;;  %v876_v38 = vpop.f32.mrf.mxu0  ;;  %8171 = vmatprep.mubr.f32.mxu0 %v9631_v21  ;;  %v4461_v5 = vsub.f32 %v9898_v55, %v4460_v28  ;;  %v4480_v23 = vand.u32 4294901760, %v9930_v47 }
 0x106   : > { %8191 = vmatprep.mubr.f32.mxu1 %v9631_v21  ;;  %v9934_v1 = vadd.f32 %v7710_v49, %v883_v13  ;;  %v877_v4 = vadd.f32 %v876_v38, %v9825_v18  ;;  %8201 = vmatprep.subr.mxu0 %v9790_v10  ;;  %v4568_v21 = vand.u32 4294901760, %v4567_v30  ;;  %v9947_v18 = vand.u32 4294901760, %v4367_v42 }
 0x107   : > { %v7713_v37 = vpop.f32.mrf.mxu1  ;;  %8192 = vmatmul.mubr.f32.gmra.mxu1 %v9644_v9  ;;  %v7693_v14 = vpop.f32.mrf.mxu0  ;;  %8172 = vmatmul.mubr.f32.gmra.mxu0 %v9644_v9  ;;  %v9960_v3 = vsub.f32 %v4364_v53, %v9932_v24  ;;  %v4452_v49 = vand.u32 4294901760, %v4451_v19  ;;  %v4471_v30 = vsub.f32 %v9914_v25, %v4470_v32  ;;  %v4490_v53 = vand.u32 4294901760, %v9945_v27 }
 0x108   : > { %8221 = vmatprep.subr.mxu1 %v4561_v6  ;;  %v9949_v26 = vadd.f32 %v993_v45, %v877_v4  ;;  %v895_v0 = vadd.f32 %v7693_v14, %v9837_v11  ;;  %8202 = vmatpush3.msra.mxu0 %v9790_v10  ;;  %v9973_v60 = vsub.f32 %v4367_v42, %v9947_v18  ;;  %v4462_v45 = vand.u32 4294901760, %v4461_v5 }
 0x109   : > { %v1005_v48 = vpop.f32.mrf.mxu1  ;;  %8222 = vmatpush3.msra.mxu1 %v4561_v6  ;;  %v888_v9 = vpop.f32.mrf.mxu0  ;;  %8174 = vmatprep.mubr.f32.mxu0 %v9657_v33  ;;  %v4481_v38 = vsub.f32 %v9930_v47, %v4480_v23  ;;  %v4500_v42 = vand.u32 4294901760, %v9960_v3  ;;  %v4491_v14 = vsub.f32 %v9945_v27, %v4490_v53 }
 0x10a   : > { %8194 = vmatprep.mubr.f32.mxu1 %v9657_v33  ;;  %v9962_v11 = vadd.f32 %v7713_v37, %v895_v0  ;;  %v889_v2 = vadd.f32 %v888_v9, %v9857_v59  ;;  %8203 = vmatprep.subr.mxu0 %v9811_v51  ;;  %v4510_v19 = vand.u32 4294901760, %v9973_v60 }
 0x10b   : > { %v7716_v20 = vpop.f32.mrf.mxu1  ;;  %8195 = vmatmul.mubr.f32.gmra.mxu1 %v9669_v36  ;;  %v7696_v33 = vpop.f32.mrf.mxu0  ;;  %8175 = vmatmul.mubr.f32.gmra.mxu0 %v9669_v36  ;;  %v4501_v5 = vsub.f32 %v9960_v3, %v4500_v42 }
 0x10c   : > { %8223 = vmatprep.subr.mxu1 %v4568_v21  ;;  %v9975_v59 = vadd.f32 %v1005_v48, %v889_v2  ;;  %v907_v6 = vadd.f32 %v7696_v33, %v9871_v16  ;;  %8204 = vmatpush3.msra.mxu0 %v9811_v51  ;;  %v4492_v33 = vand.u32 4294901760, %v4491_v14 }
 0x10d   : > { %v1017_v13 = vpop.f32.mrf.mxu1  ;;  %8224 = vmatpush3.msra.mxu1 %v4568_v21  ;;  %v900_v36 = vpop.f32.mrf.mxu0  ;;  %8205 = vmatprep.mubr.f32.mxu0 %v4442_v44  ;;  %v4472_v21 = vand.u32 4294901760, %v4471_v30  ;;  %v4482_v44 = vand.u32 4294901760, %v4481_v38 }
 0x10e   : > { %8225 = vmatprep.mubr.f32.mxu1 %v9834_v62  ;;  %v9984_v58 = vadd.f32 %v7716_v20, %v907_v6  ;;  %v901_v4 = vadd.f32 %v900_v36, %v9889_v40  ;;  %8237 = vmatprep.subr.mxu0 %v9763_v46  ;;  %v4502_v36 = vand.u32 4294901760, %v4501_v5 }
 0x10f   : > { %v7747_v16 = vpop.f32.mrf.mxu1  ;;  %8226 = vmatmul.mubr.f32.vlgmr.msra.gmra.mxu1 %v9854_v22  ;;  %v7727_v37 = vpop.f32.mrf.mxu0  ;;  %8206 = vmatmul.mubr.f32.vlgmr.msra.gmra.mxu0 %v4452_v49  ;;  %v4511_v49 = vsub.f32 %v9973_v60, %v4510_v19 }
 0x110   : > { %8257 = vmatprep.subr.mxu1 %v9743_v12  ;;  %v9994_v0 = vadd.f32 %v1017_v13, %v901_v4  ;;  %v1137_v40 = vadd.f32 %v7727_v37, %v9903_v29  ;;  %8238 = vmatpush3.msra.mxu0 %v9763_v46 }
 0x111   : > { %v1287_v48 = vpop.f32.mrf.mxu1  ;;  %8258 = vmatpush3.msra.mxu1 %v9743_v12  ;;  %v1126_v9 = vpop.f32.mrf.mxu0  ;;  %8208 = vmatprep.mubr.f32.mxu0 %v4462_v45 }
 0x112   : > { %8228 = vmatprep.mubr.f32.mxu1 %v9868_v15  ;;  %v10003_v2 = vadd.f32 %v7747_v16, %v1137_v40  ;;  %v1127_v20 = vadd.f32 %v1126_v9, %v9918_v50  ;;  %8239 = vmatprep.subr.mxu0 %v9788_v34 }
 0x113   : > { %v7750_v29 = vpop.f32.mrf.mxu1  ;;  %8229 = vmatmul.mubr.f32.gmra.mxu1 %v9886_v35  ;;  %v7730_v46 = vpop.f32.mrf.mxu0  ;;  %8209 = vmatmul.mubr.f32.gmra.mxu0 %v4472_v21 }
 0x114   : > { %8259 = vmatprep.subr.mxu1 %v9765_v63  ;;  %v10012_v30 = vadd.f32 %v1287_v48, %v1127_v20  ;;  %v1157_v6 = vadd.f32 %v7730_v46, %v9934_v1  ;;  %8240 = vmatpush3.msra.mxu0 %v9788_v34  ;;  %v4512_v34 = vand.u32 4294901760, %v4511_v49 }
 0x115   : > { %v1299_v50 = vpop.f32.mrf.mxu1  ;;  %8260 = vmatpush3.msra.mxu1 %v9765_v63  ;;  %v1146_v13 = vpop.f32.mrf.mxu0  ;;  %8211 = vmatprep.mubr.f32.mxu0 %v4482_v44 }
 0x116   : > { %8231 = vmatprep.mubr.f32.mxu1 %v9900_v57  ;;  %v10018_v45 = vadd.f32 %v7750_v29, %v1157_v6  ;;  %v1147_v38 = vadd.f32 %v1146_v13, %v9949_v26  ;;  %8241 = vmatprep.subr.mxu0 %v9822_v8  ;;  %v6996_v26 = vld [vmem:[%s10861_s1 + $0x58] sm:$0xff] }
 0x117   : > { %v7753_v4 = vpop.f32.mrf.mxu1  ;;  %8232 = vmatmul.mubr.f32.gmra.mxu1 %v9916_v54  ;;  %v7733_v1 = vpop.f32.mrf.mxu0  ;;  %8212 = vmatmul.mubr.f32.gmra.mxu0 %v4492_v33  ;;  %v10039_v9 = vand.u32 4294901760, %v6996_v26 }
 0x118   : > { %8261 = vmatprep.subr.mxu1 %v9790_v10  ;;  %v10024_v16 = vadd.f32 %v1299_v50, %v1147_v38  ;;  %v1177_v37 = vadd.f32 %v7733_v1, %v9962_v11  ;;  %8242 = vmatpush3.msra.mxu0 %v9822_v8  ;;  %v6986_v1 = vld [vmem:[%s8692_s25 + $0x188] sm:$0xff] }
 0x119   : > { %v1311_v21 = vpop.f32.mrf.mxu1  ;;  %8262 = vmatpush3.msra.mxu1 %v9790_v10  ;;  %v1166_v14 = vpop.f32.mrf.mxu0  ;;  %8214 = vmatprep.mubr.f32.mxu0 %v4502_v36  ;;  %v10061_v49 = vsub.f32 %v6996_v26, %v10039_v9  ;;  %v6985_v36 = vld [vmem:[%s8692_s25 + $0x180] sm:$0xff] }
 0x11a   : > { %8234 = vmatprep.mubr.f32.mxu1 %v9932_v24  ;;  %v10033_v40 = vadd.f32 %v7753_v4, %v1177_v37  ;;  %v1167_v48 = vadd.f32 %v1166_v14, %v9975_v59  ;;  %8243 = vmatprep.subr.mxu0 %v9844_v52  ;;  %v6995_v59 = vld [vmem:[%s10861_s1 + $0x50] sm:$0xff] }
 0x11b   : > { %v7756_v11 = vpop.f32.mrf.mxu1  ;;  %8235 = vmatmul.mubr.f32.gmra.mxu1 %v9947_v18  ;;  %v7736_v8 = vpop.f32.mrf.mxu0  ;;  %8215 = vmatmul.mubr.f32.gmra.mxu0 %v4512_v34  ;;  %v10085_v13 = vand.u32 4294901760, %v10061_v49 }
 0x11c   : > { %8263 = vmatprep.subr.mxu1 %v9811_v51  ;;  %v10041_v44 = vadd.f32 %v1311_v21, %v1167_v48  ;;  %v1197_v5 = vadd.f32 %v7736_v8, %v9984_v58  ;;  %8244 = vmatpush3.msra.mxu0 %v9844_v52  ;;  %v5172_v48 = vsel %vm216_vm0, %v6986_v1, 0 }
 0x11d   : > { %v1323_v20 = vpop.f32.mrf.mxu1  ;;  %8264 = vmatpush3.msra.mxu1 %v9811_v51  ;;  %v1186_v29 = vpop.f32.mrf.mxu0  ;;  %8245 = vmatprep.mubr.f32.mxu0 %v9866_v43  ;;  %v10063_v43 = vand.u32 4294901760, %v6995_v59 }
 0x11e   : > { %8265 = vmatprep.mubr.f32.mxu1 %v4440_v17  ;;  %v10052_v46 = vadd.f32 %v7756_v11, %v1197_v5  ;;  %v1187_v33 = vadd.f32 %v1186_v29, %v9994_v0  ;;  %8277 = vmatprep.subr.mxu0 %v9785_v31  ;;  %v6988_v5 = vld [vmem:[%s8692_s25 + $0x198] sm:$0xff] }
 0x11f   : > { %v7787_v52 = vpop.f32.mrf.mxu1  ;;  %8266 = vmatmul.mubr.f32.vlgmr.msra.gmra.mxu1 %v4450_v7  ;;  %v7767_v58 = vpop.f32.mrf.mxu0  ;;  %8246 = vmatmul.mubr.f32.vlgmr.msra.gmra.mxu0 %v9884_v56  ;;  %v6994_v56 = vld [vmem:[%s10861_s1 + $0x48] sm:$0xff] }
 0x120   : > { %8297 = vmatprep.subr.mxu1 %v9743_v12  ;;  %v10065_v17 = vadd.f32 %v1323_v20, %v1187_v33  ;;  %v1417_v0 = vadd.f32 %v7767_v58, %v10003_v2  ;;  %8278 = vmatpush3.msra.mxu0 %v9785_v31  ;;  %v10154_v33 = vand.u32 4294901760, %v5172_v48 }
 0x121   : > { %v1535_v6 = vpop.f32.mrf.mxu1  ;;  %8298 = vmatpush3.msra.mxu1 %v9743_v12  ;;  %v1409_v7 = vpop.f32.mrf.mxu0  ;;  %8248 = vmatprep.mubr.f32.mxu0 %v9898_v55  ;;  %v10088_v55 = vsub.f32 %v6995_v59, %v10063_v43 }
 0x122   : > { %8268 = vmatprep.mubr.f32.mxu1 %v4460_v28  ;;  %v10076_v50 = vadd.f32 %v7787_v52, %v1417_v0  ;;  %v1410_v2 = vadd.f32 %v1409_v7, %v10012_v30  ;;  %8279 = vmatprep.subr.mxu0 %v9819_v41  ;;  %v10090_v28 = vand.u32 4294901760, %v6994_v56  ;;  %v6993_v30 = vld [vmem:[%s10861_s1 + $0x40] sm:$0xff]  ;;  %v5178_v0 = vsel %vm216_vm0, %v6988_v5, 0 }
 0x123   : > { %v7790_v31 = vpop.f32.mrf.mxu1  ;;  %8269 = vmatmul.mubr.f32.gmra.mxu1 %v4470_v32  ;;  %v7770_v12 = vpop.f32.mrf.mxu0  ;;  %8249 = vmatmul.mubr.f32.gmra.mxu0 %v9914_v25 }
 0x124   : > { %8299 = vmatprep.subr.mxu1 %v9765_v63  ;;  %v10096_v32 = vadd.f32 %v1535_v6, %v1410_v2  ;;  %v1431_v38 = vadd.f32 %v7770_v12, %v10018_v45  ;;  %8280 = vmatpush3.msra.mxu0 %v9819_v41  ;;  %v10111_v41 = vand.u32 4294901760, %v6993_v30  ;;  %v6990_v2 = vld [vmem:[%s8692_s25 + $0x1a8] sm:$0xff] }
 0x125   : > { %v1551_v25 = vpop.f32.mrf.mxu1  ;;  %8300 = vmatpush3.msra.mxu1 %v9765_v63  ;;  %v1423_v4 = vpop.f32.mrf.mxu0  ;;  %8251 = vmatprep.mubr.f32.mxu0 %v9930_v47  ;;  %v5169_v63 = vsel %vm216_vm0, %v6985_v36, 0  ;;  %v5369_v47 = vsub.f32 %v10061_v49, %v10085_v13 }
 0x126   : > { %8271 = vmatprep.mubr.f32.mxu1 %v4480_v23  ;;  %v10105_v34 = vadd.f32 %v7790_v31, %v1431_v38  ;;  %v1424_v37 = vadd.f32 %v1423_v4, %v10024_v16  ;;  %8281 = vmatprep.subr.mxu0 %v9852_v39  ;;  %v10119_v23 = vand.u32 4294901760, %v10088_v55  ;;  %v10122_v16 = vsub.f32 %v6994_v56, %v10090_v28 }
 0x127   : > { %v7793_v45 = vpop.f32.mrf.mxu1  ;;  %8272 = vmatmul.mubr.f32.gmra.mxu1 %v4490_v53  ;;  %v7773_v21 = vpop.f32.mrf.mxu0  ;;  %8252 = vmatmul.mubr.f32.gmra.mxu0 %v9945_v27  ;;  %v6987_v53 = vld [vmem:[%s8692_s25 + $0x190] sm:$0xff]  ;;  %v10134_v8 = vand.u32 4294901760, %v5169_v63  ;;  %v5370_v59 = vand.u32 4294901760, %v5369_v47  ;;  %v10186_v38 = vand.u32 4294901760, %v5178_v0 }
 0x128   : > { %8301 = vmatprep.subr.mxu1 %v9790_v10  ;;  %v10125_v26 = vadd.f32 %v1551_v25, %v1424_v37  ;;  %v1445_v14 = vadd.f32 %v7773_v21, %v10033_v40  ;;  %8282 = vmatpush3.msra.mxu0 %v9852_v39  ;;  %v10152_v29 = vand.u32 4294901760, %v10122_v16  ;;  %v6991_v25 = vld [vmem:[%s8692_s25 + $0x1b0] sm:$0xff] }
 0x129   : > { %v1567_v27 = vpop.f32.mrf.mxu1  ;;  %8302 = vmatpush3.msra.mxu1 %v9790_v10  ;;  %v1437_v11 = vpop.f32.mrf.mxu0  ;;  %8254 = vmatprep.mubr.f32.mxu0 %v9960_v3  ;;  %v10144_v10 = vsub.f32 %v6993_v30, %v10111_v41  ;;  %v5175_v3 = vsel %vm216_vm0, %v6987_v53, 0  ;;  %v10166_v56 = vsub.f32 %v5169_v63, %v10134_v8  ;;  %v6992_v53 = vld [vmem:[%s8692_s25 + $0x1b8] sm:$0xff] }
 0x12a   : > { %8274 = vmatprep.mubr.f32.mxu1 %v4500_v42  ;;  %v10137_v20 = vadd.f32 %v7793_v45, %v1445_v14  ;;  %v1438_v40 = vadd.f32 %v1437_v11, %v10041_v44  ;;  %8283 = vmatprep.subr.mxu0 %v9877_v61  ;;  %v5376_v44 = vsub.f32 %v10088_v55, %v10119_v23  ;;  %v10168_v7 = vand.u32 4294901760, %v5175_v3 }
 0x12b   : > { %v7796_v39 = vpop.f32.mrf.mxu1  ;;  %8275 = vmatmul.mubr.f32.gmra.mxu1 %v4510_v19  ;;  %v7776_v42 = vpop.f32.mrf.mxu0  ;;  %8255 = vmatmul.mubr.f32.gmra.mxu0 %v9973_v60  ;;  %v6989_v19 = vld [vmem:[%s8692_s25 + $0x1a0] sm:$0xff]  ;;  %v10177_v31 = vand.u32 4294901760, %v10144_v10  ;;  %v5383_v36 = vsub.f32 %v10122_v16, %v10152_v29  ;;  %v5263_v63 = vand.u32 4294901760, %v10166_v56 }
 0x12c   : > { %8303 = vmatprep.subr.mxu1 %v9811_v51  ;;  %v10157_v52 = vadd.f32 %v1567_v27, %v1438_v40  ;;  %v1459_v58 = vadd.f32 %v7776_v42, %v10052_v46  ;;  %8284 = vmatpush3.msra.mxu0 %v9877_v61  ;;  %v5377_v30 = vand.u32 4294901760, %v5376_v44  ;;  %v10198_v21 = vsub.f32 %v5175_v3, %v10168_v7 }
 0x12d   : > { %v1583_v60 = vpop.f32.mrf.mxu1  ;;  %8304 = vmatpush3.msra.mxu1 %v9811_v51  ;;  %v1451_v6 = vpop.f32.mrf.mxu0  ;;  %8285 = vmatprep.mubr.f32.mxu0 %v9834_v62  ;;  %v5384_v5 = vand.u32 4294901760, %v5383_v36  ;;  %v5190_v44 = vsel %vm216_vm0, %v6992_v53, 0 }
 0x12e   : > { %8305 = vmatprep.mubr.f32.mxu1 %v9834_v62  ;;  %v10171_v46 = vadd.f32 %v7796_v39, %v1459_v58  ;;  %v1452_v61 = vadd.f32 %v1451_v6, %v10065_v17  ;;  %8317 = vmatprep.subr.mxu0 %v10039_v9  ;;  %v5181_v62 = vsel %vm216_vm0, %v6989_v19, 0  ;;  %v10184_v17 = vsub.f32 %v5172_v48, %v10154_v33 }
 0x12f   : > { %v7827_v51 = vpop.f32.mrf.mxu1  ;;  %8306 = vmatmul.mubr.f32.vlgmr.msra.gmra.mxu1 %v9854_v22  ;;  %v7807_v12 = vpop.f32.mrf.mxu0  ;;  %8286 = vmatmul.mubr.f32.vlgmr.msra.gmra.mxu0 %v9854_v22  ;;  %v5184_v22 = vsel %vm216_vm0, %v6990_v2, 0  ;;  %v10200_v47 = vand.u32 4294901760, %v5181_v62  ;;  %v5187_v48 = vsel %vm216_vm0, %v6991_v25, 0  ;;  %v10214_v39 = vsub.f32 %v5178_v0, %v10186_v38 }
 0x130   : > { %8337 = vmatprep.subr.mxu1 %v5370_v59  ;;  %v10189_v4 = vadd.f32 %v1583_v60, %v1452_v61  ;;  %v1681_v1 = vadd.f32 %v7807_v12, %v10076_v50  ;;  %8318 = vmatpush3.msra.mxu0 %v10039_v9  ;;  %v5273_v40 = vand.u32 4294901760, %v10184_v17  ;;  %v5264_v19 = vsub.f32 %v10166_v56, %v5263_v63 }
 0x131   : > { %v1791_v37 = vpop.f32.mrf.mxu1  ;;  %8338 = vmatpush3.msra.mxu1 %v5370_v59  ;;  %v1674_v45 = vpop.f32.mrf.mxu0  ;;  %8288 = vmatprep.mubr.f32.mxu0 %v9868_v15  ;;  %v5283_v58 = vand.u32 4294901760, %v10198_v21  ;;  %v10230_v60 = vsub.f32 %v5181_v62, %v10200_v47  ;;  %v5293_v62 = vand.u32 4294901760, %v10214_v39 }
 0x132   : > { %8308 = vmatprep.mubr.f32.mxu1 %v9868_v15  ;;  %v10203_v50 = vadd.f32 %v7827_v51, %v1681_v1  ;;  %v1675_v14 = vadd.f32 %v1674_v45, %v10096_v32  ;;  %8319 = vmatprep.subr.mxu0 %v10063_v43  ;;  %v5390_v15 = vsub.f32 %v10144_v10, %v10177_v31  ;;  %v10216_v32 = vand.u32 4294901760, %v5184_v22 }
 0x133   : > { %v7830_v27 = vpop.f32.mrf.mxu1  ;;  %8309 = vmatmul.mubr.f32.gmra.mxu1 %v9886_v35  ;;  %v7810_v11 = vpop.f32.mrf.mxu0  ;;  %8289 = vmatmul.mubr.f32.gmra.mxu0 %v9886_v35  ;;  %v5274_v51 = vsub.f32 %v10184_v17, %v5273_v40  ;;  %v5265_v1 = vand.u32 4294901760, %v5264_v19 }
 0x134   : > { %8339 = vmatprep.subr.mxu1 %v5377_v30  ;;  %v10218_v3 = vadd.f32 %v1791_v37, %v1675_v14  ;;  %v1693_v42 = vadd.f32 %v7810_v11, %v10105_v34  ;;  %8320 = vmatpush3.msra.mxu0 %v10063_v43  ;;  %v10232_v34 = vand.u32 4294901760, %v5187_v48  ;;  %v10245_v12 = vsub.f32 %v5184_v22, %v10216_v32 }
 0x135   : > { %v1803_v59 = vpop.f32.mrf.mxu1  ;;  %8340 = vmatpush3.msra.mxu1 %v5377_v30  ;;  %v1686_v35 = vpop.f32.mrf.mxu0  ;;  %8291 = vmatprep.mubr.f32.mxu0 %v9900_v57  ;;  %v5284_v37 = vsub.f32 %v10198_v21, %v5283_v58  ;;  %v5303_v22 = vand.u32 4294901760, %v10230_v60 }
 0x136   : > { %8311 = vmatprep.mubr.f32.mxu1 %v9900_v57  ;;  %v10234_v0 = vadd.f32 %v7830_v27, %v1693_v42  ;;  %v1687_v6 = vadd.f32 %v1686_v35, %v10125_v26  ;;  %8321 = vmatprep.subr.mxu0 %v10090_v28  ;;  %v5391_v57 = vand.u32 4294901760, %v5390_v15  ;;  %v10247_v26 = vand.u32 4294901760, %v5190_v44 }
 0x137   : > { %v7833_v2 = vpop.f32.mrf.mxu1  ;;  %8312 = vmatmul.mubr.f32.gmra.mxu1 %v9916_v54  ;;  %v7813_v61 = vpop.f32.mrf.mxu0  ;;  %8292 = vmatmul.mubr.f32.gmra.mxu0 %v9916_v54  ;;  %v10260_v45 = vsub.f32 %v5187_v48, %v10232_v34  ;;  %v5275_v27 = vand.u32 4294901760, %v5274_v51  ;;  %v5294_v15 = vsub.f32 %v10214_v39, %v5293_v62  ;;  %v5313_v48 = vand.u32 4294901760, %v10245_v12 }
 0x138   : > { %8341 = vmatprep.subr.mxu1 %v5384_v5  ;;  %v10249_v30 = vadd.f32 %v1803_v59, %v1687_v6  ;;  %v1705_v36 = vadd.f32 %v7813_v61, %v10137_v20  ;;  %8322 = vmatpush3.msra.mxu0 %v10090_v28  ;;  %v10273_v11 = vsub.f32 %v5190_v44, %v10247_v26  ;;  %v5285_v59 = vand.u32 4294901760, %v5284_v37 }
 0x139   : > { %v1815_v25 = vpop.f32.mrf.mxu1  ;;  %8342 = vmatpush3.msra.mxu1 %v5384_v5  ;;  %v1698_v54 = vpop.f32.mrf.mxu0  ;;  %8294 = vmatprep.mubr.f32.mxu0 %v9932_v24  ;;  %v5304_v35 = vsub.f32 %v10230_v60, %v5303_v22  ;;  %v5323_v44 = vand.u32 4294901760, %v10260_v45  ;;  %v5314_v61 = vsub.f32 %v10245_v12, %v5313_v48 }
 0x13a   : > { %8314 = vmatprep.mubr.f32.mxu1 %v9932_v24  ;;  %v10262_v20 = vadd.f32 %v7833_v2, %v1705_v36  ;;  %v1699_v53 = vadd.f32 %v1698_v54, %v10157_v52  ;;  %8323 = vmatprep.subr.mxu0 %v10111_v41  ;;  %v10863_v51 = vand.u32 4294901760, %v10273_v11 }
 0x13b   : > { %v7836_v14 = vpop.f32.mrf.mxu1  ;;  %8315 = vmatmul.mubr.f32.gmra.mxu1 %v9947_v18  ;;  %v7816_v24 = vpop.f32.mrf.mxu0  ;;  %8295 = vmatmul.mubr.f32.gmra.mxu0 %v9947_v18  ;;  %v5324_v37 = vsub.f32 %v10260_v45, %v5323_v44 }
 0x13c   : > { %8343 = vmatprep.subr.mxu1 %v5391_v57  ;;  %v10275_v52 = vadd.f32 %v1815_v25, %v1699_v53  ;;  %v1717_v5 = vadd.f32 %v7816_v24, %v10171_v46  ;;  %8324 = vmatpush3.msra.mxu0 %v10111_v41  ;;  %v5315_v24 = vand.u32 4294901760, %v5314_v61 }
 0x13d   : > { %v1827_v42 = vpop.f32.mrf.mxu1  ;;  %8344 = vmatpush3.msra.mxu1 %v5391_v57  ;;  %v1710_v18 = vpop.f32.mrf.mxu0  ;;  %8325 = vmatprep.mubr.f32.mxu0 %v5265_v1  ;;  %v5295_v57 = vand.u32 4294901760, %v5294_v15  ;;  %v5305_v1 = vand.u32 4294901760, %v5304_v35 }
 0x13e   : > { %8345 = vmatprep.mubr.f32.mxu1 %v10134_v8  ;;  %v10284_v19 = vadd.f32 %v7836_v14, %v1717_v5  ;;  %v1711_v6 = vadd.f32 %v1710_v18, %v10189_v4  ;;  %8357 = vmatprep.subr.mxu0 %v10061_v49  ;;  %v5325_v18 = vand.u32 4294901760, %v5324_v37  ;;  %v7007_v37 = vld [vmem:[%s10861_s1 + $0x70] sm:$0xff] }
 0x13f   : > { %v7867_v46 = vpop.f32.mrf.mxu1  ;;  %8346 = vmatmul.mubr.f32.vlgmr.msra.gmra.mxu1 %v10154_v33  ;;  %v7847_v2 = vpop.f32.mrf.mxu0  ;;  %8326 = vmatmul.mubr.f32.vlgmr.msra.gmra.mxu0 %v5275_v27  ;;  %v5334_v27 = vsub.f32 %v10273_v11, %v10863_v51 }
 0x140   : > { %8377 = vmatprep.subr.mxu1 %v10039_v9  ;;  %v10294_v36 = vadd.f32 %v1827_v42, %v1711_v6  ;;  %v10296_v25 = vadd.f32 %v7867_v46, %v7847_v2  ;;  %8358 = vmatpush3.msra.mxu0 %v10061_v49 }
 0x141   : > { %v2111_v4 = vpop.f32.mrf.mxu1  ;;  %8378 = vmatpush3.msra.mxu1 %v10039_v9  ;;  %v1950_v54 = vpop.f32.mrf.mxu0  ;;  %8328 = vmatprep.mubr.f32.mxu0 %v5285_v59 }
 0x142   : > { %10878 = vst [vmem:[#allocation2_spill] sm:$0xff] %v10294_v36  ;;  %8348 = vmatprep.mubr.f32.mxu1 %v10168_v7  ;;  %v10304_v53 = vadd.f32 %v2111_v4, %v1950_v54  ;;  %8359 = vmatprep.subr.mxu0 %v10088_v55 }
 0x143   : > { %v7870_v14 = vpop.f32.mrf.mxu1  ;;  %8349 = vmatmul.mubr.f32.gmra.mxu1 %v10186_v38  ;;  %v7850_v49 = vpop.f32.mrf.mxu0  ;;  %8329 = vmatmul.mubr.f32.gmra.mxu0 %v5295_v57  ;;  %v7008_v57 = vld [vmem:[%s10861_s1 + $0x78] sm:$0xff] }
 0x144   : > { %8379 = vmatprep.subr.mxu1 %v10063_v43  ;;  %v10312_v15 = vadd.f32 %v7870_v14, %v7850_v49  ;;  %8360 = vmatpush3.msra.mxu0 %v10088_v55  ;;  %v5335_v55 = vand.u32 4294901760, %v5334_v27  ;;  %v7005_v27 = vld [vmem:[%s10861_s1 + $0x60] sm:$0xff] }
 0x145   : > { %v2123_v5 = vpop.f32.mrf.mxu1  ;;  %8380 = vmatpush3.msra.mxu1 %v10063_v43  ;;  %v1970_v42 = vpop.f32.mrf.mxu0  ;;  %8331 = vmatprep.mubr.f32.mxu0 %v5305_v1 }
 0x146   : > { %8351 = vmatprep.mubr.f32.mxu1 %v10200_v47  ;;  %v10317_v59 = vadd.f32 %v2123_v5, %v1970_v42  ;;  %8361 = vmatprep.subr.mxu0 %v10122_v16 }
 0x147   : > { %v7873_v35 = vpop.f32.mrf.mxu1  ;;  %8352 = vmatmul.mubr.f32.gmra.mxu1 %v10216_v32  ;;  %v7853_v6 = vpop.f32.mrf.mxu0  ;;  %8332 = vmatmul.mubr.f32.gmra.mxu0 %v5315_v24  ;;  %v7006_v24 = vld [vmem:[%s10861_s1 + $0x68] sm:$0xff] }
 0x148   : > { %8381 = vmatprep.subr.mxu1 %v10090_v28  ;;  %v10322_v46 = vadd.f32 %v7873_v35, %v7853_v6  ;;  %8362 = vmatpush3.msra.mxu0 %v10122_v16  ;;  %v10335_v16 = vand.u32 4294901760, %v7008_v57  ;;  %v6997_v35 = vld [vmem:[%s8692_s25 + $0x1c0] sm:$0xff] }
 0x149   : > { %v2135_v2 = vpop.f32.mrf.mxu1  ;;  %8382 = vmatpush3.msra.mxu1 %v10090_v28  ;;  %v1990_v61 = vpop.f32.mrf.mxu0  ;;  %8334 = vmatprep.mubr.f32.mxu0 %v5325_v18  ;;  %v10360_v18 = vand.u32 4294901760, %v7007_v37 }
 0x14a   : > { %8354 = vmatprep.mubr.f32.mxu1 %v10232_v34  ;;  %v10330_v4 = vadd.f32 %v2135_v2, %v1990_v61  ;;  %8363 = vmatprep.subr.mxu0 %v10144_v10  ;;  %v6998_v2 = vld [vmem:[%s8692_s25 + $0x1c8] sm:$0xff] }
 0x14b   : > { %v7876_v54 = vpop.f32.mrf.mxu1  ;;  %8355 = vmatmul.mubr.f32.gmra.mxu1 %v10247_v26  ;;  %v7856_v1 = vpop.f32.mrf.mxu0  ;;  %8335 = vmatmul.mubr.f32.gmra.mxu0 %v5335_v55  ;;  %v10370_v55 = vand.u32 4294901760, %v7005_v27 }
 0x14c   : > { %8383 = vmatprep.subr.mxu1 %v10111_v41  ;;  %v10340_v14 = vadd.f32 %v7876_v54, %v7856_v1  ;;  %8364 = vmatpush3.msra.mxu0 %v10144_v10 }
 0x14d   : > { %v2147_v49 = vpop.f32.mrf.mxu1  ;;  %8384 = vmatpush3.msra.mxu1 %v10111_v41  ;;  %v2010_v5 = vpop.f32.mrf.mxu0  ;;  %8365 = vmatprep.mubr.f32.mxu0 %v10166_v56  ;;  %v10366_v56 = vsub.f32 %v7008_v57, %v10335_v16  ;;  %v10399_v1 = vsub.f32 %v7005_v27, %v10370_v55 }
 0x14e   : > { %8385 = vmatprep.mubr.f32.mxu1 %v5263_v63  ;;  %v10353_v42 = vadd.f32 %v2147_v49, %v2010_v5  ;;  %8397 = vmatprep.subr.mxu0 %v10085_v13  ;;  %v10368_v63 = vand.u32 4294901760, %v7006_v24 }
 0x14f   : > { %v10356_v10 = vpop.f32.mrf.mxu1  ;;  %8386 = vmatmul.mubr.f32.vlgmr.msra.gmra.mxu1 %v5273_v40  ;;  %v7887_v6 = vpop.f32.mrf.mxu0  ;;  %8366 = vmatmul.mubr.f32.vlgmr.msra.gmra.mxu0 %v10184_v17  ;;  %v6000_v17 = vsel %vm216_vm0, %v6997_v35, 0  ;;  %10882 = vst [vmem:[#allocation6_spill] sm:$0xff] %v10399_v1  ;;  %v10431_v5 = vand.u32 4294901760, %v10399_v1  ;;  %v7000_v35 = vld [vmem:[%s8692_s25 + $0x1d8] sm:$0xff] }
 0x150   : > { %8417 = vmatprep.subr.mxu1 %v10039_v9  ;;  %8398 = vmatpush3.msra.mxu0 %v10085_v13  ;;  %v10387_v13 = vsub.f32 %v7007_v37, %v10360_v18  ;;  %v10405_v37 = vand.u32 4294901760, %v6000_v17  ;;  %v6009_v36 = vsel %vm216_vm0, %v7000_v35, 0 }
 0x151   : > { %v10374_v61 = vpop.f32.mrf.mxu1  ;;  %8418 = vmatpush3.msra.mxu1 %v10039_v9  ;;  %v2233_v40 = vpop.f32.mrf.mxu0  ;;  %8368 = vmatprep.mubr.f32.mxu0 %v10198_v21  ;;  %v6003_v9 = vsel %vm216_vm0, %v6998_v2, 0  ;;  %v10393_v21 = vand.u32 4294901760, %v10366_v56  ;;  %10885 = vst [vmem:[#allocation9_spill] sm:$0xff] %v10431_v5 }
 0x152   : > { %8388 = vmatprep.mubr.f32.mxu1 %v5283_v58  ;;  %8399 = vmatprep.subr.mxu0 %v10119_v23  ;;  %10879 = vst [vmem:[#allocation3_spill] sm:$0xff] %v10387_v13  ;;  %v10396_v58 = vsub.f32 %v7006_v24, %v10368_v63  ;;  %v10410_v49 = vand.u32 4294901760, %v6003_v9  ;;  %v6999_v24 = vld [vmem:[%s8692_s25 + $0x1d0] sm:$0xff] }
 0x153   : > { %v10382_v57 = vpop.f32.mrf.mxu1  ;;  %8389 = vmatmul.mubr.f32.gmra.mxu1 %v5293_v62  ;;  %v7890_v54 = vpop.f32.mrf.mxu0  ;;  %8369 = vmatmul.mubr.f32.gmra.mxu0 %v10214_v39  ;;  %10880 = vst [vmem:[#allocation4_spill] sm:$0xff] %v10393_v21  ;;  %v6006_v2 = vsel %vm216_vm0, %v6999_v24, 0 }
 0x154   : > { %8419 = vmatprep.subr.mxu1 %v10063_v43  ;;  %10881 = vst [vmem:[#allocation5_spill] sm:$0xff] %v10396_v58  ;;  %8400 = vmatpush3.msra.mxu0 %v10119_v23 }
 0x155   : > { %v10402_v62 = vpop.f32.mrf.mxu1  ;;  %8420 = vmatpush3.msra.mxu1 %v10063_v43  ;;  %v2247_v39 = vpop.f32.mrf.mxu0  ;;  %8371 = vmatprep.mubr.f32.mxu0 %v10230_v60  ;;  %v10419_v43 = vand.u32 4294901760, %v10387_v13  ;;  %v6200_v60 = vsub.f32 %v10366_v56, %v10393_v21  ;;  %v10448_v21 = vsub.f32 %v6003_v9, %v10410_v49  ;;  %v10467_v9 = vand.u32 4294901760, %v6006_v2 }
 0x156   : > { %8391 = vmatprep.mubr.f32.mxu1 %v5303_v22  ;;  %8401 = vmatprep.subr.mxu0 %v10152_v29  ;;  %v10428_v22 = vand.u32 4294901760, %v10396_v58 }
 0x157   : > { %v10414_v27 = vpop.f32.mrf.mxu1  ;;  %8392 = vmatmul.mubr.f32.gmra.mxu1 %v5313_v48  ;;  %10883 = vst [vmem:[#allocation7_spill] sm:$0xff] %v10419_v43  ;;  %v10421_v23 = vpop.f32.mrf.mxu0  ;;  %8372 = vmatmul.mubr.f32.gmra.mxu0 %v10245_v12  ;;  %v10439_v12 = vsub.f32 %v6000_v17, %v10405_v37  ;;  %v10886_v17 = vand.u32 4294901760, %v10273_v11  ;;  %v6207_v24 = vsub.f32 %v10387_v13, %v10419_v43 }
 0x158   : > { %8421 = vmatprep.subr.mxu1 %v10090_v28  ;;  %10884 = vst [vmem:[#allocation8_spill] sm:$0xff] %v10428_v22  ;;  %8402 = vmatpush3.msra.mxu0 %v10152_v29  ;;  %v2241_v29 = vadd.f32 %v7887_v6, %v10296_v25  ;;  %v6214_v25 = vsub.f32 %v10396_v58, %v10428_v22  ;;  %v10481_v22 = vand.u32 4294901760, %v6009_v36 }
 0x159   : > { %v10435_v48 = vpop.f32.mrf.mxu1  ;;  %8422 = vmatpush3.msra.mxu1 %v10090_v28  ;;  %v10442_v51 = vpop.f32.mrf.mxu0  ;;  %8374 = vmatprep.mubr.f32.mxu0 %v10260_v45  ;;  %v6221_v6 = vsub.f32 %v10399_v1, %v10431_v5  ;;  %v2234_v43 = vadd.f32 %v2233_v40, %v10304_v53  ;;  %v7002_v53 = vld [vmem:[%s8692_s25 + $0x1e8] sm:$0xff]  ;;  %v2255_v40 = vadd.f32 %v7890_v54, %v10312_v15 }
 0x15a   : > { %8394 = vmatprep.mubr.f32.mxu1 %v5323_v44  ;;  %8403 = vmatprep.subr.mxu0 %v10177_v31  ;;  %v6201_v44 = vand.u32 4294901760, %v6200_v60  ;;  %v10491_v5 = vand.u32 4294901760, %v6214_v25  ;;  %v10496_v15 = vsub.f32 %v6006_v2, %v10467_v9  ;;  %v2269_v2 = vadd.f32 %v10421_v23, %v10322_v46 }
 0x15b   : > { %v10452_v28 = vpop.f32.mrf.mxu1  ;;  %8395 = vmatmul.mubr.f32.gmra.mxu1 %v10886_v17  ;;  %v10459_v45 = vpop.f32.mrf.mxu0  ;;  %8375 = vmatmul.mubr.f32.gmra.mxu0 %v10273_v11  ;;  %v7001_v17 = vld [vmem:[%s8692_s25 + $0x1e0] sm:$0xff]  ;;  %v6208_v11 = vand.u32 4294901760, %v6207_v24  ;;  %v10493_v13 = vand.u32 4294901760, %v6221_v6  ;;  %v2360_v54 = vadd.f32 %v10374_v61, %v2234_v43  ;;  %v10888_v61 = vand.u32 4294901760, %v10448_v21  ;;  %v7004_v6 = vld [vmem:[%s8692_s25 + $0x1f8] sm:$0xff] }
 0x15c   : > { %8423 = vmatprep.subr.mxu1 %v10111_v41  ;;  %8404 = vmatpush3.msra.mxu0 %v10177_v31  ;;  %v2368_v31 = vadd.f32 %v10356_v10, %v2241_v29  ;;  %v6012_v1 = vsel %vm216_vm0, %v7001_v17, 0  ;;  %v7003_v10 = vld [vmem:[%s8692_s25 + $0x1f0] sm:$0xff]  ;;  %v10517_v43 = vsub.f32 %v6009_v36, %v10481_v22  ;;  %v2384_v17 = vadd.f32 %v10382_v57, %v2255_v40  ;;  %s7020_s25 = sshll.u32 %s10906_s9, 7 }
 0x15d   : > { %v10472_v35 = vpop.f32.mrf.mxu1  ;;  %8424 = vmatpush3.msra.mxu1 %v10111_v41  ;;  %v10476_v60 = vpop.f32.mrf.mxu0  ;;  %8405 = vmatprep.mubr.f32.mxu0 %v10134_v8  ;;  %v2262_v36 = vadd.f32 %v10442_v51, %v10330_v4  ;;  %v6114_v57 = vand.u32 4294901760, %v10496_v15  ;;  %v2400_v51 = vadd.f32 %v10414_v27, %v2269_v2  ;;  %s10761_s13 = scalar_lea.vmem %s10862_s2, %s7020_s25 }
 0x15e   : > { %8425 = vmatprep.mubr.f32.mxu1 %v10134_v8  ;;  %8437 = vmatprep.subr.mxu0 %v10335_v16  ;;  %v2248_v8 = vadd.f32 %v2247_v39, %v10317_v59  ;;  %v10887_v59 = vand.u32 4294901760, %v10439_v12  ;;  %v6015_v39 = vsel %vm216_vm0, %v7002_v53, 0 }
 0x15f   : > { %v7947_v41 = vpop.f32.mrf.mxu1  ;;  %8426 = vmatmul.mubr.f32.vlgmr.msra.gmra.mxu1 %v10154_v33  ;;  %v7927_v58 = vpop.f32.mrf.mxu0  ;;  %8406 = vmatmul.mubr.f32.vlgmr.msra.gmra.mxu0 %v10154_v33  ;;  %v10531_v40 = vand.u32 4294901760, %v6015_v39 }
 0x160   : > { %8457 = vmatprep.subr.mxu1 %v6201_v44  ;;  %v2505_v29 = vadd.f32 %v7927_v58, %v2368_v31  ;;  %8438 = vmatpush3.msra.mxu0 %v10335_v16  ;;  %v10504_v33 = vsub.f32 %v10439_v12, %v10887_v59  ;;  %v10514_v58 = vsub.f32 %v10448_v21, %v10888_v61 }
 0x161   : > { %v2615_v24 = vpop.f32.mrf.mxu1  ;;  %8458 = vmatpush3.msra.mxu1 %v6201_v44  ;;  %v2498_v25 = vpop.f32.mrf.mxu0  ;;  %8408 = vmatprep.mubr.f32.mxu0 %v10168_v7  ;;  %v10519_v44 = vand.u32 4294901760, %v6012_v1  ;;  %v2376_v31 = vadd.f32 %v10402_v62, %v2248_v8  ;;  %v6021_v62 = vsel %vm216_vm0, %v7004_v6, 0 }
 0x162   : > { %8428 = vmatprep.mubr.f32.mxu1 %v10168_v7  ;;  %v2622_v53 = vadd.f32 %v7947_v41, %v2505_v29  ;;  %v2499_v46 = vadd.f32 %v2498_v25, %v2360_v54  ;;  %8439 = vmatprep.subr.mxu0 %v10360_v18  ;;  %v6018_v7 = vsel %vm216_vm0, %v7003_v10, 0  ;;  %v10562_v2 = vand.u32 4294901760, %v6021_v62 }
 0x163   : > { %v7950_v23 = vpop.f32.mrf.mxu1  ;;  %8429 = vmatmul.mubr.f32.gmra.mxu1 %v10186_v38  ;;  %v7930_v59 = vpop.f32.mrf.mxu0  ;;  %8409 = vmatmul.mubr.f32.gmra.mxu0 %v10186_v38  ;;  %v2283_v38 = vadd.f32 %v10459_v45, %v10340_v14  ;;  %v10546_v8 = vand.u32 4294901760, %v6018_v7  ;;  %v6124_v14 = vand.u32 4294901760, %v10517_v43  ;;  %v2392_v45 = vadd.f32 %v10435_v48, %v2262_v36 }
 0x164   : > { %8459 = vmatprep.subr.mxu1 %v6208_v11  ;;  %v10534_v41 = vadd.f32 %v2622_v53, %v10203_v50  ;;  %v2616_v54 = vadd.f32 %v2615_v24, %v2499_v46  ;;  %v2517_v29 = vadd.f32 %v7930_v59, %v2384_v17  ;;  %8440 = vmatpush3.msra.mxu0 %v10360_v18 }
 0x165   : > { %v2627_v10 = vpop.f32.mrf.mxu1  ;;  %8460 = vmatpush3.msra.mxu1 %v6208_v11  ;;  %v2510_v4 = vpop.f32.mrf.mxu0  ;;  %8411 = vmatprep.mubr.f32.mxu0 %v10200_v47  ;;  %v10544_v50 = vsub.f32 %v6012_v1, %v10519_v44  ;;  %v10578_v53 = vsub.f32 %v6018_v7, %v10546_v8  ;;  %v10594_v36 = vsub.f32 %v6021_v62, %v10562_v2 }
 0x166   : > { %8431 = vmatprep.mubr.f32.mxu1 %v10200_v47  ;;  %v10549_v24 = vadd.f32 %v2616_v54, %v10218_v3  ;;  %v2634_v11 = vadd.f32 %v7950_v23, %v2517_v29  ;;  %v2511_v25 = vadd.f32 %v2510_v4, %v2376_v31  ;;  %8441 = vmatprep.subr.mxu0 %v10368_v63 }
 0x167   : > { %v7953_v27 = vpop.f32.mrf.mxu1  ;;  %8432 = vmatmul.mubr.f32.gmra.mxu1 %v10216_v32  ;;  %v2276_v47 = vadd.f32 %v10476_v60, %v10353_v42  ;;  %v7933_v1 = vpop.f32.mrf.mxu0  ;;  %8412 = vmatmul.mubr.f32.gmra.mxu0 %v10216_v32  ;;  %v10560_v3 = vsub.f32 %v6015_v39, %v10531_v40  ;;  %v6096_v42 = vand.u32 4294901760, %v10504_v33  ;;  %v2416_v32 = vadd.f32 %v10452_v28, %v2283_v38 }
 0x168   : > { %8461 = vmatprep.subr.mxu1 %v10491_v5  ;;  %v10565_v61 = vadd.f32 %v2634_v11, %v10234_v0  ;;  %v2628_v6 = vadd.f32 %v2627_v10, %v2511_v25  ;;  %v2529_v17 = vadd.f32 %v7933_v1, %v2400_v51  ;;  %8442 = vmatpush3.msra.mxu0 %v10368_v63  ;;  %v6134_v39 = vand.u32 4294901760, %v10544_v50 }
 0x169   : > { %v2639_v48 = vpop.f32.mrf.mxu1  ;;  %8462 = vmatpush3.msra.mxu1 %v10491_v5  ;;  %v2522_v60 = vpop.f32.mrf.mxu0  ;;  %8414 = vmatprep.mubr.f32.mxu0 %v10232_v34  ;;  %v6115_v0 = vsub.f32 %v10496_v15, %v6114_v57  ;;  %v2408_v23 = vadd.f32 %v10472_v35, %v2276_v47  ;;  %v6144_v7 = vand.u32 4294901760, %v10560_v3  ;;  %v6154_v62 = vand.u32 4294901760, %v10578_v53 }
 0x16a   : > { %8434 = vmatprep.mubr.f32.mxu1 %v10232_v34  ;;  %v10581_v5 = vadd.f32 %v2628_v6, %v10249_v30  ;;  %v2646_v33 = vadd.f32 %v7953_v27, %v2529_v17  ;;  %v2523_v46 = vadd.f32 %v2522_v60, %v2392_v45  ;;  %8443 = vmatprep.subr.mxu0 %v10370_v55  ;;  %v6106_v34 = vand.u32 4294901760, %v10514_v58 }
 0x16b   : > { %v7956_v28 = vpop.f32.mrf.mxu1  ;;  %8435 = vmatmul.mubr.f32.gmra.mxu1 %v10247_v26  ;;  %v7936_v31 = vpop.f32.mrf.mxu0  ;;  %8415 = vmatmul.mubr.f32.gmra.mxu0 %v10247_v26  ;;  %v6125_v30 = vsub.f32 %v10517_v43, %v6124_v14  ;;  %v6116_v29 = vand.u32 4294901760, %v6115_v0  ;;  %v6135_v10 = vsub.f32 %v10544_v50, %v6134_v39  ;;  %v6145_v25 = vsub.f32 %v10560_v3, %v6144_v7 }
 0x16c   : > { %8463 = vmatprep.subr.mxu1 %v10493_v13  ;;  %v10597_v59 = vadd.f32 %v2646_v33, %v10262_v20  ;;  %v2640_v58 = vadd.f32 %v2639_v48, %v2523_v46  ;;  %v2541_v54 = vadd.f32 %v7936_v31, %v2416_v32  ;;  %8444 = vmatpush3.msra.mxu0 %v10370_v55  ;;  %v10889_v48 = vld [vmem:[#allocation2_spill] sm:$0xff] }
 0x16d   : > { %v2651_v35 = vpop.f32.mrf.mxu1  ;;  %8464 = vmatpush3.msra.mxu1 %v10493_v13  ;;  %v2534_v26 = vpop.f32.mrf.mxu0  ;;  %8445 = vmatprep.mubr.f32.mxu0 %v6096_v42  ;;  %v6126_v11 = vand.u32 4294901760, %v6125_v30  ;;  %v6136_v6 = vand.u32 4294901760, %v6135_v10  ;;  %v6155_v17 = vsub.f32 %v10578_v53, %v6154_v62  ;;  %v10890_v42 = vld [vmem:[#allocation3_spill] sm:$0xff]  ;;  %v6146_v60 = vand.u32 4294901760, %v6145_v25 }
 0x16e   : > { %8465 = vmatprep.mubr.f32.mxu1 %v10405_v37  ;;  %v10607_v20 = vadd.f32 %v2640_v58, %v10275_v52  ;;  %v2658_v51 = vadd.f32 %v7956_v28, %v2541_v54  ;;  %v2535_v38 = vadd.f32 %v2534_v26, %v2408_v23  ;;  %8477 = vmatprep.subr.mxu0 %v10366_v56  ;;  %v6164_v52 = vand.u32 4294901760, %v10594_v36 }
 0x16f   : > { %v10610_v4 = vpop.f32.mrf.mxu1  ;;  %8466 = vmatmul.mubr.f32.vlgmr.msra.gmra.mxu1 %v10410_v49  ;;  %v10613_v13 = vpop.f32.mrf.mxu0  ;;  %8446 = vmatmul.mubr.f32.vlgmr.msra.gmra.mxu0 %v6106_v34  ;;  %v6156_v28 = vand.u32 4294901760, %v6155_v17  ;;  %v10891_v34 = vld [vmem:[#allocation5_spill] sm:$0xff] }
 0x170   : > { %8497 = vmatprep.subr.mxu1 %v10335_v16  ;;  %v10621_v27 = vadd.f32 %v2658_v51, %v10284_v19  ;;  %v2652_v45 = vadd.f32 %v2651_v35, %v2535_v38  ;;  %8478 = vmatpush3.msra.mxu0 %v10366_v56  ;;  %v6165_v0 = vsub.f32 %v10594_v36, %v6164_v52  ;;  %v10892_v35 = vld [vmem:[#allocation6_spill] sm:$0xff]  ;;  %v10893_v38 = vand.u32 4294901760, %v10439_v12 }
 0x171   : > { %v10624_v47 = vpop.f32.mrf.mxu1  ;;  %8498 = vmatpush3.msra.mxu1 %v10335_v16  ;;  %v10627_v1 = vpop.f32.mrf.mxu0  ;;  %8448 = vmatprep.mubr.f32.mxu0 %v6116_v29 }
 0x172   : > { %8468 = vmatprep.mubr.f32.mxu1 %v10467_v9  ;;  %v10634_v19 = vadd.f32 %v2652_v45, %v10889_v48  ;;  %8479 = vmatprep.subr.mxu0 %v10890_v42  ;;  %v6166_v30 = vand.u32 4294901760, %v6165_v0  ;;  %v10895_v45 = vand.u32 4294901760, %v10448_v21 }
 0x173   : > { %v10637_v56 = vpop.f32.mrf.mxu1  ;;  %8469 = vmatmul.mubr.f32.gmra.mxu1 %v10481_v22  ;;  %v10640_v32 = vpop.f32.mrf.mxu0  ;;  %8449 = vmatmul.mubr.f32.gmra.mxu0 %v6126_v11  ;;  %v10894_v11 = vld [vmem:[#allocation4_spill] sm:$0xff] }
 0x174   : > { %8499 = vmatprep.subr.mxu1 %v10360_v18  ;;  %8480 = vmatpush3.msra.mxu0 %v10890_v42 }
 0x175   : > { %v10647_v33 = vpop.f32.mrf.mxu1  ;;  %8500 = vmatpush3.msra.mxu1 %v10360_v18  ;;  %v10650_v46 = vpop.f32.mrf.mxu0  ;;  %8451 = vmatprep.mubr.f32.mxu0 %v6136_v6 }
 0x176   : > { %8471 = vmatprep.mubr.f32.mxu1 %v10519_v44  ;;  %8481 = vmatprep.subr.mxu0 %v10891_v34 }
 0x177   : > { %v10654_v23 = vpop.f32.mrf.mxu1  ;;  %8472 = vmatmul.mubr.f32.gmra.mxu1 %v10531_v40  ;;  %v10657_v31 = vpop.f32.mrf.mxu0  ;;  %8452 = vmatmul.mubr.f32.gmra.mxu0 %v6146_v60 }
 0x178   : > { %8501 = vmatprep.subr.mxu1 %v10368_v63  ;;  %8482 = vmatpush3.msra.mxu0 %v10891_v34 }
 0x179   : > { %v10661_v58 = vpop.f32.mrf.mxu1  ;;  %8502 = vmatpush3.msra.mxu1 %v10368_v63  ;;  %v10664_v54 = vpop.f32.mrf.mxu0  ;;  %8454 = vmatprep.mubr.f32.mxu0 %v6156_v28 }
 0x17a   : > { %8474 = vmatprep.mubr.f32.mxu1 %v10546_v8  ;;  %8483 = vmatprep.subr.mxu0 %v10892_v35 }
 0x17b   : > { %v10668_v26 = vpop.f32.mrf.mxu1  ;;  %8475 = vmatmul.mubr.f32.gmra.mxu1 %v10562_v2  ;;  %v10671_v29 = vpop.f32.mrf.mxu0  ;;  %8455 = vmatmul.mubr.f32.gmra.mxu0 %v6166_v30 }
 0x17c   : > { %8503 = vmatprep.subr.mxu1 %v10370_v55  ;;  %8484 = vmatpush3.msra.mxu0 %v10892_v35 }
 0x17d   : > { %v10675_v10 = vpop.f32.mrf.mxu1  ;;  %8504 = vmatpush3.msra.mxu1 %v10370_v55  ;;  %v10678_v51 = vpop.f32.mrf.mxu0  ;;  %8485 = vmatprep.mubr.f32.mxu0 %v10439_v12  ;;  %v10896_v12 = vld [vmem:[#allocation7_spill] sm:$0xff] }
 0x17e   : > { %8505 = vmatprep.mubr.f32.mxu1 %v10893_v38  ;;  %8517 = vmatprep.subr.mxu0 %v10894_v11 }
 0x17f   : > { %v8027_v25 = vpop.f32.mrf.mxu1  ;;  %8506 = vmatmul.mubr.f32.vlgmr.msra.gmra.mxu1 %v10895_v45  ;;  %v8007_v6 = vpop.f32.mrf.mxu0  ;;  %8486 = vmatmul.mubr.f32.vlgmr.msra.gmra.mxu0 %v10448_v21 }
 0x180   : > { %8537 = vmatprep.subr.mxu1 %v10335_v16  ;;  %8518 = vmatpush3.msra.mxu0 %v10894_v11 }
 0x181   : > { %v3191_v17 = vpop.f32.mrf.mxu1  ;;  %8538 = vmatpush3.msra.mxu1 %v10335_v16  ;;  %v3065_v48 = vpop.f32.mrf.mxu0  ;;  %8488 = vmatprep.mubr.f32.mxu0 %v10496_v15 }
 0x182   : > { %8508 = vmatprep.mubr.f32.mxu1 %v6114_v57  ;;  %8519 = vmatprep.subr.mxu0 %v10896_v12  ;;  %v10897_v57 = vld [vmem:[#allocation8_spill] sm:$0xff] }
 0x183   : > { %v8030_v42 = vpop.f32.mrf.mxu1  ;;  %8509 = vmatmul.mubr.f32.gmra.mxu1 %v6124_v14  ;;  %v8010_v21 = vpop.f32.mrf.mxu0  ;;  %8489 = vmatmul.mubr.f32.gmra.mxu0 %v10517_v43 }
 0x184   : > { %8539 = vmatprep.subr.mxu1 %v10360_v18  ;;  %8520 = vmatpush3.msra.mxu0 %v10896_v12 }
 0x185   : > { %v10699_v16 = vpop.f32.mrf.mxu1  ;;  %8540 = vmatpush3.msra.mxu1 %v10360_v18  ;;  %v3079_v15 = vpop.f32.mrf.mxu0  ;;  %8491 = vmatprep.mubr.f32.mxu0 %v10544_v50  ;;  %v2950_v18 = vadd.f32 %v10610_v4, %v10613_v13 }
 0x186   : > { %8511 = vmatprep.mubr.f32.mxu1 %v6134_v39  ;;  %8521 = vmatprep.subr.mxu0 %v10897_v57 }
 0x187   : > { %v10706_v14 = vpop.f32.mrf.mxu1  ;;  %8512 = vmatmul.mubr.f32.gmra.mxu1 %v6144_v7  ;;  %v8013_v43 = vpop.f32.mrf.mxu0  ;;  %8492 = vmatmul.mubr.f32.gmra.mxu0 %v10560_v3  ;;  %v2944_v3 = vadd.f32 %v10624_v47, %v10627_v1  ;;  %v3073_v39 = vadd.f32 %v8007_v6, %v2950_v18  ;;  %v10898_v7 = vld [vmem:[#allocation9_spill] sm:$0xff] }
 0x188   : > { %8541 = vmatprep.subr.mxu1 %v10368_v63  ;;  %8522 = vmatpush3.msra.mxu0 %v10897_v57 }
 0x189   : > { %v10715_v60 = vpop.f32.mrf.mxu1  ;;  %8542 = vmatpush3.msra.mxu1 %v10368_v63  ;;  %v3093_v50 = vpop.f32.mrf.mxu0  ;;  %8494 = vmatprep.mubr.f32.mxu0 %v10578_v53  ;;  %v2962_v53 = vadd.f32 %v10637_v56, %v10640_v32  ;;  %v3200_v47 = vadd.f32 %v8027_v25, %v3073_v39 }
 0x18a   : > { %8514 = vmatprep.mubr.f32.mxu1 %v6154_v62  ;;  %8523 = vmatprep.subr.mxu0 %v10898_v7  ;;  %v3066_v62 = vadd.f32 %v3065_v48, %v2944_v3 }
 0x18b   : > { %v10725_v4 = vpop.f32.mrf.mxu1  ;;  %8515 = vmatmul.mubr.f32.gmra.mxu1 %v6164_v52  ;;  %v8016_v63 = vpop.f32.mrf.mxu0  ;;  %8495 = vmatmul.mubr.f32.gmra.mxu0 %v10594_v36  ;;  %v2956_v36 = vadd.f32 %v10647_v33, %v10650_v46  ;;  %v3087_v1 = vadd.f32 %v8010_v21, %v2962_v53  ;;  %v2968_v33 = vadd.f32 %v10661_v58, %v10664_v54 }
 0x18c   : > { %8543 = vmatprep.subr.mxu1 %v10370_v55  ;;  %8524 = vmatpush3.msra.mxu0 %v10898_v7  ;;  %v3192_v0 = vadd.f32 %v3191_v17, %v3066_v62 }
 0x18d   : > { %v10734_v13 = vpop.f32.mrf.mxu1  ;;  %8544 = vmatpush3.msra.mxu1 %v10370_v55  ;;  %v3107_v52 = vpop.f32.mrf.mxu0  ;;  %8525 = vmatprep.mubr.f32.mxu0 %v10405_v37  ;;  %v2974_v55 = vadd.f32 %v10654_v23, %v10657_v31  ;;  %v3080_v28 = vadd.f32 %v3079_v15, %v2956_v36  ;;  %v3216_v35 = vadd.f32 %v8030_v42, %v3087_v1 }
 0x18e   : > { %8545 = vmatprep.mubr.f32.mxu1 %v10405_v37  ;;  %v3094_v11 = vadd.f32 %v3093_v50, %v2968_v33 }
 0x18f   : > { %v8067_v56 = vpop.f32.mrf.mxu1  ;;  %8546 = vmatmul.mubr.f32.vlgmr.msra.gmra.mxu1 %v10410_v49  ;;  %v8047_v32 = vpop.f32.mrf.mxu0  ;;  %8526 = vmatmul.mubr.f32.vlgmr.msra.gmra.mxu0 %v10410_v49  ;;  %v3101_v46 = vadd.f32 %v8013_v43, %v2974_v55  ;;  %v2986_v49 = vadd.f32 %v10668_v26, %v10671_v29  ;;  %v3208_v58 = vadd.f32 %v10699_v16, %v3080_v28 }
 0x190   : > { %8548 = vmatprep.mubr.f32.mxu1 %v10467_v9  ;;  %v3337_v34 = vadd.f32 %v8047_v32, %v3200_v47  ;;  %8528 = vmatprep.mubr.f32.mxu0 %v10467_v9  ;;  %v2980_v26 = vadd.f32 %v10675_v10, %v10678_v51  ;;  %v3224_v21 = vadd.f32 %v10715_v60, %v3094_v11 }
 0x191   : > { %v3447_v37 = vpop.f32.mrf.mxu1  ;;  %v3330_v30 = vpop.f32.mrf.mxu0  ;;  %v3232_v29 = vadd.f32 %v10706_v14, %v3101_v46  ;;  %v3115_v48 = vadd.f32 %v8016_v63, %v2986_v49 }
 0x192   : > { %v3454_v38 = vadd.f32 %v8067_v56, %v3337_v34  ;;  %v3331_v23 = vadd.f32 %v3330_v30, %v3192_v0  ;;  %v3108_v10 = vadd.f32 %v3107_v52, %v2980_v26 }
 0x193   : > { %v8070_v31 = vpop.f32.mrf.mxu1  ;;  %8549 = vmatmul.mubr.f32.gmra.mxu1 %v10481_v22  ;;  %v8050_v9 = vpop.f32.mrf.mxu0  ;;  %8529 = vmatmul.mubr.f32.gmra.mxu0 %v10481_v22  ;;  %v3248_v14 = vadd.f32 %v10725_v4, %v3115_v48 }
 0x194   : > { %8551 = vmatprep.mubr.f32.mxu1 %v10519_v44  ;;  %v3494_v54 = vadd.f32 %v3454_v38, %v10534_v41  ;;  %v3448_v25 = vadd.f32 %v3447_v37, %v3331_v23  ;;  %v3349_v45 = vadd.f32 %v8050_v9, %v3216_v35  ;;  %8531 = vmatprep.mubr.f32.mxu0 %v10519_v44 }
 0x195   : > { %v3459_v6 = vpop.f32.mrf.mxu1  ;;  %v3342_v17 = vpop.f32.mrf.mxu0  ;;  %v3240_v50 = vadd.f32 %v10734_v13, %v3108_v10 }
 0x196   : > { %3502 = vst [vmem:[%s10761_s13 + $0x10] sm:$0xff] %v3494_v54  ;;  %v3493_v22 = vadd.f32 %v3448_v25, %v10549_v24  ;;  %v3466_v12 = vadd.f32 %v8070_v31, %v3349_v45  ;;  %v3343_v42 = vadd.f32 %v3342_v17, %v3208_v58 }
 0x197   : > { %v8073_v41 = vpop.f32.mrf.mxu1  ;;  %8552 = vmatmul.mubr.f32.gmra.mxu1 %v10531_v40  ;;  %v8053_v44 = vpop.f32.mrf.mxu0  ;;  %8532 = vmatmul.mubr.f32.gmra.mxu0 %v10531_v40 }
 0x198   : > { %8554 = vmatprep.mubr.f32.mxu1 %v10546_v8  ;;  %3501 = vst [vmem:[%s10761_s13] sm:$0xff] %v3493_v22  ;;  %v3496_v51 = vadd.f32 %v3466_v12, %v10565_v61  ;;  %v3460_v16 = vadd.f32 %v3459_v6, %v3343_v42  ;;  %v3361_v24 = vadd.f32 %v8053_v44, %v3232_v29 }
 0x199   : > { %v3471_v15 = vpop.f32.mrf.mxu1  ;;  %8534 = vmatprep.mubr.f32.mxu0 %v10546_v8  ;;  %v3354_v57 = vpop.f32.mrf.mxu0 }
 0x19a   : > { %3504 = vst [vmem:[%s10761_s13 + $0x30] sm:$0xff] %v3496_v51  ;;  %v3495_v43 = vadd.f32 %v3460_v16, %v10581_v5  ;;  %v3478_v40 = vadd.f32 %v8073_v41, %v3361_v24  ;;  %v3355_v18 = vadd.f32 %v3354_v57, %v3224_v21 }
 0x19b   : > { %v8076_v60 = vpop.f32.mrf.mxu1  ;;  %8555 = vmatmul.mubr.f32.gmra.mxu1 %v10562_v2  ;;  %v8056_v61 = vpop.f32.mrf.mxu0  ;;  %8535 = vmatmul.mubr.f32.gmra.mxu0 %v10562_v2 }
 0x19c   : > { %3503 = vst [vmem:[%s10761_s13 + $0x20] sm:$0xff] %v3495_v43  ;;  %v3498_v8 = vadd.f32 %v3478_v40, %v10597_v59  ;;  %v3472_v3 = vadd.f32 %v3471_v15, %v3355_v18  ;;  %v3373_v39 = vadd.f32 %v8056_v61, %v3248_v14 }
 0x19d   : > { %v3483_v7 = vpop.f32.mrf.mxu1  ;;  %v3366_v4 = vpop.f32.mrf.mxu0 }
 0x19e   : > { %3506 = vst [vmem:[%s10761_s13 + $0x50] sm:$0xff] %v3498_v8  ;;  %v3497_v5 = vadd.f32 %v3472_v3, %v10607_v20  ;;  %v3490_v63 = vadd.f32 %v8076_v60, %v3373_v39  ;;  %v3367_v53 = vadd.f32 %v3366_v4, %v3240_v50 }
 0x19f   : > { %v8107_v62 = vpop.f32.mrf.mxu1  ;;  %v8087_v52 = vpop.f32.mrf.mxu0 }
 0x1a0   : > { %3505 = vst [vmem:[%s10761_s13 + $0x40] sm:$0xff] %v3497_v5  ;;  %v3500_v2 = vadd.f32 %v3490_v63, %v10621_v27  ;;  %v3484_v13 = vadd.f32 %v3483_v7, %v3367_v53  ;;  %v3802_v36 = vadd.f32 %v8107_v62, %v8087_v52 }
 0x1a1   : > { %v3795_v47 = vpop.f32.mrf.mxu1  ;;  %v3634_v59 = vpop.f32.mrf.mxu0 }
 0x1a2   : > { %3508 = vst [vmem:[%s10761_s13 + $0x70] sm:$0xff] %v3500_v2  ;;  %v3499_v1 = vadd.f32 %v3484_v13, %v10634_v19  ;;  %v3796_v56 = vadd.f32 %v3795_v47, %v3634_v59 }
 0x1a3   : > { %v8110_v55 = vpop.f32.mrf.mxu1  ;;  %v8090_v32 = vpop.f32.mrf.mxu0 }
 0x1a4   : > { %3507 = vst [vmem:[%s10761_s13 + $0x60] sm:$0xff] %v3499_v1  ;;  %v3814_v20 = vadd.f32 %v8110_v55, %v8090_v32 }
 0x1a5   : > { %v3807_v0 = vpop.f32.mrf.mxu1  ;;  %v3654_v28 = vpop.f32.mrf.mxu0 }
 0x1a6   : > { %v3808_v34 = vadd.f32 %v3807_v0, %v3654_v28 }
 0x1a7   : > { %v8113_v37 = vpop.f32.mrf.mxu1  ;;  %v8093_v33 = vpop.f32.mrf.mxu0 }
 0x1a8   : > { %v3826_v46 = vadd.f32 %v8113_v37, %v8093_v33 }
 0x1a9   : > { %v3819_v30 = vpop.f32.mrf.mxu1  ;;  %v3674_v27 = vpop.f32.mrf.mxu0 }
 0x1aa   : > { %v3820_v35 = vadd.f32 %v3819_v30, %v3674_v27 }
 0x1ab   : > { %v8116_v38 = vpop.f32.mrf.mxu1  ;;  %v8096_v23 = vpop.f32.mrf.mxu0 }
 0x1ac   : > { %v3838_v31 = vadd.f32 %v8116_v38, %v8096_v23 }
 0x1ad   : > { %v3831_v49 = vpop.f32.mrf.mxu1  ;;  %v3694_v11 = vpop.f32.mrf.mxu0 }
 0x1ae   : > { %v3832_v19 = vadd.f32 %v3831_v49, %v3694_v11 }
 0x1af   : > { %v8147_v9 = vpop.f32.mrf.mxu1  ;;  %v8127_v58 = vpop.f32.mrf.mxu0 }
 0x1b0   : > { %v3925_v54 = vadd.f32 %v8127_v58, %v3802_v36 }
 0x1b1   : > { %v4043_v25 = vpop.f32.mrf.mxu1  ;;  %v3917_v45 = vpop.f32.mrf.mxu0 }
 0x1b2   : > { %v4052_v6 = vadd.f32 %v8147_v9, %v3925_v54  ;;  %v3918_v26 = vadd.f32 %v3917_v45, %v3796_v56 }
 0x1b3   : > { %v8150_v29 = vpop.f32.mrf.mxu1  ;;  %v8130_v17 = vpop.f32.mrf.mxu0 }
 0x1b4   : > { %v4044_v48 = vadd.f32 %v4043_v25, %v3918_v26  ;;  %v3939_v22 = vadd.f32 %v8130_v17, %v3814_v20 }
 0x1b5   : > { %v4059_v12 = vpop.f32.mrf.mxu1  ;;  %v3931_v42 = vpop.f32.mrf.mxu0 }
 0x1b6   : > { %v4068_v41 = vadd.f32 %v8150_v29, %v3939_v22  ;;  %v3932_v21 = vadd.f32 %v3931_v42, %v3808_v34 }
 0x1b7   : > { %v8153_v44 = vpop.f32.mrf.mxu1  ;;  %v8133_v10 = vpop.f32.mrf.mxu0 }
 0x1b8   : > { %v4060_v51 = vadd.f32 %v4059_v12, %v3932_v21  ;;  %v3953_v16 = vadd.f32 %v8133_v10, %v3826_v46 }
 0x1b9   : > { %v4075_v24 = vpop.f32.mrf.mxu1  ;;  %v3945_v15 = vpop.f32.mrf.mxu0 }
 0x1ba   : > { %v4084_v57 = vadd.f32 %v8153_v44, %v3953_v16  ;;  %v3946_v14 = vadd.f32 %v3945_v15, %v3820_v35 }
 0x1bb   : > { %v8156_v43 = vpop.f32.mrf.mxu1  ;;  %v8136_v40 = vpop.f32.mrf.mxu0 }
 0x1bc   : > { %v4076_v18 = vadd.f32 %v4075_v24, %v3946_v14  ;;  %v3967_v60 = vadd.f32 %v8136_v40, %v3838_v31 }
 0x1bd   : > { %v4091_v61 = vpop.f32.mrf.mxu1  ;;  %v3959_v50 = vpop.f32.mrf.mxu0 }
 0x1be   : > { %v4100_v8 = vadd.f32 %v8156_v43, %v3967_v60  ;;  %v3960_v3 = vadd.f32 %v3959_v50, %v3832_v19 }
 0x1bf   : > { %v8187_v39 = vpop.f32.mrf.mxu1  ;;  %v8167_v7 = vpop.f32.mrf.mxu0 }
 0x1c0   : > { %v4092_v4 = vadd.f32 %v4091_v61, %v3960_v3  ;;  %v4189_v5 = vadd.f32 %v8167_v7, %v4052_v6 }
 0x1c1   : > { %v4299_v63 = vpop.f32.mrf.mxu1  ;;  %v4182_v53 = vpop.f32.mrf.mxu0 }
 0x1c2   : > { %v4306_v62 = vadd.f32 %v8187_v39, %v4189_v5  ;;  %v4183_v52 = vadd.f32 %v4182_v53, %v4044_v48 }
 0x1c3   : > { %v8190_v2 = vpop.f32.mrf.mxu1  ;;  %v8170_v13 = vpop.f32.mrf.mxu0 }
 0x1c4   : > { %v4300_v36 = vadd.f32 %v4299_v63, %v4183_v52  ;;  %v4201_v47 = vadd.f32 %v8170_v13, %v4068_v41 }
 0x1c5   : > { %v4311_v59 = vpop.f32.mrf.mxu1  ;;  %v4194_v1 = vpop.f32.mrf.mxu0 }
 0x1c6   : > { %v4318_v56 = vadd.f32 %v8190_v2, %v4201_v47  ;;  %v4195_v55 = vadd.f32 %v4194_v1, %v4060_v51 }
 0x1c7   : > { %v8193_v32 = vpop.f32.mrf.mxu1  ;;  %v8173_v20 = vpop.f32.mrf.mxu0 }
 0x1c8   : > { %v4312_v0 = vadd.f32 %v4311_v59, %v4195_v55  ;;  %v4213_v28 = vadd.f32 %v8173_v20, %v4084_v57 }
 0x1c9   : > { %v4323_v34 = vpop.f32.mrf.mxu1  ;;  %v4206_v37 = vpop.f32.mrf.mxu0 }
 0x1ca   : > { %v4330_v33 = vadd.f32 %v8193_v32, %v4213_v28  ;;  %v4207_v46 = vadd.f32 %v4206_v37, %v4076_v18 }
 0x1cb   : > { %v8196_v30 = vpop.f32.mrf.mxu1  ;;  %v8176_v27 = vpop.f32.mrf.mxu0 }
 0x1cc   : > { %v4324_v35 = vadd.f32 %v4323_v34, %v4207_v46  ;;  %v4225_v38 = vadd.f32 %v8176_v27, %v4100_v8 }
 0x1cd   : > { %v4335_v23 = vpop.f32.mrf.mxu1  ;;  %v4218_v31 = vpop.f32.mrf.mxu0 }
 0x1ce   : > { %v4342_v49 = vadd.f32 %v8196_v30, %v4225_v38  ;;  %v4219_v11 = vadd.f32 %v4218_v31, %v4092_v4 }
 0x1cf   : > { %v8227_v19 = vpop.f32.mrf.mxu1  ;;  %v8207_v9 = vpop.f32.mrf.mxu0 }
 0x1d0   : > { %v4336_v58 = vadd.f32 %v4335_v23, %v4219_v11  ;;  %v4455_v54 = vadd.f32 %v8207_v9, %v4306_v62 }
 0x1d1   : > { %v4605_v25 = vpop.f32.mrf.mxu1  ;;  %v4444_v45 = vpop.f32.mrf.mxu0 }
 0x1d2   : > { %v4612_v6 = vadd.f32 %v8227_v19, %v4455_v54  ;;  %v4445_v26 = vadd.f32 %v4444_v45, %v4300_v36 }
 0x1d3   : > { %v8230_v29 = vpop.f32.mrf.mxu1  ;;  %v8210_v17 = vpop.f32.mrf.mxu0 }
 0x1d4   : > { %v4606_v48 = vadd.f32 %v4605_v25, %v4445_v26  ;;  %v4475_v22 = vadd.f32 %v8210_v17, %v4318_v56 }
 0x1d5   : > { %v4617_v12 = vpop.f32.mrf.mxu1  ;;  %v4464_v42 = vpop.f32.mrf.mxu0 }
 0x1d6   : > { %v4624_v41 = vadd.f32 %v8230_v29, %v4475_v22  ;;  %v4465_v21 = vadd.f32 %v4464_v42, %v4312_v0 }
 0x1d7   : > { %v8233_v44 = vpop.f32.mrf.mxu1  ;;  %v8213_v10 = vpop.f32.mrf.mxu0 }
 0x1d8   : > { %v4618_v51 = vadd.f32 %v4617_v12, %v4465_v21  ;;  %v4495_v16 = vadd.f32 %v8213_v10, %v4330_v33 }
 0x1d9   : > { %v4629_v24 = vpop.f32.mrf.mxu1  ;;  %v4484_v15 = vpop.f32.mrf.mxu0 }
 0x1da   : > { %v4636_v57 = vadd.f32 %v8233_v44, %v4495_v16  ;;  %v4485_v14 = vadd.f32 %v4484_v15, %v4324_v35 }
 0x1db   : > { %v8236_v43 = vpop.f32.mrf.mxu1  ;;  %v8216_v40 = vpop.f32.mrf.mxu0 }
 0x1dc   : > { %v4630_v18 = vadd.f32 %v4629_v24, %v4485_v14  ;;  %v4515_v60 = vadd.f32 %v8216_v40, %v4342_v49 }
 0x1dd   : > { %v4641_v61 = vpop.f32.mrf.mxu1  ;;  %v4504_v50 = vpop.f32.mrf.mxu0 }
 0x1de   : > { %v4648_v8 = vadd.f32 %v8236_v43, %v4515_v60  ;;  %v4505_v3 = vadd.f32 %v4504_v50, %v4336_v58 }
 0x1df   : > { %v8267_v39 = vpop.f32.mrf.mxu1  ;;  %v8247_v7 = vpop.f32.mrf.mxu0 }
 0x1e0   : > { %v4642_v4 = vadd.f32 %v4641_v61, %v4505_v3  ;;  %v4735_v5 = vadd.f32 %v8247_v7, %v4612_v6 }
 0x1e1   : > { %v4853_v63 = vpop.f32.mrf.mxu1  ;;  %v4727_v53 = vpop.f32.mrf.mxu0 }
 0x1e2   : > { %v4862_v62 = vadd.f32 %v8267_v39, %v4735_v5  ;;  %v4728_v52 = vadd.f32 %v4727_v53, %v4606_v48 }
 0x1e3   : > { %v8270_v2 = vpop.f32.mrf.mxu1  ;;  %v8250_v13 = vpop.f32.mrf.mxu0 }
 0x1e4   : > { %v4854_v36 = vadd.f32 %v4853_v63, %v4728_v52  ;;  %v4749_v47 = vadd.f32 %v8250_v13, %v4624_v41 }
 0x1e5   : > { %v4869_v59 = vpop.f32.mrf.mxu1  ;;  %v4741_v1 = vpop.f32.mrf.mxu0 }
 0x1e6   : > { %v4878_v56 = vadd.f32 %v8270_v2, %v4749_v47  ;;  %v4742_v55 = vadd.f32 %v4741_v1, %v4618_v51 }
 0x1e7   : > { %v8273_v32 = vpop.f32.mrf.mxu1  ;;  %v8253_v20 = vpop.f32.mrf.mxu0 }
 0x1e8   : > { %v4870_v0 = vadd.f32 %v4869_v59, %v4742_v55  ;;  %v4763_v28 = vadd.f32 %v8253_v20, %v4636_v57 }
 0x1e9   : > { %v4885_v34 = vpop.f32.mrf.mxu1  ;;  %v4755_v37 = vpop.f32.mrf.mxu0 }
 0x1ea   : > { %v4894_v33 = vadd.f32 %v8273_v32, %v4763_v28  ;;  %v4756_v46 = vadd.f32 %v4755_v37, %v4630_v18 }
 0x1eb   : > { %v8276_v30 = vpop.f32.mrf.mxu1  ;;  %v8256_v27 = vpop.f32.mrf.mxu0 }
 0x1ec   : > { %v4886_v35 = vadd.f32 %v4885_v34, %v4756_v46  ;;  %v4777_v38 = vadd.f32 %v8256_v27, %v4648_v8 }
 0x1ed   : > { %v4901_v23 = vpop.f32.mrf.mxu1  ;;  %v4769_v31 = vpop.f32.mrf.mxu0 }
 0x1ee   : > { %v4910_v49 = vadd.f32 %v8276_v30, %v4777_v38  ;;  %v4770_v11 = vadd.f32 %v4769_v31, %v4642_v4 }
 0x1ef   : > { %v8307_v19 = vpop.f32.mrf.mxu1  ;;  %v8287_v9 = vpop.f32.mrf.mxu0 }
 0x1f0   : > { %v4902_v58 = vadd.f32 %v4901_v23, %v4770_v11  ;;  %v4999_v54 = vadd.f32 %v8287_v9, %v4862_v62 }
 0x1f1   : > { %v5109_v25 = vpop.f32.mrf.mxu1  ;;  %v4992_v45 = vpop.f32.mrf.mxu0 }
 0x1f2   : > { %v10795_v6 = vadd.f32 %v8307_v19, %v4999_v54  ;;  %v4993_v26 = vadd.f32 %v4992_v45, %v4854_v36 }
 0x1f3   : > { %v8310_v29 = vpop.f32.mrf.mxu1  ;;  %v8290_v17 = vpop.f32.mrf.mxu0 }
 0x1f4   : > { %v10797_v48 = vadd.f32 %v5109_v25, %v4993_v26  ;;  %v5011_v22 = vadd.f32 %v8290_v17, %v4878_v56 }
 0x1f5   : > { %v5121_v12 = vpop.f32.mrf.mxu1  ;;  %v5004_v42 = vpop.f32.mrf.mxu0 }
 0x1f6   : > { %v10799_v41 = vadd.f32 %v8310_v29, %v5011_v22  ;;  %v5005_v21 = vadd.f32 %v5004_v42, %v4870_v0 }
 0x1f7   : > { %v8313_v44 = vpop.f32.mrf.mxu1  ;;  %v8293_v10 = vpop.f32.mrf.mxu0 }
 0x1f8   : > { %v10801_v51 = vadd.f32 %v5121_v12, %v5005_v21  ;;  %v5023_v16 = vadd.f32 %v8293_v10, %v4894_v33 }
 0x1f9   : > { %v5133_v24 = vpop.f32.mrf.mxu1  ;;  %v5016_v15 = vpop.f32.mrf.mxu0 }
 0x1fa   : > { %v10803_v57 = vadd.f32 %v8313_v44, %v5023_v16  ;;  %v5017_v14 = vadd.f32 %v5016_v15, %v4886_v35 }
 0x1fb   : > { %v8316_v43 = vpop.f32.mrf.mxu1  ;;  %v8296_v40 = vpop.f32.mrf.mxu0 }
 0x1fc   : > { %v10805_v18 = vadd.f32 %v5133_v24, %v5017_v14  ;;  %v5035_v60 = vadd.f32 %v8296_v40, %v4910_v49 }
 0x1fd   : > { %v5145_v61 = vpop.f32.mrf.mxu1  ;;  %v5028_v50 = vpop.f32.mrf.mxu0 }
 0x1fe   : > { %v10807_v8 = vadd.f32 %v8316_v43, %v5035_v60  ;;  %v5029_v3 = vadd.f32 %v5028_v50, %v4902_v58 }
 0x1ff   : > { %v8347_v39 = vpop.f32.mrf.mxu1  ;;  %v8327_v7 = vpop.f32.mrf.mxu0 }
 0x200   : > { %v10809_v4 = vadd.f32 %v5145_v61, %v5029_v3  ;;  %v5435_v5 = vadd.f32 %v8347_v39, %v8327_v7 }
 0x201   : > { %v5428_v63 = vpop.f32.mrf.mxu1  ;;  %v5267_v53 = vpop.f32.mrf.mxu0 }
 0x202   : > { %v5429_v62 = vadd.f32 %v5428_v63, %v5267_v53 }
 0x203   : > { %v8350_v52 = vpop.f32.mrf.mxu1  ;;  %v8330_v2 = vpop.f32.mrf.mxu0 }
 0x204   : > { %v5447_v13 = vadd.f32 %v8350_v52, %v8330_v2 }
 0x205   : > { %v5440_v36 = vpop.f32.mrf.mxu1  ;;  %v5287_v47 = vpop.f32.mrf.mxu0 }
 0x206   : > { %v5441_v59 = vadd.f32 %v5440_v36, %v5287_v47 }
 0x207   : > { %v8353_v1 = vpop.f32.mrf.mxu1  ;;  %v8333_v56 = vpop.f32.mrf.mxu0 }
 0x208   : > { %v5459_v55 = vadd.f32 %v8353_v1, %v8333_v56 }
 0x209   : > { %v5452_v32 = vpop.f32.mrf.mxu1  ;;  %v5307_v20 = vpop.f32.mrf.mxu0 }
 0x20a   : > { %v5453_v0 = vadd.f32 %v5452_v32, %v5307_v20 }
 0x20b   : > { %v8356_v28 = vpop.f32.mrf.mxu1  ;;  %v8336_v34 = vpop.f32.mrf.mxu0 }
 0x20c   : > { %v5471_v37 = vadd.f32 %v8356_v28, %v8336_v34 }
 0x20d   : > { %v5464_v33 = vpop.f32.mrf.mxu1  ;;  %v5327_v46 = vpop.f32.mrf.mxu0 }
 0x20e   : > { %v5465_v30 = vadd.f32 %v5464_v33, %v5327_v46 }
 0x20f   : > { %v8387_v27 = vpop.f32.mrf.mxu1  ;;  %v8367_v35 = vpop.f32.mrf.mxu0 }
 0x210   : > { %v5558_v45 = vadd.f32 %v8367_v35, %v5435_v5 }
 0x211   : > { %v5676_v38 = vpop.f32.mrf.mxu1  ;;  %v5550_v23 = vpop.f32.mrf.mxu0 }
 0x212   : > { %v5551_v17 = vadd.f32 %v5550_v23, %v5429_v62  ;;  %v5685_v42 = vadd.f32 %v8387_v27, %v5558_v45 }
 0x213   : > { %v8390_v31 = vpop.f32.mrf.mxu1  ;;  %v8370_v49 = vpop.f32.mrf.mxu0 }
 0x214   : > { %v5572_v21 = vadd.f32 %v8370_v49, %v5447_v13  ;;  %v5677_v16 = vadd.f32 %v5676_v38, %v5551_v17 }
 0x215   : > { %v5692_v11 = vpop.f32.mrf.mxu1  ;;  %v5564_v19 = vpop.f32.mrf.mxu0 }
 0x216   : > { %v5565_v24 = vadd.f32 %v5564_v19, %v5441_v59  ;;  %v5701_v60 = vadd.f32 %v8390_v31, %v5572_v21 }
 0x217   : > { %v8393_v9 = vpop.f32.mrf.mxu1  ;;  %v8373_v58 = vpop.f32.mrf.mxu0 }
 0x218   : > { %v5586_v43 = vadd.f32 %v8373_v58, %v5459_v55  ;;  %v5693_v5 = vadd.f32 %v5692_v11, %v5565_v24 }
 0x219   : > { %v5708_v54 = vpop.f32.mrf.mxu1  ;;  %v5578_v25 = vpop.f32.mrf.mxu0 }
 0x21a   : > { %v5579_v39 = vadd.f32 %v5578_v25, %v5453_v0  ;;  %v5717_v2 = vadd.f32 %v8393_v9, %v5586_v43 }
 0x21b   : > { %v8396_v26 = vpop.f32.mrf.mxu1  ;;  %v8376_v29 = vpop.f32.mrf.mxu0 }
 0x21c   : > { %v5600_v36 = vadd.f32 %v8376_v29, %v5471_v37  ;;  %v5709_v55 = vadd.f32 %v5708_v54, %v5579_v39 }
 0x21d   : > { %v5724_v22 = vpop.f32.mrf.mxu1  ;;  %v5592_v12 = vpop.f32.mrf.mxu0 }
 0x21e   : > { %v5593_v20 = vadd.f32 %v5592_v12, %v5465_v30  ;;  %v5733_v46 = vadd.f32 %v8396_v26, %v5600_v36 }
 0x21f   : > { %v8427_v44 = vpop.f32.mrf.mxu1  ;;  %v8407_v10 = vpop.f32.mrf.mxu0 }
 0x220   : > { %v5822_v15 = vadd.f32 %v8407_v10, %v5685_v42  ;;  %v5725_v23 = vadd.f32 %v5724_v22, %v5593_v20 }
 0x221   : > { %v5932_v14 = vpop.f32.mrf.mxu1  ;;  %v5815_v40 = vpop.f32.mrf.mxu0 }
 0x222   : > { %v5939_v61 = vadd.f32 %v8427_v44, %v5822_v15  ;;  %v5816_v50 = vadd.f32 %v5815_v40, %v5677_v16 }
 0x223   : > { %v8430_v3 = vpop.f32.mrf.mxu1  ;;  %v8410_v7 = vpop.f32.mrf.mxu0 }
 0x224   : > { %v10812_v63 = vadd.f32 %v5939_v61, %v10795_v6  ;;  %v5933_v53 = vadd.f32 %v5932_v14, %v5816_v50  ;;  %v5834_v62 = vadd.f32 %v8410_v7, %v5701_v60 }
 0x225   : > { %v5944_v52 = vpop.f32.mrf.mxu1  ;;  %v5827_v13 = vpop.f32.mrf.mxu0 }
 0x226   : > { %v10815_v47 = vadd.f32 %v5933_v53, %v10797_v48  ;;  %v5951_v59 = vadd.f32 %v8430_v3, %v5834_v62  ;;  %v5828_v1 = vadd.f32 %v5827_v13, %v5693_v5 }
 0x227   : > { %v8433_v56 = vpop.f32.mrf.mxu1  ;;  %v8413_v32 = vpop.f32.mrf.mxu0 }
 0x228   : > { %v10818_v0 = vadd.f32 %v5951_v59, %v10799_v41  ;;  %v5945_v6 = vadd.f32 %v5944_v52, %v5828_v1  ;;  %v5846_v28 = vadd.f32 %v8413_v32, %v5717_v2 }
 0x229   : > { %v5956_v34 = vpop.f32.mrf.mxu1  ;;  %v5839_v33 = vpop.f32.mrf.mxu0 }
 0x22a   : > { %v10821_v27 = vadd.f32 %v5945_v6, %v10801_v51  ;;  %v5963_v37 = vadd.f32 %v8433_v56, %v5846_v28  ;;  %v5840_v48 = vadd.f32 %v5839_v33, %v5709_v55 }
 0x22b   : > { %v8436_v35 = vpop.f32.mrf.mxu1  ;;  %v8416_v38 = vpop.f32.mrf.mxu0 }
 0x22c   : > { %v10824_v31 = vadd.f32 %v5963_v37, %v10803_v57  ;;  %v5957_v30 = vadd.f32 %v5956_v34, %v5840_v48  ;;  %v5858_v49 = vadd.f32 %v8416_v38, %v5733_v46 }
 0x22d   : > { %v5968_v41 = vpop.f32.mrf.mxu1  ;;  %v5851_v11 = vpop.f32.mrf.mxu0 }
 0x22e   : > { %v10827_v19 = vadd.f32 %v5957_v30, %v10805_v18  ;;  %v5975_v9 = vadd.f32 %v8436_v35, %v5858_v49  ;;  %v5852_v58 = vadd.f32 %v5851_v11, %v5725_v23 }
 0x22f   : > { %v8467_v54 = vpop.f32.mrf.mxu1  ;;  %v8447_v51 = vpop.f32.mrf.mxu0 }
 0x230   : > { %v10830_v25 = vadd.f32 %v5975_v9, %v10807_v8  ;;  %v5969_v45 = vadd.f32 %v5968_v41, %v5852_v58  ;;  %v6266_v5 = vadd.f32 %v8467_v54, %v8447_v51 }
 0x231   : > { %v6259_v26 = vpop.f32.mrf.mxu1  ;;  %v6098_v29 = vpop.f32.mrf.mxu0 }
 0x232   : > { %v10833_v57 = vadd.f32 %v5969_v45, %v10809_v4  ;;  %v6260_v52 = vadd.f32 %v6259_v26, %v6098_v29 }
 0x233   : > { %v8470_v17 = vpop.f32.mrf.mxu1  ;;  %v8450_v22 = vpop.f32.mrf.mxu0 }
 0x234   : > { %v6278_v59 = vadd.f32 %v8470_v17, %v8450_v22 }
 0x235   : > { %v6271_v12 = vpop.f32.mrf.mxu1  ;;  %v6118_v42 = vpop.f32.mrf.mxu0 }
 0x236   : > { %v6272_v32 = vadd.f32 %v6271_v12, %v6118_v42 }
 0x237   : > { %v8473_v21 = vpop.f32.mrf.mxu1  ;;  %v8453_v18 = vpop.f32.mrf.mxu0 }
 0x238   : > { %v6290_v34 = vadd.f32 %v8473_v21, %v8453_v18 }
 0x239   : > { %v6283_v44 = vpop.f32.mrf.mxu1  ;;  %v6138_v10 = vpop.f32.mrf.mxu0 }
 0x23a   : > { %v6284_v38 = vadd.f32 %v6283_v44, %v6138_v10 }
 0x23b   : > { %v8476_v16 = vpop.f32.mrf.mxu1  ;;  %v8456_v24 = vpop.f32.mrf.mxu0 }
 0x23c   : > { %v6302_v58 = vadd.f32 %v8476_v16, %v8456_v24 }
 0x23d   : > { %v6295_v15 = vpop.f32.mrf.mxu1  ;;  %v6158_v14 = vpop.f32.mrf.mxu0 }
 0x23e   : > { %v6296_v12 = vadd.f32 %v6295_v15, %v6158_v14 }
 0x23f   : > { %v8507_v8 = vpop.f32.mrf.mxu1  ;;  %v8487_v43 = vpop.f32.mrf.mxu0 }
 0x240   : > { %v6389_v2 = vadd.f32 %v8487_v43, %v6266_v5 }
 0x241   : > { %v6507_v40 = vpop.f32.mrf.mxu1  ;;  %v6381_v60 = vpop.f32.mrf.mxu0 }
 0x242   : > { %v6382_v1 = vadd.f32 %v6381_v60, %v6260_v52  ;;  %v6516_v20 = vadd.f32 %v8507_v8, %v6389_v2 }
 0x243   : > { %v8510_v61 = vpop.f32.mrf.mxu1  ;;  %v8490_v50 = vpop.f32.mrf.mxu0 }
 0x244   : > { %v6403_v6 = vadd.f32 %v8490_v50, %v6278_v59  ;;  %v6508_v46 = vadd.f32 %v6507_v40, %v6382_v1 }
 0x245   : > { %v6523_v4 = vpop.f32.mrf.mxu1  ;;  %v6395_v3 = vpop.f32.mrf.mxu0 }
 0x246   : > { %v6396_v37 = vadd.f32 %v6395_v3, %v6272_v32  ;;  %v6532_v49 = vadd.f32 %v8510_v61, %v6403_v6 }
 0x247   : > { %v8513_v39 = vpop.f32.mrf.mxu1  ;;  %v8493_v7 = vpop.f32.mrf.mxu0 }
 0x248   : > { %v6417_v23 = vadd.f32 %v8493_v7, %v6290_v34  ;;  %v6524_v45 = vadd.f32 %v6523_v4, %v6396_v37 }
 0x249   : > { %v6539_v53 = vpop.f32.mrf.mxu1  ;;  %v6409_v62 = vpop.f32.mrf.mxu0 }
 0x24a   : > { %v6410_v54 = vadd.f32 %v6409_v62, %v6284_v38  ;;  %v6548_v42 = vadd.f32 %v8513_v39, %v6417_v23 }
 0x24b   : > { %v8516_v13 = vpop.f32.mrf.mxu1  ;;  %v8496_v36 = vpop.f32.mrf.mxu0 }
 0x24c   : > { %v6431_v18 = vadd.f32 %v8496_v36, %v6302_v58  ;;  %v6540_v24 = vadd.f32 %v6539_v53, %v6410_v54 }
 0x24d   : > { %v6555_v56 = vpop.f32.mrf.mxu1  ;;  %v6423_v55 = vpop.f32.mrf.mxu0 }
 0x24e   : > { %v6424_v40 = vadd.f32 %v6423_v55, %v6296_v12  ;;  %v6564_v50 = vadd.f32 %v8516_v13, %v6431_v18 }
 0x24f   : > { %v8547_v28 = vpop.f32.mrf.mxu1  ;;  %v8527_v33 = vpop.f32.mrf.mxu0 }
 0x250   : > { %v6653_v48 = vadd.f32 %v8527_v33, %v6516_v20  ;;  %v6556_v5 = vadd.f32 %v6555_v56, %v6424_v40 }
 0x251   : > { %v6763_v35 = vpop.f32.mrf.mxu1  ;;  %v6646_v30 = vpop.f32.mrf.mxu0 }
 0x252   : > { %v6770_v41 = vadd.f32 %v8547_v28, %v6653_v48  ;;  %v6647_v11 = vadd.f32 %v6646_v30, %v6508_v46 }
 0x253   : > { %v8550_v9 = vpop.f32.mrf.mxu1  ;;  %v8530_v51 = vpop.f32.mrf.mxu0 }
 0x254   : > { %v6810_v26 = vadd.f32 %v6770_v41, %v10812_v63  ;;  %v6764_v29 = vadd.f32 %v6763_v35, %v6647_v11  ;;  %v6665_v17 = vadd.f32 %v8530_v51, %v6532_v49 }
 0x255   : > { %v6775_v22 = vpop.f32.mrf.mxu1  ;;  %v6658_v21 = vpop.f32.mrf.mxu0 }
 0x256   : > { %7010 = vst [vmem:[%s10761_s13 + $0x18] sm:$0xff] %v6810_v26  ;;  %v6809_v44 = vadd.f32 %v6764_v29, %v10815_v47  ;;  %v6782_v10 = vadd.f32 %v8550_v9, %v6665_v17  ;;  %v6659_v8 = vadd.f32 %v6658_v21, %v6524_v45 }
 0x257   : > { %v8553_v16 = vpop.f32.mrf.mxu1  ;;  %v8533_v43 = vpop.f32.mrf.mxu0 }
 0x258   : > { %7009 = vst [vmem:[%s10761_s13 + $0x8] sm:$0xff] %v6809_v44  ;;  %v6812_v63 = vadd.f32 %v6782_v10, %v10818_v0  ;;  %v6776_v60 = vadd.f32 %v6775_v22, %v6659_v8  ;;  %v6677_v61 = vadd.f32 %v8533_v43, %v6548_v42 }
 0x259   : > { %v6787_v15 = vpop.f32.mrf.mxu1  ;;  %v6670_v14 = vpop.f32.mrf.mxu0 }
 0x25a   : > { %7012 = vst [vmem:[%s10761_s13 + $0x38] sm:$0xff] %v6812_v63  ;;  %v6811_v4 = vadd.f32 %v6776_v60, %v10821_v27  ;;  %v6794_v47 = vadd.f32 %v8553_v16, %v6677_v61  ;;  %v6671_v3 = vadd.f32 %v6670_v14, %v6540_v24 }
 0x25b   : > { %v8536_v39 = vpop.f32.mrf.mxu0  ;;  %v8556_v7 = vpop.f32.mrf.mxu1 }
 0x25c   : > { %7011 = vst [vmem:[%s10761_s13 + $0x28] sm:$0xff] %v6811_v4  ;;  %v6814_v0 = vadd.f32 %v6794_v47, %v10824_v31  ;;  %v6788_v53 = vadd.f32 %v6787_v15, %v6671_v3  ;;  %v6689_v62 = vadd.f32 %v8536_v39, %v6564_v50 }
 0x25d   : > { %v6682_v52 = vpop.f32.mrf.mxu0  ;;  %v6799_v27 = vpop.f32.mrf.mxu1 }
 0x25e   : > { %7014 = vst [vmem:[%s10761_s13 + $0x58] sm:$0xff] %v6814_v0  ;;  %v6813_v2 = vadd.f32 %v6788_v53, %v10827_v19  ;;  %v6806_v13 = vadd.f32 %v8556_v7, %v6689_v62  ;;  %v6683_v36 = vadd.f32 %v6682_v52, %v6556_v5 }
 0x260   : > { %7013 = vst [vmem:[%s10761_s13 + $0x48] sm:$0xff] %v6813_v2  ;;  %v6816_v59 = vadd.f32 %v6806_v13, %v10830_v25  ;;  %v6800_v1 = vadd.f32 %v6799_v27, %v6683_v36 }
 0x262   : > { %7016 = vst [vmem:[%s10761_s13 + $0x78] sm:$0xff] %v6816_v59  ;;  %v6815_v56 = vadd.f32 %v6800_v1, %v10833_v57 }
 0x264   : > { %7015 = vst [vmem:[%s10761_s13 + $0x68] sm:$0xff] %v6815_v56 }
 0x265 PF: > { %s12_s11 = sadd.s32 1, %s8603_s11   ;;  %s10899_s9 = smov %s8599_s10 }
 0x266   : > { %p9_p6 = scmp.ge.s32.totalorder %s12_s11, 6   ;;  %s10900_s10 = smov %s10902_s12 }
 0x268   :  { %11 = sbr.rel (!%p9_p6) target bundleno = 2 (0x2), region = 69 }

</bundles_post_ra>
